<compile_context>
chip_gen: v7x
topology: tpu7x:2x2x1
jax: 0.10.0
libtpu: 0.0.40
codegen_flags: <defaults>
</compile_context>

<pallas_src>
import functools

import jax
import jax.numpy as jnp
from jax.experimental import pallas as pl
from jax.experimental.pallas import tpu as pltpu

HIDDEN = 64          # nn.LSTM(dim, 64, num_layers=2)
HP = 128             # hidden padded to one full lane tile
GP = 4 * HP          # padded gate width: [i, f, g, o] blocks of 128 lanes each


# ---------------------------------------------------------------------------
# Fused Pallas kernel
# ---------------------------------------------------------------------------
def fused_lstm_kernel(x_ref, wx0_ref, wh0_ref, b0_ref,
                      w1_ref, b1_ref,
                      wlin_ref, blin_ref,
                      out_ref,
                      xp_sc,
                      *, seq_len, batch_pad, batch):
    """Whole forward pass in one kernel invocation (no grid).

    x_ref   : (T*Bp, D)   time-major, batch-padded, flattened input (bf16)
    wx0_ref : (D, GP)     layer-0 input->gate weights, padded+transposed (bf16)
    wh0_ref : (HP, GP)    layer-0 hidden->gate weights, padded+transposed (bf16)
    b0_ref  : (1, GP)     layer-0 b_ih + b_hh, zero-padded (f32)
    w1_ref  : (2*HP, GP)  layer-1 FUSED [input; hidden]->gate weights (bf16)
    b1_ref  : (1, GP)     layer-1 b_ih + b_hh, zero-padded (f32)
    wlin_ref: (1, 2*HP)   head weight, zero-padded (f32)
    blin_ref: (1, 1)      head bias (f32)
    out_ref : (Bp, HP)    sigmoid(pred) broadcast across lanes (full-tile store)
    xp_sc   : (T*Bp, GP)  VMEM scratch: hoisted layer-0 gate pre-activations
    """
    T, Bp, B = seq_len, batch_pad, batch

    def cell(gates, c):
        # Each gate slice is a full, 128-lane-aligned block (free extraction).
        i = jax.nn.sigmoid(gates[:, 0 * HP:1 * HP])
        f = jax.nn.sigmoid(gates[:, 1 * HP:2 * HP])
        g = jnp.tanh(gates[:, 2 * HP:3 * HP])
        o = jax.nn.sigmoid(gates[:, 3 * HP:4 * HP])
        c_new = f * c + i * g
        h_new = o * jnp.tanh(c_new)
        return h_new, c_new

    # Hoisted layer-0 input projection for every timestep: one MXU matmul.
    xp_sc[...] = (jnp.dot(x_ref[...], wx0_ref[...],
                          preferred_element_type=jnp.float32)
                  + b0_ref[...])                                   # (T*Bp, GP)

    h0 = jnp.zeros((Bp, HP), jnp.float32)
    c0 = jnp.zeros((Bp, HP), jnp.float32)
    h1 = jnp.zeros((Bp, HP), jnp.float32)
    c1 = jnp.zeros((Bp, HP), jnp.float32)

    # Wavefront recurrence: iteration s computes layer-0 step s and layer-1
    # step s-1.  Both matmuls read the same (pre-update) h0, so they are
    # independent and their MXU latencies overlap on the serial path.
    for s in range(T + 1):
        g1 = None
        if s >= 1:
            # Layer-1 step s-1: one fused K=256 matmul (input + recurrent).
            lhs1 = jnp.concatenate([h0, h1], axis=-1).astype(jnp.bfloat16)
            g1 = (jnp.dot(lhs1, w1_ref[...],
                          preferred_element_type=jnp.float32) + b1_ref[...])
        if s < T:
            # Layer-0 step s: recurrent projection only (input part hoisted).
            g0 = xp_sc[s * Bp:(s + 1) * Bp, :] + jnp.dot(
                h0.astype(jnp.bfloat16), wh0_ref[...],
                preferred_element_type=jnp.float32)
            h0, c0 = cell(g0, c0)
        if s >= 1:
            h1, c1 = cell(g1, c1)

    # Head: Linear(2H -> 1) + Sigmoid as a VPU row-reduction (no N=1 matmul).
    # rows [0:B] of h1 are the last hidden states for X1, rows [B:2B] for X2;
    # padded hidden columns are exactly zero so they contribute nothing.
    logit = (jnp.sum(h1[0:B, :] * wlin_ref[:, 0:HP], axis=-1, keepdims=True)
             + jnp.sum(h1[B:2 * B, :] * wlin_ref[:, HP:2 * HP],
                       axis=-1, keepdims=True)
             + blin_ref[...])                                      # (B, 1)
    pred = jax.nn.sigmoid(logit)
    pred_full = jnp.concatenate(
        [pred, jnp.zeros((Bp - B, 1), jnp.float32)], axis=0)       # (Bp, 1)
    out_ref[...] = jnp.broadcast_to(pred_full, (Bp, HP))           # full-tile store


# ---------------------------------------------------------------------------
# pallas_call wrapper
# ---------------------------------------------------------------------------
def _fused_forward(params, x_flat, *, seq_len, batch_pad, batch):
    Tn, Bp, B = seq_len, batch_pad, batch
    D = x_flat.shape[-1]
    kernel = functools.partial(fused_lstm_kernel, seq_len=Tn,
                               batch_pad=Bp, batch=B)
    return pl.pallas_call(
        kernel,
        out_shape=jax.ShapeDtypeStruct((Bp, HP), jnp.float32),
        grid=(),
        in_specs=[
            pl.BlockSpec((Tn * Bp, D), lambda: (0, 0)),   # x (bf16)
            pl.BlockSpec((D, GP), lambda: (0, 0)),        # wx0
            pl.BlockSpec((HP, GP), lambda: (0, 0)),       # wh0
            pl.BlockSpec((1, GP), lambda: (0, 0)),        # b0
            pl.BlockSpec((2 * HP, GP), lambda: (0, 0)),   # fused w1 = [wx1; wh1]
            pl.BlockSpec((1, GP), lambda: (0, 0)),        # b1
            pl.BlockSpec((1, 2 * HP), lambda: (0, 0)),    # w_lin
            pl.BlockSpec((1, 1), lambda: (0, 0)),         # b_lin
        ],
        out_specs=pl.BlockSpec((Bp, HP), lambda: (0, 0)),
        scratch_shapes=[
            pltpu.VMEM((Tn * Bp, GP), jnp.float32),   # hoisted gate pre-activations
        ],
        # Explicit VMEM budget (v7x scoped default); everything here is << 1 MiB
        # at T=8, this is a guard for when T scales.
        compiler_params=pltpu.CompilerParams(vmem_limit_bytes=32 * 1024 * 1024),
    )(x_flat, params["wx0"], params["wh0"], params["b0"],
      params["w1"], params["b1"],
      params["w_lin"], params["b_lin"])


# ---------------------------------------------------------------------------
# Parameter preparation (PyTorch-like init -> padded kernel layout)
# ---------------------------------------------------------------------------
def _pad_gate_matrix(w_pt, in_pad, hidden):
    """PyTorch (4*hidden, in_dim) gate weight -> (in_pad, GP): transposed,
    each gate block placed at a 128-lane boundary, zero-padded elsewhere."""
    in_dim = w_pt.shape[1]
    out = jnp.zeros((in_pad, GP), jnp.float32)
    for g in range(4):
        blk = w_pt[g * hidden:(g + 1) * hidden, :].T           # (in_dim, hidden)
        out = out.at[:in_dim, g * HP:g * HP + hidden].set(blk)
    return out


def _pad_gate_bias(b_pt, hidden):
    out = jnp.zeros((1, GP), jnp.float32)
    for g in range(4):
        out = out.at[0, g * HP:g * HP + hidden].set(b_pt[g * hidden:(g + 1) * hidden])
    return out


def init_params(key, dim, hidden=HIDDEN):
    """Mimics nn.LSTM(dim, 64, num_layers=2) + nn.Linear(128, 1) init.

    Returns (kernel_params, raw_params): padded/bf16 layouts for the kernel and
    the PyTorch-layout f32 tensors for the pure-JAX reference."""
    ks = jax.random.split(key, 10)
    k = 1.0 / jnp.sqrt(hidden)

    def u(kk, shape, bound):
        return jax.random.uniform(kk, shape, jnp.float32, -bound, bound)

    raw = {
        "w_ih0": u(ks[0], (4 * hidden, dim), k),
        "w_hh0": u(ks[1], (4 * hidden, hidden), k),
        "b0": u(ks[2], (4 * hidden,), k) + u(ks[3], (4 * hidden,), k),
        "w_ih1": u(ks[4], (4 * hidden, hidden), k),
        "w_hh1": u(ks[5], (4 * hidden, hidden), k),
        "b1": u(ks[6], (4 * hidden,), k) + u(ks[7], (4 * hidden,), k),
    }
    kl = 1.0 / jnp.sqrt(2 * hidden)
    raw["w_lin"] = u(ks[8], (1, 2 * hidden), kl)
    raw["b_lin"] = u(ks[9], (1,), kl)

    w_lin_p = jnp.zeros((1, 2 * HP), jnp.float32)
    w_lin_p = w_lin_p.at[0, 0:hidden].set(raw["w_lin"][0, 0:hidden])
    w_lin_p = w_lin_p.at[0, HP:HP + hidden].set(raw["w_lin"][0, hidden:2 * hidden])

    # Layer-1 fused weight: rows [0:HP] take h0 (input), rows [HP:2HP] take h1.
    wx1_p = _pad_gate_matrix(raw["w_ih1"], HP, hidden)
    wh1_p = _pad_gate_matrix(raw["w_hh1"], HP, hidden)
    w1_fused = jnp.concatenate([wx1_p, wh1_p], axis=0)          # (2*HP, GP)

    params = {
        "wx0": _pad_gate_matrix(raw["w_ih0"], dim, hidden).astype(jnp.bfloat16),
        "wh0": _pad_gate_matrix(raw["w_hh0"], HP, hidden).astype(jnp.bfloat16),
        "b0": _pad_gate_bias(raw["b0"], hidden),
        "w1": w1_fused.astype(jnp.bfloat16),
        "b1": _pad_gate_bias(raw["b1"], hidden),
        "w_lin": w_lin_p,
        "b_lin": raw["b_lin"].reshape(1, 1),
    }
    return params, raw


@jax.jit
def lstm_forward(params, X1, X2):
    """Equivalent of LSTM.forward(X1, X2): (B,T,dim) x2 -> (B,)."""
    B, T, D = X1.shape
    Bp = ((2 * B + 7) // 8) * 8                         # pad batch to a sublane tile

    x_all = jnp.concatenate([X1, X2], axis=0).astype(jnp.float32)    # (2B, T, D)
    if Bp > 2 * B:
        x_all = jnp.concatenate(
            [x_all, jnp.zeros((Bp - 2 * B, T, D), jnp.float32)], axis=0)
    # time-major, flattened, and pre-cast to bf16 (MXU operand dtype) so the
    # whole layer-0 input projection is one matmul and the DMA is half-size.
    x_flat = jnp.transpose(x_all, (1, 0, 2)).reshape(T * Bp, D).astype(jnp.bfloat16)

    out = _fused_forward(params, x_flat, seq_len=T, batch_pad=Bp, batch=B)
    return out[:B, 0]                                                # (B,)


# ---------------------------------------------------------------------------
# Pure-JAX reference (PyTorch semantics, mirrors the kernel's bf16 rounding)
# ---------------------------------------------------------------------------
def _ref_forward(raw, X1, X2, hidden=HIDDEN):
    def bf(v):  # match the kernel: bf16 MXU operands, f32 accumulation
        return v.astype(jnp.bfloat16)

    def layer(x_tbd, w_ih, w_hh, b):
        T, Bn, _ = x_tbd.shape
        h = jnp.zeros((Bn, hidden), jnp.float32)
        c = jnp.zeros((Bn, hidden), jnp.float32)
        outs = []
        for t in range(T):
            gates = (jnp.dot(bf(x_tbd[t]), bf(w_ih).T,
                             preferred_element_type=jnp.float32)
                     + jnp.dot(bf(h), bf(w_hh).T,
                               preferred_element_type=jnp.float32)
                     + b)
            i = jax.nn.sigmoid(gates[:, 0 * hidden:1 * hidden])
            f = jax.nn.sigmoid(gates[:, 1 * hidden:2 * hidden])
            g = jnp.tanh(gates[:, 2 * hidden:3 * hidden])
            o = jax.nn.sigmoid(gates[:, 3 * hidden:4 * hidden])
            c = f * c + i * g
            h = o * jnp.tanh(c)
            outs.append(h)
        return jnp.stack(outs, axis=0)

    def stack(x_btd):
        x_tbd = jnp.transpose(x_btd, (1, 0, 2)).astype(jnp.float32)
        o0 = layer(x_tbd, raw["w_ih0"], raw["w_hh0"], raw["b0"])
        o1 = layer(o0, raw["w_ih1"], raw["w_hh1"], raw["b1"])
        return o1[-1]

    catted = jnp.concatenate([stack(X1), stack(X2)], axis=1)
    return jax.nn.sigmoid(catted @ raw["w_lin"].T + raw["b_lin"]).reshape(-1)


if __name__ == "__main__":
    B, T, DIM = 2, 8, 32

    key = jax.random.PRNGKey(0)
    kp, kx1, kx2 = jax.random.split(key, 3)
    params, raw = init_params(kp, DIM)

    X1 = jax.random.normal(kx1, (B, T, DIM), dtype=jnp.float32)
    X2 = jax.random.normal(kx2, (B, T, DIM), dtype=jnp.float32)

    out = lstm_forward(params, X1, X2)
    out = jax.block_until_ready(out)

    assert out.shape == (B,)
    assert bool(jnp.all(jnp.isfinite(out)))
    assert bool(jnp.all((out >= 0.0) & (out <= 1.0)))   # sigmoid output range

    ref = _ref_forward(raw, X1, X2)
    assert bool(jnp.max(jnp.abs(out - ref)) < 2e-2), \
        "Pallas kernel disagrees with pure-JAX reference"

    print("KERNEL_OK")
</pallas_src>

<mosaic_0001>
module attributes {stable_mosaic.version = 11 : i64} {
  func.func @fused_lstm_kernel(%arg0: memref<64x32xbf16, #tpu.memory_space<vmem>>, %arg1: memref<32x512xbf16, #tpu.memory_space<vmem>>, %arg2: memref<128x512xbf16, #tpu.memory_space<vmem>>, %arg3: memref<1x512xf32, #tpu.memory_space<vmem>>, %arg4: memref<256x512xbf16, #tpu.memory_space<vmem>>, %arg5: memref<1x512xf32, #tpu.memory_space<vmem>>, %arg6: memref<1x256xf32, #tpu.memory_space<vmem>>, %arg7: memref<1x1xf32, #tpu.memory_space<vmem>>, %arg8: memref<8x128xf32, #tpu.memory_space<vmem>>, %arg9: memref<64x512xf32, #tpu.memory_space<vmem>>) attributes {dimension_semantics = [], scalar_prefetch = 0 : i64, scratch_operands = 1 : i64, tpu.core_type = #tpu.core_type<tc>} {
    %c0 = arith.constant 0 : index
    %c0_0 = arith.constant 0 : index
    %0 = vector.load %arg0[%c0, %c0_0] : memref<64x32xbf16, #tpu.memory_space<vmem>>, vector<64x32xbf16>
    %c0_1 = arith.constant 0 : index
    %c0_2 = arith.constant 0 : index
    %1 = vector.load %arg1[%c0_1, %c0_2] : memref<32x512xbf16, #tpu.memory_space<vmem>>, vector<32x512xbf16>
    %cst = arith.constant dense<0.000000e+00> : vector<64x512xf32>
    %2 = tpu.matmul %0, %1, %cst {dimension_numbers = #tpu.dot_dimension_numbers<[1], [0], [0], [1], [0, 0, 1, 1], [], []>} : vector<64x32xbf16>, vector<32x512xbf16>, vector<64x512xf32> -> vector<64x512xf32>
    %c0_3 = arith.constant 0 : index
    %c0_4 = arith.constant 0 : index
    %3 = vector.load %arg3[%c0_3, %c0_4] : memref<1x512xf32, #tpu.memory_space<vmem>>, vector<1x512xf32>
    %4 = vector.broadcast %3 : vector<1x512xf32> to vector<64x512xf32>
    %5 = arith.addf %2, %4 : vector<64x512xf32>
    %c0_5 = arith.constant 0 : index
    %c0_6 = arith.constant 0 : index
    %6 = vector.load %arg9[%c0_5, %c0_6] : memref<64x512xf32, #tpu.memory_space<vmem>>, vector<64x512xf32>
    tpu.vector_store %arg9[%c0_5, %c0_6], %5 {strides = array<i32>} : memref<64x512xf32, #tpu.memory_space<vmem>>, vector<64x512xf32>,
    %cst_7 = arith.constant 0.000000e+00 : f32
    %7 = vector.broadcast %cst_7 : f32 to vector<8x128xf32>
    %cst_8 = arith.constant 0.000000e+00 : f32
    %8 = vector.broadcast %cst_8 : f32 to vector<8x128xf32>
    %cst_9 = arith.constant 0.000000e+00 : f32
    %9 = vector.broadcast %cst_9 : f32 to vector<8x128xf32>
    %cst_10 = arith.constant 0.000000e+00 : f32
    %10 = vector.broadcast %cst_10 : f32 to vector<8x128xf32>
    %c0_11 = arith.constant 0 : index
    %c0_12 = arith.constant 0 : index
    %11 = vector.load %arg9[%c0_11, %c0_12] : memref<64x512xf32, #tpu.memory_space<vmem>>, vector<8x512xf32>
    %12 = arith.truncf %7 : vector<8x128xf32> to vector<8x128xbf16>
    %c0_13 = arith.constant 0 : index
    %c0_14 = arith.constant 0 : index
    %13 = vector.load %arg2[%c0_13, %c0_14] : memref<128x512xbf16, #tpu.memory_space<vmem>>, vector<128x512xbf16>
    %cst_15 = arith.constant dense<0.000000e+00> : vector<8x512xf32>
    %14 = tpu.matmul %12, %13, %cst_15 {dimension_numbers = #tpu.dot_dimension_numbers<[1], [0], [0], [1], [0, 0, 1, 1], [], []>} : vector<8x128xbf16>, vector<128x512xbf16>, vector<8x512xf32> -> vector<8x512xf32>
    %15 = arith.addf %11, %14 : vector<8x512xf32>
    %16 = vector.extract_strided_slice %15 {offsets = [0, 0], sizes = [8, 128], strides = [1, 1]} : vector<8x512xf32> to vector<8x128xf32>
    %17 = arith.negf %16 : vector<8x128xf32>
    %18 = math.exp %17 : vector<8x128xf32>
    %cst_16 = arith.constant 1.000000e+00 : f32
    %19 = vector.broadcast %cst_16 : f32 to vector<8x128xf32>
    %20 = arith.addf %19, %18 : vector<8x128xf32>
    %21 = arith.divf %19, %20 : vector<8x128xf32>
    %22 = vector.extract_strided_slice %15 {offsets = [0, 128], sizes = [8, 128], strides = [1, 1]} : vector<8x512xf32> to vector<8x128xf32>
    %23 = arith.negf %22 : vector<8x128xf32>
    %24 = math.exp %23 : vector<8x128xf32>
    %cst_17 = arith.constant 1.000000e+00 : f32
    %25 = vector.broadcast %cst_17 : f32 to vector<8x128xf32>
    %26 = arith.addf %25, %24 : vector<8x128xf32>
    %27 = arith.divf %25, %26 : vector<8x128xf32>
    %28 = vector.extract_strided_slice %15 {offsets = [0, 256], sizes = [8, 128], strides = [1, 1]} : vector<8x512xf32> to vector<8x128xf32>
    %29 = math.tanh %28 : vector<8x128xf32>
    %30 = vector.extract_strided_slice %15 {offsets = [0, 384], sizes = [8, 128], strides = [1, 1]} : vector<8x512xf32> to vector<8x128xf32>
    %31 = arith.negf %30 : vector<8x128xf32>
    %32 = math.exp %31 : vector<8x128xf32>
    %cst_18 = arith.constant 1.000000e+00 : f32
    %33 = vector.broadcast %cst_18 : f32 to vector<8x128xf32>
    %34 = arith.addf %33, %32 : vector<8x128xf32>
    %35 = arith.divf %33, %34 : vector<8x128xf32>
    %36 = arith.mulf %27, %8 : vector<8x128xf32>
    %37 = arith.mulf %21, %29 : vector<8x128xf32>
    %38 = arith.addf %36, %37 : vector<8x128xf32>
    %39 = math.tanh %38 : vector<8x128xf32>
    %40 = arith.mulf %35, %39 : vector<8x128xf32>
    %41 = tpu.concatenate %40, %9 in 1 : vector<8x128xf32>, vector<8x128xf32> -> vector<8x256xf32>
    %42 = arith.truncf %41 : vector<8x256xf32> to vector<8x256xbf16>
    %c0_19 = arith.constant 0 : index
    %c0_20 = arith.constant 0 : index
    %43 = vector.load %arg4[%c0_19, %c0_20] : memref<256x512xbf16, #tpu.memory_space<vmem>>, vector<256x512xbf16>
    %cst_21 = arith.constant dense<0.000000e+00> : vector<8x512xf32>
    %44 = tpu.matmul %42, %43, %cst_21 {dimension_numbers = #tpu.dot_dimension_numbers<[1], [0], [0], [1], [0, 0, 1, 1], [], []>} : vector<8x256xbf16>, vector<256x512xbf16>, vector<8x512xf32> -> vector<8x512xf32>
    %c0_22 = arith.constant 0 : index
    %c0_23 = arith.constant 0 : index
    %45 = vector.load %arg5[%c0_22, %c0_23] : memref<1x512xf32, #tpu.memory_space<vmem>>, vector<1x512xf32>
    %46 = vector.broadcast %45 : vector<1x512xf32> to vector<8x512xf32>
    %47 = arith.addf %44, %46 : vector<8x512xf32>
    %c8 = arith.constant 8 : index
    %c0_24 = arith.constant 0 : index
    %48 = vector.load %arg9[%c8, %c0_24] : memref<64x512xf32, #tpu.memory_space<vmem>>, vector<8x512xf32>
    %49 = arith.truncf %40 : vector<8x128xf32> to vector<8x128xbf16>
    %c0_25 = arith.constant 0 : index
    %c0_26 = arith.constant 0 : index
    %50 = vector.load %arg2[%c0_25, %c0_26] : memref<128x512xbf16, #tpu.memory_space<vmem>>, vector<128x512xbf16>
    %cst_27 = arith.constant dense<0.000000e+00> : vector<8x512xf32>
    %51 = tpu.matmul %49, %50, %cst_27 {dimension_numbers = #tpu.dot_dimension_numbers<[1], [0], [0], [1], [0, 0, 1, 1], [], []>} : vector<8x128xbf16>, vector<128x512xbf16>, vector<8x512xf32> -> vector<8x512xf32>
    %52 = arith.addf %48, %51 : vector<8x512xf32>
    %53 = vector.extract_strided_slice %52 {offsets = [0, 0], sizes = [8, 128], strides = [1, 1]} : vector<8x512xf32> to vector<8x128xf32>
    %54 = arith.negf %53 : vector<8x128xf32>
    %55 = math.exp %54 : vector<8x128xf32>
    %cst_28 = arith.constant 1.000000e+00 : f32
    %56 = vector.broadcast %cst_28 : f32 to vector<8x128xf32>
    %57 = arith.addf %56, %55 : vector<8x128xf32>
    %58 = arith.divf %56, %57 : vector<8x128xf32>
    %59 = vector.extract_strided_slice %52 {offsets = [0, 128], sizes = [8, 128], strides = [1, 1]} : vector<8x512xf32> to vector<8x128xf32>
    %60 = arith.negf %59 : vector<8x128xf32>
    %61 = math.exp %60 : vector<8x128xf32>
    %cst_29 = arith.constant 1.000000e+00 : f32
    %62 = vector.broadcast %cst_29 : f32 to vector<8x128xf32>
    %63 = arith.addf %62, %61 : vector<8x128xf32>
    %64 = arith.divf %62, %63 : vector<8x128xf32>
    %65 = vector.extract_strided_slice %52 {offsets = [0, 256], sizes = [8, 128], strides = [1, 1]} : vector<8x512xf32> to vector<8x128xf32>
    %66 = math.tanh %65 : vector<8x128xf32>
    %67 = vector.extract_strided_slice %52 {offsets = [0, 384], sizes = [8, 128], strides = [1, 1]} : vector<8x512xf32> to vector<8x128xf32>
    %68 = arith.negf %67 : vector<8x128xf32>
    %69 = math.exp %68 : vector<8x128xf32>
    %cst_30 = arith.constant 1.000000e+00 : f32
    %70 = vector.broadcast %cst_30 : f32 to vector<8x128xf32>
    %71 = arith.addf %70, %69 : vector<8x128xf32>
    %72 = arith.divf %70, %71 : vector<8x128xf32>
    %73 = arith.mulf %64, %38 : vector<8x128xf32>
    %74 = arith.mulf %58, %66 : vector<8x128xf32>
    %75 = arith.addf %73, %74 : vector<8x128xf32>
    %76 = math.tanh %75 : vector<8x128xf32>
    %77 = arith.mulf %72, %76 : vector<8x128xf32>
    %78 = vector.extract_strided_slice %47 {offsets = [0, 0], sizes = [8, 128], strides = [1, 1]} : vector<8x512xf32> to vector<8x128xf32>
    %79 = arith.negf %78 : vector<8x128xf32>
    %80 = math.exp %79 : vector<8x128xf32>
    %cst_31 = arith.constant 1.000000e+00 : f32
    %81 = vector.broadcast %cst_31 : f32 to vector<8x128xf32>
    %82 = arith.addf %81, %80 : vector<8x128xf32>
    %83 = arith.divf %81, %82 : vector<8x128xf32>
    %84 = vector.extract_strided_slice %47 {offsets = [0, 128], sizes = [8, 128], strides = [1, 1]} : vector<8x512xf32> to vector<8x128xf32>
    %85 = arith.negf %84 : vector<8x128xf32>
    %86 = math.exp %85 : vector<8x128xf32>
    %cst_32 = arith.constant 1.000000e+00 : f32
    %87 = vector.broadcast %cst_32 : f32 to vector<8x128xf32>
    %88 = arith.addf %87, %86 : vector<8x128xf32>
    %89 = arith.divf %87, %88 : vector<8x128xf32>
    %90 = vector.extract_strided_slice %47 {offsets = [0, 256], sizes = [8, 128], strides = [1, 1]} : vector<8x512xf32> to vector<8x128xf32>
    %91 = math.tanh %90 : vector<8x128xf32>
    %92 = vector.extract_strided_slice %47 {offsets = [0, 384], sizes = [8, 128], strides = [1, 1]} : vector<8x512xf32> to vector<8x128xf32>
    %93 = arith.negf %92 : vector<8x128xf32>
    %94 = math.exp %93 : vector<8x128xf32>
    %cst_33 = arith.constant 1.000000e+00 : f32
    %95 = vector.broadcast %cst_33 : f32 to vector<8x128xf32>
    %96 = arith.addf %95, %94 : vector<8x128xf32>
    %97 = arith.divf %95, %96 : vector<8x128xf32>
    %98 = arith.mulf %89, %10 : vector<8x128xf32>
    %99 = arith.mulf %83, %91 : vector<8x128xf32>
    %100 = arith.addf %98, %99 : vector<8x128xf32>
    %101 = math.tanh %100 : vector<8x128xf32>
    %102 = arith.mulf %97, %101 : vector<8x128xf32>
    %103 = tpu.concatenate %77, %102 in 1 : vector<8x128xf32>, vector<8x128xf32> -> vector<8x256xf32>
    %104 = arith.truncf %103 : vector<8x256xf32> to vector<8x256xbf16>
    %c0_34 = arith.constant 0 : index
    %c0_35 = arith.constant 0 : index
    %105 = vector.load %arg4[%c0_34, %c0_35] : memref<256x512xbf16, #tpu.memory_space<vmem>>, vector<256x512xbf16>
    %cst_36 = arith.constant dense<0.000000e+00> : vector<8x512xf32>
    %106 = tpu.matmul %104, %105, %cst_36 {dimension_numbers = #tpu.dot_dimension_numbers<[1], [0], [0], [1], [0, 0, 1, 1], [], []>} : vector<8x256xbf16>, vector<256x512xbf16>, vector<8x512xf32> -> vector<8x512xf32>
    %c0_37 = arith.constant 0 : index
    %c0_38 = arith.constant 0 : index
    %107 = vector.load %arg5[%c0_37, %c0_38] : memref<1x512xf32, #tpu.memory_space<vmem>>, vector<1x512xf32>
    %108 = vector.broadcast %107 : vector<1x512xf32> to vector<8x512xf32>
    %109 = arith.addf %106, %108 : vector<8x512xf32>
    %c16 = arith.constant 16 : index
    %c0_39 = arith.constant 0 : index
    %110 = vector.load %arg9[%c16, %c0_39] : memref<64x512xf32, #tpu.memory_space<vmem>>, vector<8x512xf32>
    %111 = arith.truncf %77 : vector<8x128xf32> to vector<8x128xbf16>
    %c0_40 = arith.constant 0 : index
    %c0_41 = arith.constant 0 : index
    %112 = vector.load %arg2[%c0_40, %c0_41] : memref<128x512xbf16, #tpu.memory_space<vmem>>, vector<128x512xbf16>
    %cst_42 = arith.constant dense<0.000000e+00> : vector<8x512xf32>
    %113 = tpu.matmul %111, %112, %cst_42 {dimension_numbers = #tpu.dot_dimension_numbers<[1], [0], [0], [1], [0, 0, 1, 1], [], []>} : vector<8x128xbf16>, vector<128x512xbf16>, vector<8x512xf32> -> vector<8x512xf32>
    %114 = arith.addf %110, %113 : vector<8x512xf32>
    %115 = vector.extract_strided_slice %114 {offsets = [0, 0], sizes = [8, 128], strides = [1, 1]} : vector<8x512xf32> to vector<8x128xf32>
    %116 = arith.negf %115 : vector<8x128xf32>
    %117 = math.exp %116 : vector<8x128xf32>
    %cst_43 = arith.constant 1.000000e+00 : f32
    %118 = vector.broadcast %cst_43 : f32 to vector<8x128xf32>
    %119 = arith.addf %118, %117 : vector<8x128xf32>
    %120 = arith.divf %118, %119 : vector<8x128xf32>
    %121 = vector.extract_strided_slice %114 {offsets = [0, 128], sizes = [8, 128], strides = [1, 1]} : vector<8x512xf32> to vector<8x128xf32>
    %122 = arith.negf %121 : vector<8x128xf32>
    %123 = math.exp %122 : vector<8x128xf32>
    %cst_44 = arith.constant 1.000000e+00 : f32
    %124 = vector.broadcast %cst_44 : f32 to vector<8x128xf32>
    %125 = arith.addf %124, %123 : vector<8x128xf32>
    %126 = arith.divf %124, %125 : vector<8x128xf32>
    %127 = vector.extract_strided_slice %114 {offsets = [0, 256], sizes = [8, 128], strides = [1, 1]} : vector<8x512xf32> to vector<8x128xf32>
    %128 = math.tanh %127 : vector<8x128xf32>
    %129 = vector.extract_strided_slice %114 {offsets = [0, 384], sizes = [8, 128], strides = [1, 1]} : vector<8x512xf32> to vector<8x128xf32>
    %130 = arith.negf %129 : vector<8x128xf32>
    %131 = math.exp %130 : vector<8x128xf32>
    %cst_45 = arith.constant 1.000000e+00 : f32
    %132 = vector.broadcast %cst_45 : f32 to vector<8x128xf32>
    %133 = arith.addf %132, %131 : vector<8x128xf32>
    %134 = arith.divf %132, %133 : vector<8x128xf32>
    %135 = arith.mulf %126, %75 : vector<8x128xf32>
    %136 = arith.mulf %120, %128 : vector<8x128xf32>
    %137 = arith.addf %135, %136 : vector<8x128xf32>
    %138 = math.tanh %137 : vector<8x128xf32>
    %139 = arith.mulf %134, %138 : vector<8x128xf32>
    %140 = vector.extract_strided_slice %109 {offsets = [0, 0], sizes = [8, 128], strides = [1, 1]} : vector<8x512xf32> to vector<8x128xf32>
    %141 = arith.negf %140 : vector<8x128xf32>
    %142 = math.exp %141 : vector<8x128xf32>
    %cst_46 = arith.constant 1.000000e+00 : f32
    %143 = vector.broadcast %cst_46 : f32 to vector<8x128xf32>
    %144 = arith.addf %143, %142 : vector<8x128xf32>
    %145 = arith.divf %143, %144 : vector<8x128xf32>
    %146 = vector.extract_strided_slice %109 {offsets = [0, 128], sizes = [8, 128], strides = [1, 1]} : vector<8x512xf32> to vector<8x128xf32>
    %147 = arith.negf %146 : vector<8x128xf32>
    %148 = math.exp %147 : vector<8x128xf32>
    %cst_47 = arith.constant 1.000000e+00 : f32
    %149 = vector.broadcast %cst_47 : f32 to vector<8x128xf32>
    %150 = arith.addf %149, %148 : vector<8x128xf32>
    %151 = arith.divf %149, %150 : vector<8x128xf32>
    %152 = vector.extract_strided_slice %109 {offsets = [0, 256], sizes = [8, 128], strides = [1, 1]} : vector<8x512xf32> to vector<8x128xf32>
    %153 = math.tanh %152 : vector<8x128xf32>
    %154 = vector.extract_strided_slice %109 {offsets = [0, 384], sizes = [8, 128], strides = [1, 1]} : vector<8x512xf32> to vector<8x128xf32>
    %155 = arith.negf %154 : vector<8x128xf32>
    %156 = math.exp %155 : vector<8x128xf32>
    %cst_48 = arith.constant 1.000000e+00 : f32
    %157 = vector.broadcast %cst_48 : f32 to vector<8x128xf32>
    %158 = arith.addf %157, %156 : vector<8x128xf32>
    %159 = arith.divf %157, %158 : vector<8x128xf32>
    %160 = arith.mulf %151, %100 : vector<8x128xf32>
    %161 = arith.mulf %145, %153 : vector<8x128xf32>
    %162 = arith.addf %160, %161 : vector<8x128xf32>
    %163 = math.tanh %162 : vector<8x128xf32>
    %164 = arith.mulf %159, %163 : vector<8x128xf32>
    %165 = tpu.concatenate %139, %164 in 1 : vector<8x128xf32>, vector<8x128xf32> -> vector<8x256xf32>
    %166 = arith.truncf %165 : vector<8x256xf32> to vector<8x256xbf16>
    %c0_49 = arith.constant 0 : index
    %c0_50 = arith.constant 0 : index
    %167 = vector.load %arg4[%c0_49, %c0_50] : memref<256x512xbf16, #tpu.memory_space<vmem>>, vector<256x512xbf16>
    %cst_51 = arith.constant dense<0.000000e+00> : vector<8x512xf32>
    %168 = tpu.matmul %166, %167, %cst_51 {dimension_numbers = #tpu.dot_dimension_numbers<[1], [0], [0], [1], [0, 0, 1, 1], [], []>} : vector<8x256xbf16>, vector<256x512xbf16>, vector<8x512xf32> -> vector<8x512xf32>
    %c0_52 = arith.constant 0 : index
    %c0_53 = arith.constant 0 : index
    %169 = vector.load %arg5[%c0_52, %c0_53] : memref<1x512xf32, #tpu.memory_space<vmem>>, vector<1x512xf32>
    %170 = vector.broadcast %169 : vector<1x512xf32> to vector<8x512xf32>
    %171 = arith.addf %168, %170 : vector<8x512xf32>
    %c24 = arith.constant 24 : index
    %c0_54 = arith.constant 0 : index
    %172 = vector.load %arg9[%c24, %c0_54] : memref<64x512xf32, #tpu.memory_space<vmem>>, vector<8x512xf32>
    %173 = arith.truncf %139 : vector<8x128xf32> to vector<8x128xbf16>
    %c0_55 = arith.constant 0 : index
    %c0_56 = arith.constant 0 : index
    %174 = vector.load %arg2[%c0_55, %c0_56] : memref<128x512xbf16, #tpu.memory_space<vmem>>, vector<128x512xbf16>
    %cst_57 = arith.constant dense<0.000000e+00> : vector<8x512xf32>
    %175 = tpu.matmul %173, %174, %cst_57 {dimension_numbers = #tpu.dot_dimension_numbers<[1], [0], [0], [1], [0, 0, 1, 1], [], []>} : vector<8x128xbf16>, vector<128x512xbf16>, vector<8x512xf32> -> vector<8x512xf32>
    %176 = arith.addf %172, %175 : vector<8x512xf32>
    %177 = vector.extract_strided_slice %176 {offsets = [0, 0], sizes = [8, 128], strides = [1, 1]} : vector<8x512xf32> to vector<8x128xf32>
    %178 = arith.negf %177 : vector<8x128xf32>
    %179 = math.exp %178 : vector<8x128xf32>
    %cst_58 = arith.constant 1.000000e+00 : f32
    %180 = vector.broadcast %cst_58 : f32 to vector<8x128xf32>
    %181 = arith.addf %180, %179 : vector<8x128xf32>
    %182 = arith.divf %180, %181 : vector<8x128xf32>
    %183 = vector.extract_strided_slice %176 {offsets = [0, 128], sizes = [8, 128], strides = [1, 1]} : vector<8x512xf32> to vector<8x128xf32>
    %184 = arith.negf %183 : vector<8x128xf32>
    %185 = math.exp %184 : vector<8x128xf32>
    %cst_59 = arith.constant 1.000000e+00 : f32
    %186 = vector.broadcast %cst_59 : f32 to vector<8x128xf32>
    %187 = arith.addf %186, %185 : vector<8x128xf32>
    %188 = arith.divf %186, %187 : vector<8x128xf32>
    %189 = vector.extract_strided_slice %176 {offsets = [0, 256], sizes = [8, 128], strides = [1, 1]} : vector<8x512xf32> to vector<8x128xf32>
    %190 = math.tanh %189 : vector<8x128xf32>
    %191 = vector.extract_strided_slice %176 {offsets = [0, 384], sizes = [8, 128], strides = [1, 1]} : vector<8x512xf32> to vector<8x128xf32>
    %192 = arith.negf %191 : vector<8x128xf32>
    %193 = math.exp %192 : vector<8x128xf32>
    %cst_60 = arith.constant 1.000000e+00 : f32
    %194 = vector.broadcast %cst_60 : f32 to vector<8x128xf32>
    %195 = arith.addf %194, %193 : vector<8x128xf32>
    %196 = arith.divf %194, %195 : vector<8x128xf32>
    %197 = arith.mulf %188, %137 : vector<8x128xf32>
    %198 = arith.mulf %182, %190 : vector<8x128xf32>
    %199 = arith.addf %197, %198 : vector<8x128xf32>
    %200 = math.tanh %199 : vector<8x128xf32>
    %201 = arith.mulf %196, %200 : vector<8x128xf32>
    %202 = vector.extract_strided_slice %171 {offsets = [0, 0], sizes = [8, 128], strides = [1, 1]} : vector<8x512xf32> to vector<8x128xf32>
    %203 = arith.negf %202 : vector<8x128xf32>
    %204 = math.exp %203 : vector<8x128xf32>
    %cst_61 = arith.constant 1.000000e+00 : f32
    %205 = vector.broadcast %cst_61 : f32 to vector<8x128xf32>
    %206 = arith.addf %205, %204 : vector<8x128xf32>
    %207 = arith.divf %205, %206 : vector<8x128xf32>
    %208 = vector.extract_strided_slice %171 {offsets = [0, 128], sizes = [8, 128], strides = [1, 1]} : vector<8x512xf32> to vector<8x128xf32>
    %209 = arith.negf %208 : vector<8x128xf32>
    %210 = math.exp %209 : vector<8x128xf32>
    %cst_62 = arith.constant 1.000000e+00 : f32
    %211 = vector.broadcast %cst_62 : f32 to vector<8x128xf32>
    %212 = arith.addf %211, %210 : vector<8x128xf32>
    %213 = arith.divf %211, %212 : vector<8x128xf32>
    %214 = vector.extract_strided_slice %171 {offsets = [0, 256], sizes = [8, 128], strides = [1, 1]} : vector<8x512xf32> to vector<8x128xf32>
    %215 = math.tanh %214 : vector<8x128xf32>
    %216 = vector.extract_strided_slice %171 {offsets = [0, 384], sizes = [8, 128], strides = [1, 1]} : vector<8x512xf32> to vector<8x128xf32>
    %217 = arith.negf %216 : vector<8x128xf32>
    %218 = math.exp %217 : vector<8x128xf32>
    %cst_63 = arith.constant 1.000000e+00 : f32
    %219 = vector.broadcast %cst_63 : f32 to vector<8x128xf32>
    %220 = arith.addf %219, %218 : vector<8x128xf32>
    %221 = arith.divf %219, %220 : vector<8x128xf32>
    %222 = arith.mulf %213, %162 : vector<8x128xf32>
    %223 = arith.mulf %207, %215 : vector<8x128xf32>
    %224 = arith.addf %222, %223 : vector<8x128xf32>
    %225 = math.tanh %224 : vector<8x128xf32>
    %226 = arith.mulf %221, %225 : vector<8x128xf32>
    %227 = tpu.concatenate %201, %226 in 1 : vector<8x128xf32>, vector<8x128xf32> -> vector<8x256xf32>
    %228 = arith.truncf %227 : vector<8x256xf32> to vector<8x256xbf16>
    %c0_64 = arith.constant 0 : index
    %c0_65 = arith.constant 0 : index
    %229 = vector.load %arg4[%c0_64, %c0_65] : memref<256x512xbf16, #tpu.memory_space<vmem>>, vector<256x512xbf16>
    %cst_66 = arith.constant dense<0.000000e+00> : vector<8x512xf32>
    %230 = tpu.matmul %228, %229, %cst_66 {dimension_numbers = #tpu.dot_dimension_numbers<[1], [0], [0], [1], [0, 0, 1, 1], [], []>} : vector<8x256xbf16>, vector<256x512xbf16>, vector<8x512xf32> -> vector<8x512xf32>
    %c0_67 = arith.constant 0 : index
    %c0_68 = arith.constant 0 : index
    %231 = vector.load %arg5[%c0_67, %c0_68] : memref<1x512xf32, #tpu.memory_space<vmem>>, vector<1x512xf32>
    %232 = vector.broadcast %231 : vector<1x512xf32> to vector<8x512xf32>
    %233 = arith.addf %230, %232 : vector<8x512xf32>
    %c32 = arith.constant 32 : index
    %c0_69 = arith.constant 0 : index
    %234 = vector.load %arg9[%c32, %c0_69] : memref<64x512xf32, #tpu.memory_space<vmem>>, vector<8x512xf32>
    %235 = arith.truncf %201 : vector<8x128xf32> to vector<8x128xbf16>
    %c0_70 = arith.constant 0 : index
    %c0_71 = arith.constant 0 : index
    %236 = vector.load %arg2[%c0_70, %c0_71] : memref<128x512xbf16, #tpu.memory_space<vmem>>, vector<128x512xbf16>
    %cst_72 = arith.constant dense<0.000000e+00> : vector<8x512xf32>
    %237 = tpu.matmul %235, %236, %cst_72 {dimension_numbers = #tpu.dot_dimension_numbers<[1], [0], [0], [1], [0, 0, 1, 1], [], []>} : vector<8x128xbf16>, vector<128x512xbf16>, vector<8x512xf32> -> vector<8x512xf32>
    %238 = arith.addf %234, %237 : vector<8x512xf32>
    %239 = vector.extract_strided_slice %238 {offsets = [0, 0], sizes = [8, 128], strides = [1, 1]} : vector<8x512xf32> to vector<8x128xf32>
    %240 = arith.negf %239 : vector<8x128xf32>
    %241 = math.exp %240 : vector<8x128xf32>
    %cst_73 = arith.constant 1.000000e+00 : f32
    %242 = vector.broadcast %cst_73 : f32 to vector<8x128xf32>
    %243 = arith.addf %242, %241 : vector<8x128xf32>
    %244 = arith.divf %242, %243 : vector<8x128xf32>
    %245 = vector.extract_strided_slice %238 {offsets = [0, 128], sizes = [8, 128], strides = [1, 1]} : vector<8x512xf32> to vector<8x128xf32>
    %246 = arith.negf %245 : vector<8x128xf32>
    %247 = math.exp %246 : vector<8x128xf32>
    %cst_74 = arith.constant 1.000000e+00 : f32
    %248 = vector.broadcast %cst_74 : f32 to vector<8x128xf32>
    %249 = arith.addf %248, %247 : vector<8x128xf32>
    %250 = arith.divf %248, %249 : vector<8x128xf32>
    %251 = vector.extract_strided_slice %238 {offsets = [0, 256], sizes = [8, 128], strides = [1, 1]} : vector<8x512xf32> to vector<8x128xf32>
    %252 = math.tanh %251 : vector<8x128xf32>
    %253 = vector.extract_strided_slice %238 {offsets = [0, 384], sizes = [8, 128], strides = [1, 1]} : vector<8x512xf32> to vector<8x128xf32>
    %254 = arith.negf %253 : vector<8x128xf32>
    %255 = math.exp %254 : vector<8x128xf32>
    %cst_75 = arith.constant 1.000000e+00 : f32
    %256 = vector.broadcast %cst_75 : f32 to vector<8x128xf32>
    %257 = arith.addf %256, %255 : vector<8x128xf32>
    %258 = arith.divf %256, %257 : vector<8x128xf32>
    %259 = arith.mulf %250, %199 : vector<8x128xf32>
    %260 = arith.mulf %244, %252 : vector<8x128xf32>
    %261 = arith.addf %259, %260 : vector<8x128xf32>
    %262 = math.tanh %261 : vector<8x128xf32>
    %263 = arith.mulf %258, %262 : vector<8x128xf32>
    %264 = vector.extract_strided_slice %233 {offsets = [0, 0], sizes = [8, 128], strides = [1, 1]} : vector<8x512xf32> to vector<8x128xf32>
    %265 = arith.negf %264 : vector<8x128xf32>
    %266 = math.exp %265 : vector<8x128xf32>
    %cst_76 = arith.constant 1.000000e+00 : f32
    %267 = vector.broadcast %cst_76 : f32 to vector<8x128xf32>
    %268 = arith.addf %267, %266 : vector<8x128xf32>
    %269 = arith.divf %267, %268 : vector<8x128xf32>
    %270 = vector.extract_strided_slice %233 {offsets = [0, 128], sizes = [8, 128], strides = [1, 1]} : vector<8x512xf32> to vector<8x128xf32>
    %271 = arith.negf %270 : vector<8x128xf32>
    %272 = math.exp %271 : vector<8x128xf32>
    %cst_77 = arith.constant 1.000000e+00 : f32
    %273 = vector.broadcast %cst_77 : f32 to vector<8x128xf32>
    %274 = arith.addf %273, %272 : vector<8x128xf32>
    %275 = arith.divf %273, %274 : vector<8x128xf32>
    %276 = vector.extract_strided_slice %233 {offsets = [0, 256], sizes = [8, 128], strides = [1, 1]} : vector<8x512xf32> to vector<8x128xf32>
    %277 = math.tanh %276 : vector<8x128xf32>
    %278 = vector.extract_strided_slice %233 {offsets = [0, 384], sizes = [8, 128], strides = [1, 1]} : vector<8x512xf32> to vector<8x128xf32>
    %279 = arith.negf %278 : vector<8x128xf32>
    %280 = math.exp %279 : vector<8x128xf32>
    %cst_78 = arith.constant 1.000000e+00 : f32
    %281 = vector.broadcast %cst_78 : f32 to vector<8x128xf32>
    %282 = arith.addf %281, %280 : vector<8x128xf32>
    %283 = arith.divf %281, %282 : vector<8x128xf32>
    %284 = arith.mulf %275, %224 : vector<8x128xf32>
    %285 = arith.mulf %269, %277 : vector<8x128xf32>
    %286 = arith.addf %284, %285 : vector<8x128xf32>
    %287 = math.tanh %286 : vector<8x128xf32>
    %288 = arith.mulf %283, %287 : vector<8x128xf32>
    %289 = tpu.concatenate %263, %288 in 1 : vector<8x128xf32>, vector<8x128xf32> -> vector<8x256xf32>
    %290 = arith.truncf %289 : vector<8x256xf32> to vector<8x256xbf16>
    %c0_79 = arith.constant 0 : index
    %c0_80 = arith.constant 0 : index
    %291 = vector.load %arg4[%c0_79, %c0_80] : memref<256x512xbf16, #tpu.memory_space<vmem>>, vector<256x512xbf16>
    %cst_81 = arith.constant dense<0.000000e+00> : vector<8x512xf32>
    %292 = tpu.matmul %290, %291, %cst_81 {dimension_numbers = #tpu.dot_dimension_numbers<[1], [0], [0], [1], [0, 0, 1, 1], [], []>} : vector<8x256xbf16>, vector<256x512xbf16>, vector<8x512xf32> -> vector<8x512xf32>
    %c0_82 = arith.constant 0 : index
    %c0_83 = arith.constant 0 : index
    %293 = vector.load %arg5[%c0_82, %c0_83] : memref<1x512xf32, #tpu.memory_space<vmem>>, vector<1x512xf32>
    %294 = vector.broadcast %293 : vector<1x512xf32> to vector<8x512xf32>
    %295 = arith.addf %292, %294 : vector<8x512xf32>
    %c40 = arith.constant 40 : index
    %c0_84 = arith.constant 0 : index
    %296 = vector.load %arg9[%c40, %c0_84] : memref<64x512xf32, #tpu.memory_space<vmem>>, vector<8x512xf32>
    %297 = arith.truncf %263 : vector<8x128xf32> to vector<8x128xbf16>
    %c0_85 = arith.constant 0 : index
    %c0_86 = arith.constant 0 : index
    %298 = vector.load %arg2[%c0_85, %c0_86] : memref<128x512xbf16, #tpu.memory_space<vmem>>, vector<128x512xbf16>
    %cst_87 = arith.constant dense<0.000000e+00> : vector<8x512xf32>
    %299 = tpu.matmul %297, %298, %cst_87 {dimension_numbers = #tpu.dot_dimension_numbers<[1], [0], [0], [1], [0, 0, 1, 1], [], []>} : vector<8x128xbf16>, vector<128x512xbf16>, vector<8x512xf32> -> vector<8x512xf32>
    %300 = arith.addf %296, %299 : vector<8x512xf32>
    %301 = vector.extract_strided_slice %300 {offsets = [0, 0], sizes = [8, 128], strides = [1, 1]} : vector<8x512xf32> to vector<8x128xf32>
    %302 = arith.negf %301 : vector<8x128xf32>
    %303 = math.exp %302 : vector<8x128xf32>
    %cst_88 = arith.constant 1.000000e+00 : f32
    %304 = vector.broadcast %cst_88 : f32 to vector<8x128xf32>
    %305 = arith.addf %304, %303 : vector<8x128xf32>
    %306 = arith.divf %304, %305 : vector<8x128xf32>
    %307 = vector.extract_strided_slice %300 {offsets = [0, 128], sizes = [8, 128], strides = [1, 1]} : vector<8x512xf32> to vector<8x128xf32>
    %308 = arith.negf %307 : vector<8x128xf32>
    %309 = math.exp %308 : vector<8x128xf32>
    %cst_89 = arith.constant 1.000000e+00 : f32
    %310 = vector.broadcast %cst_89 : f32 to vector<8x128xf32>
    %311 = arith.addf %310, %309 : vector<8x128xf32>
    %312 = arith.divf %310, %311 : vector<8x128xf32>
    %313 = vector.extract_strided_slice %300 {offsets = [0, 256], sizes = [8, 128], strides = [1, 1]} : vector<8x512xf32> to vector<8x128xf32>
    %314 = math.tanh %313 : vector<8x128xf32>
    %315 = vector.extract_strided_slice %300 {offsets = [0, 384], sizes = [8, 128], strides = [1, 1]} : vector<8x512xf32> to vector<8x128xf32>
    %316 = arith.negf %315 : vector<8x128xf32>
    %317 = math.exp %316 : vector<8x128xf32>
    %cst_90 = arith.constant 1.000000e+00 : f32
    %318 = vector.broadcast %cst_90 : f32 to vector<8x128xf32>
    %319 = arith.addf %318, %317 : vector<8x128xf32>
    %320 = arith.divf %318, %319 : vector<8x128xf32>
    %321 = arith.mulf %312, %261 : vector<8x128xf32>
    %322 = arith.mulf %306, %314 : vector<8x128xf32>
    %323 = arith.addf %321, %322 : vector<8x128xf32>
    %324 = math.tanh %323 : vector<8x128xf32>
    %325 = arith.mulf %320, %324 : vector<8x128xf32>
    %326 = vector.extract_strided_slice %295 {offsets = [0, 0], sizes = [8, 128], strides = [1, 1]} : vector<8x512xf32> to vector<8x128xf32>
    %327 = arith.negf %326 : vector<8x128xf32>
    %328 = math.exp %327 : vector<8x128xf32>
    %cst_91 = arith.constant 1.000000e+00 : f32
    %329 = vector.broadcast %cst_91 : f32 to vector<8x128xf32>
    %330 = arith.addf %329, %328 : vector<8x128xf32>
    %331 = arith.divf %329, %330 : vector<8x128xf32>
    %332 = vector.extract_strided_slice %295 {offsets = [0, 128], sizes = [8, 128], strides = [1, 1]} : vector<8x512xf32> to vector<8x128xf32>
    %333 = arith.negf %332 : vector<8x128xf32>
    %334 = math.exp %333 : vector<8x128xf32>
    %cst_92 = arith.constant 1.000000e+00 : f32
    %335 = vector.broadcast %cst_92 : f32 to vector<8x128xf32>
    %336 = arith.addf %335, %334 : vector<8x128xf32>
    %337 = arith.divf %335, %336 : vector<8x128xf32>
    %338 = vector.extract_strided_slice %295 {offsets = [0, 256], sizes = [8, 128], strides = [1, 1]} : vector<8x512xf32> to vector<8x128xf32>
    %339 = math.tanh %338 : vector<8x128xf32>
    %340 = vector.extract_strided_slice %295 {offsets = [0, 384], sizes = [8, 128], strides = [1, 1]} : vector<8x512xf32> to vector<8x128xf32>
    %341 = arith.negf %340 : vector<8x128xf32>
    %342 = math.exp %341 : vector<8x128xf32>
    %cst_93 = arith.constant 1.000000e+00 : f32
    %343 = vector.broadcast %cst_93 : f32 to vector<8x128xf32>
    %344 = arith.addf %343, %342 : vector<8x128xf32>
    %345 = arith.divf %343, %344 : vector<8x128xf32>
    %346 = arith.mulf %337, %286 : vector<8x128xf32>
    %347 = arith.mulf %331, %339 : vector<8x128xf32>
    %348 = arith.addf %346, %347 : vector<8x128xf32>
    %349 = math.tanh %348 : vector<8x128xf32>
    %350 = arith.mulf %345, %349 : vector<8x128xf32>
    %351 = tpu.concatenate %325, %350 in 1 : vector<8x128xf32>, vector<8x128xf32> -> vector<8x256xf32>
    %352 = arith.truncf %351 : vector<8x256xf32> to vector<8x256xbf16>
    %c0_94 = arith.constant 0 : index
    %c0_95 = arith.constant 0 : index
    %353 = vector.load %arg4[%c0_94, %c0_95] : memref<256x512xbf16, #tpu.memory_space<vmem>>, vector<256x512xbf16>
    %cst_96 = arith.constant dense<0.000000e+00> : vector<8x512xf32>
    %354 = tpu.matmul %352, %353, %cst_96 {dimension_numbers = #tpu.dot_dimension_numbers<[1], [0], [0], [1], [0, 0, 1, 1], [], []>} : vector<8x256xbf16>, vector<256x512xbf16>, vector<8x512xf32> -> vector<8x512xf32>
    %c0_97 = arith.constant 0 : index
    %c0_98 = arith.constant 0 : index
    %355 = vector.load %arg5[%c0_97, %c0_98] : memref<1x512xf32, #tpu.memory_space<vmem>>, vector<1x512xf32>
    %356 = vector.broadcast %355 : vector<1x512xf32> to vector<8x512xf32>
    %357 = arith.addf %354, %356 : vector<8x512xf32>
    %c48 = arith.constant 48 : index
    %c0_99 = arith.constant 0 : index
    %358 = vector.load %arg9[%c48, %c0_99] : memref<64x512xf32, #tpu.memory_space<vmem>>, vector<8x512xf32>
    %359 = arith.truncf %325 : vector<8x128xf32> to vector<8x128xbf16>
    %c0_100 = arith.constant 0 : index
    %c0_101 = arith.constant 0 : index
    %360 = vector.load %arg2[%c0_100, %c0_101] : memref<128x512xbf16, #tpu.memory_space<vmem>>, vector<128x512xbf16>
    %cst_102 = arith.constant dense<0.000000e+00> : vector<8x512xf32>
    %361 = tpu.matmul %359, %360, %cst_102 {dimension_numbers = #tpu.dot_dimension_numbers<[1], [0], [0], [1], [0, 0, 1, 1], [], []>} : vector<8x128xbf16>, vector<128x512xbf16>, vector<8x512xf32> -> vector<8x512xf32>
    %362 = arith.addf %358, %361 : vector<8x512xf32>
    %363 = vector.extract_strided_slice %362 {offsets = [0, 0], sizes = [8, 128], strides = [1, 1]} : vector<8x512xf32> to vector<8x128xf32>
    %364 = arith.negf %363 : vector<8x128xf32>
    %365 = math.exp %364 : vector<8x128xf32>
    %cst_103 = arith.constant 1.000000e+00 : f32
    %366 = vector.broadcast %cst_103 : f32 to vector<8x128xf32>
    %367 = arith.addf %366, %365 : vector<8x128xf32>
    %368 = arith.divf %366, %367 : vector<8x128xf32>
    %369 = vector.extract_strided_slice %362 {offsets = [0, 128], sizes = [8, 128], strides = [1, 1]} : vector<8x512xf32> to vector<8x128xf32>
    %370 = arith.negf %369 : vector<8x128xf32>
    %371 = math.exp %370 : vector<8x128xf32>
    %cst_104 = arith.constant 1.000000e+00 : f32
    %372 = vector.broadcast %cst_104 : f32 to vector<8x128xf32>
    %373 = arith.addf %372, %371 : vector<8x128xf32>
    %374 = arith.divf %372, %373 : vector<8x128xf32>
    %375 = vector.extract_strided_slice %362 {offsets = [0, 256], sizes = [8, 128], strides = [1, 1]} : vector<8x512xf32> to vector<8x128xf32>
    %376 = math.tanh %375 : vector<8x128xf32>
    %377 = vector.extract_strided_slice %362 {offsets = [0, 384], sizes = [8, 128], strides = [1, 1]} : vector<8x512xf32> to vector<8x128xf32>
    %378 = arith.negf %377 : vector<8x128xf32>
    %379 = math.exp %378 : vector<8x128xf32>
    %cst_105 = arith.constant 1.000000e+00 : f32
    %380 = vector.broadcast %cst_105 : f32 to vector<8x128xf32>
    %381 = arith.addf %380, %379 : vector<8x128xf32>
    %382 = arith.divf %380, %381 : vector<8x128xf32>
    %383 = arith.mulf %374, %323 : vector<8x128xf32>
    %384 = arith.mulf %368, %376 : vector<8x128xf32>
    %385 = arith.addf %383, %384 : vector<8x128xf32>
    %386 = math.tanh %385 : vector<8x128xf32>
    %387 = arith.mulf %382, %386 : vector<8x128xf32>
    %388 = vector.extract_strided_slice %357 {offsets = [0, 0], sizes = [8, 128], strides = [1, 1]} : vector<8x512xf32> to vector<8x128xf32>
    %389 = arith.negf %388 : vector<8x128xf32>
    %390 = math.exp %389 : vector<8x128xf32>
    %cst_106 = arith.constant 1.000000e+00 : f32
    %391 = vector.broadcast %cst_106 : f32 to vector<8x128xf32>
    %392 = arith.addf %391, %390 : vector<8x128xf32>
    %393 = arith.divf %391, %392 : vector<8x128xf32>
    %394 = vector.extract_strided_slice %357 {offsets = [0, 128], sizes = [8, 128], strides = [1, 1]} : vector<8x512xf32> to vector<8x128xf32>
    %395 = arith.negf %394 : vector<8x128xf32>
    %396 = math.exp %395 : vector<8x128xf32>
    %cst_107 = arith.constant 1.000000e+00 : f32
    %397 = vector.broadcast %cst_107 : f32 to vector<8x128xf32>
    %398 = arith.addf %397, %396 : vector<8x128xf32>
    %399 = arith.divf %397, %398 : vector<8x128xf32>
    %400 = vector.extract_strided_slice %357 {offsets = [0, 256], sizes = [8, 128], strides = [1, 1]} : vector<8x512xf32> to vector<8x128xf32>
    %401 = math.tanh %400 : vector<8x128xf32>
    %402 = vector.extract_strided_slice %357 {offsets = [0, 384], sizes = [8, 128], strides = [1, 1]} : vector<8x512xf32> to vector<8x128xf32>
    %403 = arith.negf %402 : vector<8x128xf32>
    %404 = math.exp %403 : vector<8x128xf32>
    %cst_108 = arith.constant 1.000000e+00 : f32
    %405 = vector.broadcast %cst_108 : f32 to vector<8x128xf32>
    %406 = arith.addf %405, %404 : vector<8x128xf32>
    %407 = arith.divf %405, %406 : vector<8x128xf32>
    %408 = arith.mulf %399, %348 : vector<8x128xf32>
    %409 = arith.mulf %393, %401 : vector<8x128xf32>
    %410 = arith.addf %408, %409 : vector<8x128xf32>
    %411 = math.tanh %410 : vector<8x128xf32>
    %412 = arith.mulf %407, %411 : vector<8x128xf32>
    %413 = tpu.concatenate %387, %412 in 1 : vector<8x128xf32>, vector<8x128xf32> -> vector<8x256xf32>
    %414 = arith.truncf %413 : vector<8x256xf32> to vector<8x256xbf16>
    %c0_109 = arith.constant 0 : index
    %c0_110 = arith.constant 0 : index
    %415 = vector.load %arg4[%c0_109, %c0_110] : memref<256x512xbf16, #tpu.memory_space<vmem>>, vector<256x512xbf16>
    %cst_111 = arith.constant dense<0.000000e+00> : vector<8x512xf32>
    %416 = tpu.matmul %414, %415, %cst_111 {dimension_numbers = #tpu.dot_dimension_numbers<[1], [0], [0], [1], [0, 0, 1, 1], [], []>} : vector<8x256xbf16>, vector<256x512xbf16>, vector<8x512xf32> -> vector<8x512xf32>
    %c0_112 = arith.constant 0 : index
    %c0_113 = arith.constant 0 : index
    %417 = vector.load %arg5[%c0_112, %c0_113] : memref<1x512xf32, #tpu.memory_space<vmem>>, vector<1x512xf32>
    %418 = vector.broadcast %417 : vector<1x512xf32> to vector<8x512xf32>
    %419 = arith.addf %416, %418 : vector<8x512xf32>
    %c56 = arith.constant 56 : index
    %c0_114 = arith.constant 0 : index
    %420 = vector.load %arg9[%c56, %c0_114] : memref<64x512xf32, #tpu.memory_space<vmem>>, vector<8x512xf32>
    %421 = arith.truncf %387 : vector<8x128xf32> to vector<8x128xbf16>
    %c0_115 = arith.constant 0 : index
    %c0_116 = arith.constant 0 : index
    %422 = vector.load %arg2[%c0_115, %c0_116] : memref<128x512xbf16, #tpu.memory_space<vmem>>, vector<128x512xbf16>
    %cst_117 = arith.constant dense<0.000000e+00> : vector<8x512xf32>
    %423 = tpu.matmul %421, %422, %cst_117 {dimension_numbers = #tpu.dot_dimension_numbers<[1], [0], [0], [1], [0, 0, 1, 1], [], []>} : vector<8x128xbf16>, vector<128x512xbf16>, vector<8x512xf32> -> vector<8x512xf32>
    %424 = arith.addf %420, %423 : vector<8x512xf32>
    %425 = vector.extract_strided_slice %424 {offsets = [0, 0], sizes = [8, 128], strides = [1, 1]} : vector<8x512xf32> to vector<8x128xf32>
    %426 = arith.negf %425 : vector<8x128xf32>
    %427 = math.exp %426 : vector<8x128xf32>
    %cst_118 = arith.constant 1.000000e+00 : f32
    %428 = vector.broadcast %cst_118 : f32 to vector<8x128xf32>
    %429 = arith.addf %428, %427 : vector<8x128xf32>
    %430 = arith.divf %428, %429 : vector<8x128xf32>
    %431 = vector.extract_strided_slice %424 {offsets = [0, 128], sizes = [8, 128], strides = [1, 1]} : vector<8x512xf32> to vector<8x128xf32>
    %432 = arith.negf %431 : vector<8x128xf32>
    %433 = math.exp %432 : vector<8x128xf32>
    %cst_119 = arith.constant 1.000000e+00 : f32
    %434 = vector.broadcast %cst_119 : f32 to vector<8x128xf32>
    %435 = arith.addf %434, %433 : vector<8x128xf32>
    %436 = arith.divf %434, %435 : vector<8x128xf32>
    %437 = vector.extract_strided_slice %424 {offsets = [0, 256], sizes = [8, 128], strides = [1, 1]} : vector<8x512xf32> to vector<8x128xf32>
    %438 = math.tanh %437 : vector<8x128xf32>
    %439 = vector.extract_strided_slice %424 {offsets = [0, 384], sizes = [8, 128], strides = [1, 1]} : vector<8x512xf32> to vector<8x128xf32>
    %440 = arith.negf %439 : vector<8x128xf32>
    %441 = math.exp %440 : vector<8x128xf32>
    %cst_120 = arith.constant 1.000000e+00 : f32
    %442 = vector.broadcast %cst_120 : f32 to vector<8x128xf32>
    %443 = arith.addf %442, %441 : vector<8x128xf32>
    %444 = arith.divf %442, %443 : vector<8x128xf32>
    %445 = arith.mulf %436, %385 : vector<8x128xf32>
    %446 = arith.mulf %430, %438 : vector<8x128xf32>
    %447 = arith.addf %445, %446 : vector<8x128xf32>
    %448 = math.tanh %447 : vector<8x128xf32>
    %449 = arith.mulf %444, %448 : vector<8x128xf32>
    %450 = vector.extract_strided_slice %419 {offsets = [0, 0], sizes = [8, 128], strides = [1, 1]} : vector<8x512xf32> to vector<8x128xf32>
    %451 = arith.negf %450 : vector<8x128xf32>
    %452 = math.exp %451 : vector<8x128xf32>
    %cst_121 = arith.constant 1.000000e+00 : f32
    %453 = vector.broadcast %cst_121 : f32 to vector<8x128xf32>
    %454 = arith.addf %453, %452 : vector<8x128xf32>
    %455 = arith.divf %453, %454 : vector<8x128xf32>
    %456 = vector.extract_strided_slice %419 {offsets = [0, 128], sizes = [8, 128], strides = [1, 1]} : vector<8x512xf32> to vector<8x128xf32>
    %457 = arith.negf %456 : vector<8x128xf32>
    %458 = math.exp %457 : vector<8x128xf32>
    %cst_122 = arith.constant 1.000000e+00 : f32
    %459 = vector.broadcast %cst_122 : f32 to vector<8x128xf32>
    %460 = arith.addf %459, %458 : vector<8x128xf32>
    %461 = arith.divf %459, %460 : vector<8x128xf32>
    %462 = vector.extract_strided_slice %419 {offsets = [0, 256], sizes = [8, 128], strides = [1, 1]} : vector<8x512xf32> to vector<8x128xf32>
    %463 = math.tanh %462 : vector<8x128xf32>
    %464 = vector.extract_strided_slice %419 {offsets = [0, 384], sizes = [8, 128], strides = [1, 1]} : vector<8x512xf32> to vector<8x128xf32>
    %465 = arith.negf %464 : vector<8x128xf32>
    %466 = math.exp %465 : vector<8x128xf32>
    %cst_123 = arith.constant 1.000000e+00 : f32
    %467 = vector.broadcast %cst_123 : f32 to vector<8x128xf32>
    %468 = arith.addf %467, %466 : vector<8x128xf32>
    %469 = arith.divf %467, %468 : vector<8x128xf32>
    %470 = arith.mulf %461, %410 : vector<8x128xf32>
    %471 = arith.mulf %455, %463 : vector<8x128xf32>
    %472 = arith.addf %470, %471 : vector<8x128xf32>
    %473 = math.tanh %472 : vector<8x128xf32>
    %474 = arith.mulf %469, %473 : vector<8x128xf32>
    %475 = tpu.concatenate %449, %474 in 1 : vector<8x128xf32>, vector<8x128xf32> -> vector<8x256xf32>
    %476 = arith.truncf %475 : vector<8x256xf32> to vector<8x256xbf16>
    %c0_124 = arith.constant 0 : index
    %c0_125 = arith.constant 0 : index
    %477 = vector.load %arg4[%c0_124, %c0_125] : memref<256x512xbf16, #tpu.memory_space<vmem>>, vector<256x512xbf16>
    %cst_126 = arith.constant dense<0.000000e+00> : vector<8x512xf32>
    %478 = tpu.matmul %476, %477, %cst_126 {dimension_numbers = #tpu.dot_dimension_numbers<[1], [0], [0], [1], [0, 0, 1, 1], [], []>} : vector<8x256xbf16>, vector<256x512xbf16>, vector<8x512xf32> -> vector<8x512xf32>
    %c0_127 = arith.constant 0 : index
    %c0_128 = arith.constant 0 : index
    %479 = vector.load %arg5[%c0_127, %c0_128] : memref<1x512xf32, #tpu.memory_space<vmem>>, vector<1x512xf32>
    %480 = vector.broadcast %479 : vector<1x512xf32> to vector<8x512xf32>
    %481 = arith.addf %478, %480 : vector<8x512xf32>
    %482 = vector.extract_strided_slice %481 {offsets = [0, 0], sizes = [8, 128], strides = [1, 1]} : vector<8x512xf32> to vector<8x128xf32>
    %483 = arith.negf %482 : vector<8x128xf32>
    %484 = math.exp %483 : vector<8x128xf32>
    %cst_129 = arith.constant 1.000000e+00 : f32
    %485 = vector.broadcast %cst_129 : f32 to vector<8x128xf32>
    %486 = arith.addf %485, %484 : vector<8x128xf32>
    %487 = arith.divf %485, %486 : vector<8x128xf32>
    %488 = vector.extract_strided_slice %481 {offsets = [0, 128], sizes = [8, 128], strides = [1, 1]} : vector<8x512xf32> to vector<8x128xf32>
    %489 = arith.negf %488 : vector<8x128xf32>
    %490 = math.exp %489 : vector<8x128xf32>
    %cst_130 = arith.constant 1.000000e+00 : f32
    %491 = vector.broadcast %cst_130 : f32 to vector<8x128xf32>
    %492 = arith.addf %491, %490 : vector<8x128xf32>
    %493 = arith.divf %491, %492 : vector<8x128xf32>
    %494 = vector.extract_strided_slice %481 {offsets = [0, 256], sizes = [8, 128], strides = [1, 1]} : vector<8x512xf32> to vector<8x128xf32>
    %495 = math.tanh %494 : vector<8x128xf32>
    %496 = vector.extract_strided_slice %481 {offsets = [0, 384], sizes = [8, 128], strides = [1, 1]} : vector<8x512xf32> to vector<8x128xf32>
    %497 = arith.negf %496 : vector<8x128xf32>
    %498 = math.exp %497 : vector<8x128xf32>
    %cst_131 = arith.constant 1.000000e+00 : f32
    %499 = vector.broadcast %cst_131 : f32 to vector<8x128xf32>
    %500 = arith.addf %499, %498 : vector<8x128xf32>
    %501 = arith.divf %499, %500 : vector<8x128xf32>
    %502 = arith.mulf %493, %472 : vector<8x128xf32>
    %503 = arith.mulf %487, %495 : vector<8x128xf32>
    %504 = arith.addf %502, %503 : vector<8x128xf32>
    %505 = math.tanh %504 : vector<8x128xf32>
    %506 = arith.mulf %501, %505 : vector<8x128xf32>
    %507 = vector.extract_strided_slice %506 {offsets = [0, 0], sizes = [2, 128], strides = [1, 1]} : vector<8x128xf32> to vector<2x128xf32>
    %c0_132 = arith.constant 0 : index
    %c0_133 = arith.constant 0 : index
    %508 = vector.load %arg6[%c0_132, %c0_133] : memref<1x256xf32, #tpu.memory_space<vmem>>, vector<1x128xf32>
    %509 = vector.broadcast %508 : vector<1x128xf32> to vector<2x128xf32>
    %510 = arith.mulf %507, %509 : vector<2x128xf32>
    %cst_134 = arith.constant dense<0.000000e+00> : vector<2xf32>
    %511 = vector.multi_reduction <add>, %510, %cst_134 [1] : vector<2x128xf32> to vector<2xf32>
    %512 = vector.shape_cast %511 : vector<2xf32> to vector<2x1xf32>
    %513 = vector.extract_strided_slice %506 {offsets = [2, 0], sizes = [2, 128], strides = [1, 1]} : vector<8x128xf32> to vector<2x128xf32>
    %c0_135 = arith.constant 0 : index
    %c128 = arith.constant 128 : index
    %514 = vector.load %arg6[%c0_135, %c128] : memref<1x256xf32, #tpu.memory_space<vmem>>, vector<1x128xf32>
    %515 = vector.broadcast %514 : vector<1x128xf32> to vector<2x128xf32>
    %516 = arith.mulf %513, %515 : vector<2x128xf32>
    %cst_136 = arith.constant dense<0.000000e+00> : vector<2xf32>
    %517 = vector.multi_reduction <add>, %516, %cst_136 [1] : vector<2x128xf32> to vector<2xf32>
    %518 = vector.shape_cast %517 : vector<2xf32> to vector<2x1xf32>
    %519 = arith.addf %512, %518 : vector<2x1xf32>
    %c0_137 = arith.constant 0 : index
    %c0_138 = arith.constant 0 : index
    %520 = vector.load %arg7[%c0_137, %c0_138] : memref<1x1xf32, #tpu.memory_space<vmem>>, vector<1x1xf32>
    %521 = vector.broadcast %520 : vector<1x1xf32> to vector<2x1xf32>
    %522 = arith.addf %519, %521 : vector<2x1xf32>
    %523 = arith.negf %522 : vector<2x1xf32>
    %524 = math.exp %523 : vector<2x1xf32>
    %cst_139 = arith.constant 1.000000e+00 : f32
    %525 = vector.broadcast %cst_139 : f32 to vector<2x1xf32>
    %526 = arith.addf %525, %524 : vector<2x1xf32>
    %527 = arith.divf %525, %526 : vector<2x1xf32>
    %cst_140 = arith.constant 0.000000e+00 : f32
    %528 = vector.broadcast %cst_140 : f32 to vector<6x1xf32>
    %529 = tpu.concatenate %527, %528 in 0 : vector<2x1xf32>, vector<6x1xf32> -> vector<8x1xf32>
    %530 = vector.shape_cast %529 : vector<8x1xf32> to vector<8x1xf32>
    %531 = vector.broadcast %530 : vector<8x1xf32> to vector<8x128xf32>
    %c0_141 = arith.constant 0 : index
    %c0_142 = arith.constant 0 : index
    %532 = vector.load %arg8[%c0_141, %c0_142] : memref<8x128xf32, #tpu.memory_space<vmem>>, vector<8x128xf32>
    tpu.vector_store %arg8[%c0_141, %c0_142], %531 {strides = array<i32>} : memref<8x128xf32, #tpu.memory_space<vmem>>, vector<8x128xf32>,
    return
  }
}

</mosaic_0001>

<bundles_post_ra>
// kernel: lstm_forward.1
= control target key start
LH: loop header
LB: loop body
LE: loop exit
PB: predicated region body
PF: predicated region fallthrough
CT: control target
= control target key end

     0   :  { %s5363_s0 = inlined_call_operand.vmem [shape: bf16[64,32], index: 0, kind: input, shape index: {}]   ;;  %s5364_s1 = inlined_call_operand.vmem [shape: bf16[32,512], index: 1, kind: input, shape index: {}]   ;;  %s5365_s2 = inlined_call_operand.hbm [shape: bf16[128,512], index: 2, kind: input, shape index: {}]   ;;  %s5366_s3 = inlined_call_operand.vmem [shape: f32[1,512], index: 3, kind: input, shape index: {}]   ;;  %s5367_s4 = inlined_call_operand.hbm [shape: bf16[256,512], index: 4, kind: input, shape index: {}]   ;;  %s5368_s5 = inlined_call_operand.vmem [shape: f32[1,512], index: 5, kind: input, shape index: {}]   ;;  %s5369_s6 = inlined_call_operand.vmem [shape: f32[1,256], index: 6, kind: input, shape index: {}]   ;;  %s5370_s7 = inlined_call_operand.<no memory space> [shape: f32[1,1], index: 7, kind: input, shape index: {}]   ;;  %s5371_s8 = inlined_call_operand.vmem [shape: f32[8,128], index: 8, kind: output, shape index: {}]  }
   0x1   :  { %v13_v0 = vstv %s5370_s7 }
   0x2   :  { %14 = vst [vmem:[#allocation3] sm:$0x1] %v13_v0 }
   0x3   :  { %15 = vsyncpa [#allocation5], 0 }
   0x4   :  { %16 = vsyncpa [#allocation7], 0  ;;  %s3614_s29 = smov [#allocation4]   ;;  %s3566_s11 = scalar_lea.hbm %s5365_s2, 4096 }
   0x5   :  { %s26_s30 = sshll.u32 %s3614_s29, 4  ;;  %p3567_p0 = scmp.ne.s32.totalorder %s5365_s2, %s3566_s11  ;;  %s27_s30 = int_to_ptr.vmem [resolvable:$true] %s26_s30 }
   0x6   :  { %p3570_p1 = scmp.lt.u32.totalorder %s3566_s11, %s5365_s2 }
   0x8   :  { %p3572_p2 = pnand %p3570_p1, %p3567_p0 }
   0xa   :  { %3575 = shalt.err (!%p3572_p2)
}
   0xb   :  { %s3576_s7 = scalar_lea.vmem %s27_s30, 4096  ;;  %p3581_p4 = scmp.lt.s32.totalorder %s27_s30, %s27_s30 }
   0xc   :  { %p3577_p3 = scmp.ne.s32.totalorder %s27_s30, %s3576_s7  ;;  %p3582_p5 = scmp.lt.s32.totalorder %s3576_s7, %s3576_s7 }
   0xe   :  { %p3583_p6 = por %p3582_p5, %p3581_p4 }
  0x10   :  { %p3584_p7 = pnand %p3583_p6, %p3577_p3 }
  0x12   :  { %3587 = shalt.err (!%p3584_p7)
}
  0x13   :  { %s3615_s16 = smov 256   ;;  %s3616_s17 = smov 16  }
  0x14   :  { %32 = dma.hbm_to_vmem [thread:$0]  %s5365_s2, 4096, %s27_s30, [#allocation5], %s3615_s16, %s3615_s16, %s3616_s17  }
  0x15   :  { %s3617_s20 = smov [#allocation6]   ;;  %s3588_s24 = scalar_lea.hbm %s5367_s4, 8192 }
  0x16   :  { %s40_s21 = sshll.u32 %s3617_s20, 4  ;;  %p3589_p8 = scmp.ne.s32.totalorder %s5367_s4, %s3588_s24  ;;  %s41_s21 = int_to_ptr.vmem [resolvable:$true] %s40_s21 }
  0x17   :  { %p3592_p9 = scmp.lt.u32.totalorder %s3588_s24, %s5367_s4 }
  0x19   :  { %p3594_p10 = pnand %p3592_p9, %p3589_p8 }
  0x1b   :  { %3597 = shalt.err (!%p3594_p10)
}
  0x1c   :  { %s3598_s29 = scalar_lea.vmem %s41_s21, 8192  ;;  %p3603_p12 = scmp.lt.s32.totalorder %s41_s21, %s41_s21 }
  0x1d   :  { %p3599_p11 = scmp.ne.s32.totalorder %s41_s21, %s3598_s29  ;;  %p3604_p13 = scmp.lt.s32.totalorder %s3598_s29, %s3598_s29 }
  0x1f   :  { %p3605_p0 = por %p3604_p13, %p3603_p12 }
  0x21   :  { %p3606_p1 = pnand %p3605_p0, %p3599_p11 }
  0x23   :  { %3609 = shalt.err (!%p3606_p1)
}
  0x24   :  { %46 = dma.hbm_to_vmem [thread:$0]  %s5367_s4, 8192, %s41_s21, [#allocation7], %s3615_s16, %s3615_s16, %s3616_s17  }
  0x25   :  { %3610 = dma.done.wait [#allocation5], 4096  }
  0x26   :  { %3611 = vsyncadd [#allocation5], 4294963200 }
  0x27   :  { %3612 = dma.done.wait [#allocation7], 8192  }
  0x28   :  { %3613 = vsyncadd [#allocation7], 4294959104  ;;  %v5372_v1 = vmov 0   ;;  %v2954_v2 = vld [vmem:[%s5364_s1 + $0x4] ss:$16 sps:$4 sm:$0xff]   ;;  %vm158_vm0 = vcmask 261120  }
  0x29   :  { %203 = vmatprep.mubr.bf16.mxu0 %v5372_v1  ;;  %276 = vmatprep.mubr.bf16.mxu1 %v5372_v1  ;;  %v2956_v3 = vld [vmem:[%s5364_s1 + $0xc] ss:$16 sps:$4 sm:$0xff]   ;;  %v2958_v4 = vld [vmem:[%s5364_s1] ss:$16 sps:$4 sm:$0xff]   ;;  %v2959_v5 = vld [vmem:[%s5364_s1 + $0x8] ss:$16 sps:$4 sm:$0xff]  }
  0x2a   :  { %2952 = vset.pattern.permute.xlu1 %v5372_v1  ;;  %2953 = vset.pattern.permute.xlu0 %v5372_v1  ;;  %v2960_v6 = vld [vmem:[%s5364_s1 + $0x24] ss:$16 sps:$4 sm:$0xff]   ;;  %v2962_v7 = vld [vmem:[%s5364_s1 + $0x2c] ss:$16 sps:$4 sm:$0xff]   ;;  %v2964_v8 = vld [vmem:[%s5364_s1 + $0x20] ss:$16 sps:$4 sm:$0xff]  }
  0x2b   :  { %171 = vmatprep.subr.bf16.mxu0 %v2954_v2  ;;  %244 = vmatprep.subr.bf16.mxu1 %v2956_v3  ;;  %v2965_v9 = vld [vmem:[%s5364_s1 + $0x28] ss:$16 sps:$4 sm:$0xff]   ;;  %v2966_v10 = vld [vmem:[%s5363_s0] sm:$0xff]   ;;  %v2992_v30 = vld [vmem:[%s5363_s0 + $0x10] sm:$0xff]   ;;  %vm2743_vm1 = vcmask 1043458   ;;  %vm2731_vm2 = vcmask 1041408  }
  0x2c   :  { %172 = vmatpush1.bf16.msra.mxu0 %v2958_v4  ;;  %245 = vmatpush1.bf16.msra.mxu1 %v2959_v5  ;;  %v3723_v11 = vld [vmem:[#allocation4 + $0x4] ss:$16 sps:$4 sm:$0xff]   ;;  %v3725_v12 = vld [vmem:[#allocation4 + $0xc] ss:$16 sps:$4 sm:$0xff]   ;;  %v3727_v13 = vld [vmem:[#allocation4] ss:$16 sps:$4 sm:$0xff]  }
  0x2d   :  { %173 = vmatprep.subr.bf16.mxu0 %v2960_v6  ;;  %246 = vmatprep.subr.bf16.mxu1 %v2962_v7  ;;  %v3729_v14 = vld [vmem:[#allocation4 + $0x8] ss:$16 sps:$4 sm:$0xff]   ;;  %v3732_v15 = vld [vmem:[#allocation4 + $0x24] ss:$16 sps:$4 sm:$0xff]   ;;  %v3735_v16 = vld [vmem:[#allocation4 + $0x2c] ss:$16 sps:$4 sm:$0xff]  }
  0x2e   :  { %v3739_v17 = vld [vmem:[#allocation4 + $0x20] ss:$16 sps:$4 sm:$0xff]   ;;  %v3743_v18 = vld [vmem:[#allocation4 + $0x28] ss:$16 sps:$4 sm:$0xff]   ;;  %v3747_v19 = vld [vmem:[#allocation4 + $0x44] ss:$16 sps:$4 sm:$0xff]  }
  0x2f   :  { %v2979_v20 = vld [vmem:[%s5363_s0 + $0x8] sm:$0xff]   ;;  %v3756_v22 = vld [vmem:[#allocation4 + $0x40] ss:$16 sps:$4 sm:$0xff]   ;;  %v3005_v39 = vld [vmem:[%s5363_s0 + $0x18] sm:$0xff]  }
  0x30   :  { %174 = vmatpush1.bf16.msra.mxu0 %v2964_v8  ;;  %247 = vmatpush1.bf16.msra.mxu1 %v2965_v9  ;;  %v3754_v21 = vld [vmem:[#allocation4 + $0x4c] ss:$16 sps:$4 sm:$0xff]   ;;  %v3760_v23 = vld [vmem:[#allocation4 + $0x48] ss:$16 sps:$4 sm:$0xff]   ;;  %v3764_v24 = vld [vmem:[#allocation4 + $0x64] ss:$16 sps:$4 sm:$0xff]  }
  0x31   :  { %545 = vmatprep.subr.bf16.mxu0 %v3723_v11  ;;  %586 = vmatprep.subr.bf16.mxu1 %v3725_v12  ;;  %v3766_v25 = vld [vmem:[#allocation4 + $0x6c] ss:$16 sps:$4 sm:$0xff]   ;;  %v3770_v26 = vld [vmem:[#allocation4 + $0x60] ss:$16 sps:$4 sm:$0xff]   ;;  %v3774_v27 = vld [vmem:[#allocation4 + $0x68] ss:$16 sps:$4 sm:$0xff]  }
  0x32   :  { %v3778_v28 = vld [vmem:[#allocation4 + $0x84] ss:$16 sps:$4 sm:$0xff]   ;;  %v3780_v29 = vld [vmem:[#allocation4 + $0x8c] ss:$16 sps:$4 sm:$0xff]   ;;  %v3787_v31 = vld [vmem:[#allocation4 + $0x80] ss:$16 sps:$4 sm:$0xff]  }
  0x33   :  { %2790 = vmatmul.mubr.msk.bf16.vlgmr.msra.gmra.mrb[0].mxu0 %vm158_vm0, %v2966_v10  ;;  %2794 = vmatmul.mubr.msk.bf16.vlgmr.msra.gmra.mrb[0].mxu1 %vm158_vm0, %v2966_v10  ;;  %v3789_v32 = vld [vmem:[#allocation4 + $0x88] ss:$16 sps:$4 sm:$0xff]   ;;  %v3793_v33 = vld [vmem:[#allocation4 + $0xa4] ss:$16 sps:$4 sm:$0xff]   ;;  %v3797_v34 = vld [vmem:[#allocation4 + $0xac] ss:$16 sps:$4 sm:$0xff]  }
  0x34   :  { %546 = vmatpush1.bf16.msra.mxu0 %v3727_v13  ;;  %587 = vmatpush1.bf16.msra.mxu1 %v3729_v14  ;;  %v3801_v35 = vld [vmem:[#allocation4 + $0xa0] ss:$16 sps:$4 sm:$0xff]   ;;  %v3803_v36 = vld [vmem:[#allocation4 + $0xa8] ss:$16 sps:$4 sm:$0xff]   ;;  %v3807_v37 = vld [vmem:[#allocation4 + $0xc4] ss:$16 sps:$4 sm:$0xff]  }
  0x35   :  { %547 = vmatprep.subr.bf16.mxu0 %v3732_v15  ;;  %588 = vmatprep.subr.bf16.mxu1 %v3735_v16  ;;  %v3811_v38 = vld [vmem:[#allocation4 + $0xcc] ss:$16 sps:$4 sm:$0xff]   ;;  %v3818_v40 = vld [vmem:[#allocation4 + $0xc0] ss:$16 sps:$4 sm:$0xff]   ;;  %v3820_v41 = vld [vmem:[#allocation4 + $0xc8] ss:$16 sps:$4 sm:$0xff]  }
  0x36   :  { %213 = vmatprep.mubr.bf16.mxu0 %v5372_v1  ;;  %286 = vmatprep.mubr.bf16.mxu1 %v5372_v1  ;;  %v3822_v42 = vld [vmem:[#allocation4 + $0xe4] ss:$16 sps:$4 sm:$0xff]   ;;  %v3824_v43 = vld [vmem:[#allocation4 + $0xec] ss:$16 sps:$4 sm:$0xff]   ;;  %v3830_v44 = vld [vmem:[#allocation4 + $0xe0] ss:$16 sps:$4 sm:$0xff]  }
  0x37   :  { %v3832_v45 = vld [vmem:[#allocation4 + $0xe8] ss:$16 sps:$4 sm:$0xff]   ;;  %v3846_v46 = vld [vmem:[#allocation6 + $0x4] ss:$16 sps:$4 sm:$0xff]   ;;  %v3848_v47 = vld [vmem:[#allocation6 + $0xc] ss:$16 sps:$4 sm:$0xff]  }
  0x38   :  { %548 = vmatpush1.bf16.msra.mxu0 %v3739_v17  ;;  %589 = vmatpush1.bf16.msra.mxu1 %v3743_v18  ;;  %v3850_v48 = vld [vmem:[#allocation6] ss:$16 sps:$4 sm:$0xff]   ;;  %v3852_v49 = vld [vmem:[#allocation6 + $0x8] ss:$16 sps:$4 sm:$0xff]   ;;  %v3858_v50 = vld [vmem:[#allocation6 + $0x24] ss:$16 sps:$4 sm:$0xff]  }
  0x39   :  { %549 = vmatprep.subr.bf16.mxu0 %v3747_v19  ;;  %590 = vmatprep.subr.bf16.mxu1 %v3754_v21  ;;  %v3860_v51 = vld [vmem:[#allocation6 + $0x2c] ss:$16 sps:$4 sm:$0xff]   ;;  %v3862_v52 = vld [vmem:[#allocation6 + $0x20] ss:$16 sps:$4 sm:$0xff]   ;;  %v3864_v53 = vld [vmem:[#allocation6 + $0x28] ss:$16 sps:$4 sm:$0xff]  }
  0x3a   :  { %v3870_v54 = vld [vmem:[#allocation6 + $0x44] ss:$16 sps:$4 sm:$0xff]   ;;  %v3872_v55 = vld [vmem:[#allocation6 + $0x4c] ss:$16 sps:$4 sm:$0xff]   ;;  %v3874_v56 = vld [vmem:[#allocation6 + $0x40] ss:$16 sps:$4 sm:$0xff]  }
  0x3b   :  { %2791 = vmatmul.mubr.msk.bf16.gmra.mrb[4].mxu0 %vm158_vm0, %v2979_v20  ;;  %2795 = vmatmul.mubr.msk.bf16.gmra.mrb[4].mxu1 %vm158_vm0, %v2979_v20  ;;  %5715 = vst [vmem:[#allocation10_spill] sm:$0xff] %v3872_v55  ;;  %5716 = vst [vmem:[#allocation11_spill] sm:$0xff] %v3874_v56  ;;  %v3876_v57 = vld [vmem:[#allocation6 + $0x48] ss:$16 sps:$4 sm:$0xff]   ;;  %v3882_v58 = vld [vmem:[#allocation6 + $0x64] ss:$16 sps:$4 sm:$0xff]  }
  0x3c   :  { %550 = vmatpush1.bf16.msra.mxu0 %v3756_v22  ;;  %591 = vmatpush1.bf16.msra.mxu1 %v3760_v23  ;;  %5717 = vst [vmem:[#allocation12_spill] sm:$0xff] %v3876_v57  ;;  %5718 = vst [vmem:[#allocation13_spill] sm:$0xff] %v3882_v58  ;;  %v3884_v59 = vld [vmem:[#allocation6 + $0x6c] ss:$16 sps:$4 sm:$0xff]   ;;  %v3886_v60 = vld [vmem:[#allocation6 + $0x60] ss:$16 sps:$4 sm:$0xff]  }
  0x3d   :  { %551 = vmatprep.subr.bf16.mxu0 %v3764_v24  ;;  %592 = vmatprep.subr.bf16.mxu1 %v3766_v25  ;;  %5719 = vst [vmem:[#allocation14_spill] sm:$0xff] %v3884_v59  ;;  %5720 = vst [vmem:[#allocation15_spill] sm:$0xff] %v3886_v60  ;;  %v3888_v61 = vld [vmem:[#allocation6 + $0x68] ss:$16 sps:$4 sm:$0xff]   ;;  %v3894_v62 = vld [vmem:[#allocation6 + $0x84] ss:$16 sps:$4 sm:$0xff]  }
  0x3e   :  { %223 = vmatprep.mubr.bf16.mxu0 %v5372_v1  ;;  %296 = vmatprep.mubr.bf16.mxu1 %v5372_v1  ;;  %5721 = vst [vmem:[#allocation16_spill] sm:$0xff] %v3888_v61  ;;  %5722 = vst [vmem:[#allocation17_spill] sm:$0xff] %v3894_v62  ;;  %v3896_v63 = vld [vmem:[#allocation6 + $0x8c] ss:$16 sps:$4 sm:$0xff]   ;;  %v3900_v0 = vld [vmem:[#allocation6 + $0x80] ss:$16 sps:$4 sm:$0xff]  }
  0x3f   :  { %5723 = vst [vmem:[#allocation18_spill] sm:$0xff] %v3896_v63  ;;  %5724 = vst [vmem:[#allocation19_spill] sm:$0xff] %v3900_v0  ;;  %v3902_v2 = vld [vmem:[#allocation6 + $0x88] ss:$16 sps:$4 sm:$0xff]   ;;  %v3906_v3 = vld [vmem:[#allocation6 + $0xa4] ss:$16 sps:$4 sm:$0xff]  }
  0x40   :  { %552 = vmatpush1.bf16.msra.mxu0 %v3770_v26  ;;  %593 = vmatpush1.bf16.msra.mxu1 %v3774_v27  ;;  %5725 = vst [vmem:[#allocation20_spill] sm:$0xff] %v3902_v2  ;;  %5726 = vst [vmem:[#allocation21_spill] sm:$0xff] %v3906_v3  ;;  %v3908_v4 = vld [vmem:[#allocation6 + $0xac] ss:$16 sps:$4 sm:$0xff]   ;;  %v3910_v5 = vld [vmem:[#allocation6 + $0xa0] ss:$16 sps:$4 sm:$0xff]  }
  0x41   :  { %553 = vmatprep.subr.bf16.mxu0 %v3778_v28  ;;  %594 = vmatprep.subr.bf16.mxu1 %v3780_v29  ;;  %5727 = vst [vmem:[#allocation22_spill] sm:$0xff] %v3908_v4  ;;  %5728 = vst [vmem:[#allocation23_spill] sm:$0xff] %v3910_v5  ;;  %v3912_v6 = vld [vmem:[#allocation6 + $0xa8] ss:$16 sps:$4 sm:$0xff]   ;;  %v3918_v7 = vld [vmem:[#allocation6 + $0xc4] ss:$16 sps:$4 sm:$0xff]  }
  0x42   :  { %5729 = vst [vmem:[#allocation24_spill] sm:$0xff] %v3912_v6  ;;  %5730 = vst [vmem:[#allocation25_spill] sm:$0xff] %v3918_v7  ;;  %v3920_v8 = vld [vmem:[#allocation6 + $0xcc] ss:$16 sps:$4 sm:$0xff]   ;;  %v3922_v9 = vld [vmem:[#allocation6 + $0xc0] ss:$16 sps:$4 sm:$0xff]  }
  0x43   :  { %2792 = vmatmul.mubr.msk.bf16.gmra.mrb[8].mxu0 %vm158_vm0, %v2992_v30  ;;  %2796 = vmatmul.mubr.msk.bf16.gmra.mrb[8].mxu1 %vm158_vm0, %v2992_v30  ;;  %5731 = vst [vmem:[#allocation26_spill] sm:$0xff] %v3920_v8  ;;  %5732 = vst [vmem:[#allocation27_spill] sm:$0xff] %v3922_v9  ;;  %v3924_v10 = vld [vmem:[#allocation6 + $0xc8] ss:$16 sps:$4 sm:$0xff]   ;;  %v3930_v20 = vld [vmem:[#allocation6 + $0xe4] ss:$16 sps:$4 sm:$0xff]  }
  0x44   :  { %554 = vmatpush1.bf16.msra.mxu0 %v3787_v31  ;;  %595 = vmatpush1.bf16.msra.mxu1 %v3789_v32  ;;  %5733 = vst [vmem:[#allocation28_spill] sm:$0xff] %v3924_v10  ;;  %5734 = vst [vmem:[#allocation29_spill] sm:$0xff] %v3930_v20  ;;  %v3932_v30 = vld [vmem:[#allocation6 + $0xec] ss:$16 sps:$4 sm:$0xff]  }
  0x45   :  { %555 = vmatprep.subr.bf16.mxu0 %v3793_v33  ;;  %596 = vmatprep.subr.bf16.mxu1 %v3797_v34  ;;  %5735 = vst [vmem:[#allocation30_spill] sm:$0xff] %v3932_v30 }
  0x46   :  { %233 = vmatprep.mubr.bf16.mxu0 %v5372_v1  ;;  %306 = vmatprep.mubr.bf16.mxu1 %v5372_v1 }
  0x48   :  { %556 = vmatpush1.bf16.msra.mxu0 %v3801_v35  ;;  %597 = vmatpush1.bf16.msra.mxu1 %v3803_v36 }
  0x49   :  { %557 = vmatprep.subr.bf16.mxu0 %v3807_v37  ;;  %598 = vmatprep.subr.bf16.mxu1 %v3811_v38 }
  0x4b   :  { %2793 = vmatmul.mubr.msk.bf16.gmra.mrb[12].mxu0 %vm158_vm0, %v3005_v39  ;;  %2797 = vmatmul.mubr.msk.bf16.gmra.mrb[12].mxu1 %vm158_vm0, %v3005_v39  ;;  %v3934_v39 = vld [vmem:[#allocation6 + $0xe0] ss:$16 sps:$4 sm:$0xff]  }
  0x4c   :  { %558 = vmatpush1.bf16.msra.mxu0 %v3818_v40  ;;  %599 = vmatpush1.bf16.msra.mxu1 %v3820_v41  ;;  %5736 = vst [vmem:[#allocation31_spill] sm:$0xff] %v3934_v39 }
  0x4d   :  { %559 = vmatprep.subr.bf16.mxu0 %v3822_v42  ;;  %600 = vmatprep.subr.bf16.mxu1 %v3824_v43 }
  0x4e   :  { %577 = vmatprep.mubr.bf16.mxu0 %v5372_v1  ;;  %618 = vmatprep.mubr.bf16.mxu1 %v5372_v1 }
  0x50   :  { %560 = vmatpush1.bf16.msra.mxu0 %v3830_v44  ;;  %601 = vmatpush1.bf16.msra.mxu1 %v3832_v45 }
  0x51   :  { %1063 = vmatprep.subr.bf16.mxu0 %v3846_v46  ;;  %1104 = vmatprep.subr.bf16.mxu1 %v3848_v47 }
  0x53   :  { %578 = vmatmul.mubr.bf16.vlgmr.msra.gmra.mrb[16].mxu0 %v5372_v1  ;;  %619 = vmatmul.mubr.bf16.vlgmr.msra.gmra.mrb[16].mxu1 %v5372_v1  ;;  %v3936_v1 = vld [vmem:[#allocation6 + $0xe8] ss:$16 sps:$4 sm:$0xff]  }
  0x54   :  { %1064 = vmatpush1.bf16.msra.mxu0 %v3850_v48  ;;  %1105 = vmatpush1.bf16.msra.mxu1 %v3852_v49  ;;  %5737 = vst [vmem:[#allocation32_spill] sm:$0xff] %v3936_v1 }
  0x55   :  { %1065 = vmatprep.subr.bf16.mxu0 %v3858_v50  ;;  %1106 = vmatprep.subr.bf16.mxu1 %v3860_v51 }
  0x58   :  { %1066 = vmatpush1.bf16.msra.mxu0 %v3862_v52  ;;  %1107 = vmatpush1.bf16.msra.mxu1 %v3864_v53 }
  0x59   :  { %1067 = vmatprep.subr.bf16.mxu0 %v3870_v54  ;;  %1108 = vmatprep.subr.bf16.mxu1 %v3872_v55 }
  0x5c   :  { %1068 = vmatpush1.bf16.msra.mxu0 %v3874_v56  ;;  %1109 = vmatpush1.bf16.msra.mxu1 %v3876_v57 }
  0x5d   :  { %1069 = vmatprep.subr.bf16.mxu0 %v3882_v58  ;;  %1110 = vmatprep.subr.bf16.mxu1 %v3884_v59 }
  0x60   :  { %1070 = vmatpush1.bf16.msra.mxu0 %v3886_v60  ;;  %1111 = vmatpush1.bf16.msra.mxu1 %v3888_v61 }
  0x61   :  { %1071 = vmatprep.subr.bf16.mxu0 %v3894_v62  ;;  %1112 = vmatprep.subr.bf16.mxu1 %v3896_v63 }
  0x64   :  { %1072 = vmatpush1.bf16.msra.mxu0 %v3900_v0  ;;  %1113 = vmatpush1.bf16.msra.mxu1 %v3902_v2 }
  0x65   :  { %1073 = vmatprep.subr.bf16.mxu0 %v3906_v3  ;;  %1114 = vmatprep.subr.bf16.mxu1 %v3908_v4  ;;  %v3619_v4 = vmov 0.0|0.0  }
  0x66   :  { %1095 = vmatprep.mubr.bf16.mxu0 %v3619_v4  ;;  %1136 = vmatprep.mubr.bf16.mxu1 %v3619_v4  ;;  %v78_v4 = vlaneseq }
  0x68   :  { %1074 = vmatpush1.bf16.msra.mxu0 %v3910_v5  ;;  %1115 = vmatpush1.bf16.msra.mxu1 %v3912_v6  ;;  %v4010_v6 = vld [vmem:[#allocation6 + $0x1c4] ss:$16 sps:$4 sm:$0xff]   ;;  %v4012_v5 = vld [vmem:[#allocation6 + $0x1cc] ss:$16 sps:$4 sm:$0xff]  }
  0x69   :  { %1075 = vmatprep.subr.bf16.mxu0 %v3918_v7  ;;  %1116 = vmatprep.subr.bf16.mxu1 %v3920_v8  ;;  %v3942_v8 = vld [vmem:[#allocation6 + $0x104] ss:$16 sps:$4 sm:$0xff]   ;;  %v3948_v7 = vld [vmem:[#allocation6 + $0x108] ss:$16 sps:$4 sm:$0xff]   ;;  %5762 = vst [vmem:[#allocation57_spill] sm:$0xff] %v4010_v6  ;;  %5763 = vst [vmem:[#allocation58_spill] sm:$0xff] %v4012_v5 }
  0x6a   :  { %5738 = vst [vmem:[#allocation33_spill] sm:$0xff] %v3942_v8  ;;  %5741 = vst [vmem:[#allocation36_spill] sm:$0xff] %v3948_v7 }
  0x6c   :  { %1076 = vmatpush1.bf16.msra.mxu0 %v3922_v9  ;;  %1117 = vmatpush1.bf16.msra.mxu1 %v3924_v10  ;;  %v3944_v9 = vld [vmem:[#allocation6 + $0x10c] ss:$16 sps:$4 sm:$0xff]   ;;  %v3946_v10 = vld [vmem:[#allocation6 + $0x100] ss:$16 sps:$4 sm:$0xff]  }
  0x6d   :  { %1077 = vmatprep.subr.bf16.mxu0 %v3930_v20  ;;  %1118 = vmatprep.subr.bf16.mxu1 %v3932_v30  ;;  %5739 = vst [vmem:[#allocation34_spill] sm:$0xff] %v3944_v9  ;;  %5740 = vst [vmem:[#allocation35_spill] sm:$0xff] %v3946_v10  ;;  %v3954_v30 = vld [vmem:[#allocation6 + $0x124] ss:$16 sps:$4 sm:$0xff]   ;;  %v3960_v20 = vld [vmem:[#allocation6 + $0x128] ss:$16 sps:$4 sm:$0xff]  }
  0x6e   :  { %5742 = vst [vmem:[#allocation37_spill] sm:$0xff] %v3954_v30  ;;  %5745 = vst [vmem:[#allocation40_spill] sm:$0xff] %v3960_v20 }
  0x70   :  { %1078 = vmatpush1.bf16.msra.mxu0 %v3934_v39  ;;  %1119 = vmatpush1.bf16.msra.mxu1 %v3936_v1  ;;  %v3956_v39 = vld [vmem:[#allocation6 + $0x12c] ss:$16 sps:$4 sm:$0xff]   ;;  %v3958_v1 = vld [vmem:[#allocation6 + $0x120] ss:$16 sps:$4 sm:$0xff]  }
  0x71   :  { %1079 = vmatprep.subr.bf16.mxu0 %v3942_v8  ;;  %1120 = vmatprep.subr.bf16.mxu1 %v3944_v9  ;;  %5743 = vst [vmem:[#allocation38_spill] sm:$0xff] %v3956_v39  ;;  %5744 = vst [vmem:[#allocation39_spill] sm:$0xff] %v3958_v1  ;;  %v3966_v9 = vld [vmem:[#allocation6 + $0x144] ss:$16 sps:$4 sm:$0xff]   ;;  %v3972_v8 = vld [vmem:[#allocation6 + $0x148] ss:$16 sps:$4 sm:$0xff]  }
  0x72   :  { %5746 = vst [vmem:[#allocation41_spill] sm:$0xff] %v3966_v9  ;;  %5749 = vst [vmem:[#allocation44_spill] sm:$0xff] %v3972_v8 }
  0x74   :  { %1080 = vmatpush1.bf16.msra.mxu0 %v3946_v10  ;;  %1121 = vmatpush1.bf16.msra.mxu1 %v3948_v7  ;;  %v3968_v10 = vld [vmem:[#allocation6 + $0x14c] ss:$16 sps:$4 sm:$0xff]   ;;  %v3970_v7 = vld [vmem:[#allocation6 + $0x140] ss:$16 sps:$4 sm:$0xff]  }
  0x75   :  { %1081 = vmatprep.subr.bf16.mxu0 %v3954_v30  ;;  %1122 = vmatprep.subr.bf16.mxu1 %v3956_v39  ;;  %5747 = vst [vmem:[#allocation42_spill] sm:$0xff] %v3968_v10  ;;  %5748 = vst [vmem:[#allocation43_spill] sm:$0xff] %v3970_v7  ;;  %v3978_v39 = vld [vmem:[#allocation6 + $0x164] ss:$16 sps:$4 sm:$0xff]   ;;  %v3984_v30 = vld [vmem:[#allocation6 + $0x168] ss:$16 sps:$4 sm:$0xff]  }
  0x76   :  { %5750 = vst [vmem:[#allocation45_spill] sm:$0xff] %v3978_v39  ;;  %5753 = vst [vmem:[#allocation48_spill] sm:$0xff] %v3984_v30 }
  0x78   :  { %1082 = vmatpush1.bf16.msra.mxu0 %v3958_v1  ;;  %1123 = vmatpush1.bf16.msra.mxu1 %v3960_v20  ;;  %v3980_v1 = vld [vmem:[#allocation6 + $0x16c] ss:$16 sps:$4 sm:$0xff]   ;;  %v3982_v20 = vld [vmem:[#allocation6 + $0x160] ss:$16 sps:$4 sm:$0xff]  }
  0x79   :  { %1083 = vmatprep.subr.bf16.mxu0 %v3966_v9  ;;  %1124 = vmatprep.subr.bf16.mxu1 %v3968_v10  ;;  %5751 = vst [vmem:[#allocation46_spill] sm:$0xff] %v3980_v1  ;;  %5752 = vst [vmem:[#allocation47_spill] sm:$0xff] %v3982_v20  ;;  %v3990_v10 = vld [vmem:[#allocation6 + $0x184] ss:$16 sps:$4 sm:$0xff]   ;;  %v3996_v9 = vld [vmem:[#allocation6 + $0x188] ss:$16 sps:$4 sm:$0xff]  }
  0x7a   :  { %5754 = vst [vmem:[#allocation49_spill] sm:$0xff] %v3990_v10  ;;  %5757 = vst [vmem:[#allocation52_spill] sm:$0xff] %v3996_v9 }
  0x7c   :  { %1084 = vmatpush1.bf16.msra.mxu0 %v3970_v7  ;;  %1125 = vmatpush1.bf16.msra.mxu1 %v3972_v8  ;;  %v3992_v7 = vld [vmem:[#allocation6 + $0x18c] ss:$16 sps:$4 sm:$0xff]   ;;  %v3994_v8 = vld [vmem:[#allocation6 + $0x180] ss:$16 sps:$4 sm:$0xff]  }
  0x7d   :  { %1085 = vmatprep.subr.bf16.mxu0 %v3978_v39  ;;  %1126 = vmatprep.subr.bf16.mxu1 %v3980_v1  ;;  %5755 = vst [vmem:[#allocation50_spill] sm:$0xff] %v3992_v7  ;;  %5756 = vst [vmem:[#allocation51_spill] sm:$0xff] %v3994_v8  ;;  %v4002_v1 = vld [vmem:[#allocation6 + $0x1a4] ss:$16 sps:$4 sm:$0xff]   ;;  %v4008_v39 = vld [vmem:[#allocation6 + $0x1a8] ss:$16 sps:$4 sm:$0xff]  }
  0x7e   :  { %5758 = vst [vmem:[#allocation53_spill] sm:$0xff] %v4002_v1  ;;  %5761 = vst [vmem:[#allocation56_spill] sm:$0xff] %v4008_v39 }
  0x80   :  { %1086 = vmatpush1.bf16.msra.mxu0 %v3982_v20  ;;  %1127 = vmatpush1.bf16.msra.mxu1 %v3984_v30  ;;  %v4004_v20 = vld [vmem:[#allocation6 + $0x1ac] ss:$16 sps:$4 sm:$0xff]   ;;  %v4006_v30 = vld [vmem:[#allocation6 + $0x1a0] ss:$16 sps:$4 sm:$0xff]  }
  0x81   :  { %1087 = vmatprep.subr.bf16.mxu0 %v3990_v10  ;;  %1128 = vmatprep.subr.bf16.mxu1 %v3992_v7  ;;  %5759 = vst [vmem:[#allocation54_spill] sm:$0xff] %v4004_v20  ;;  %5760 = vst [vmem:[#allocation55_spill] sm:$0xff] %v4006_v30  ;;  %v4024_v7 = vld [vmem:[#allocation6 + $0x1e4] ss:$16 sps:$4 sm:$0xff]   ;;  %v4026_v10 = vld [vmem:[#allocation6 + $0x1ec] ss:$16 sps:$4 sm:$0xff]  }
  0x82   :  { %5766 = vst [vmem:[#allocation61_spill] sm:$0xff] %v4024_v7  ;;  %5767 = vst [vmem:[#allocation62_spill] sm:$0xff] %v4026_v10 }
  0x84   :  { %1088 = vmatpush1.bf16.msra.mxu0 %v3994_v8  ;;  %1129 = vmatpush1.bf16.msra.mxu1 %v3996_v9  ;;  %v4018_v9 = vld [vmem:[#allocation6 + $0x1c0] ss:$16 sps:$4 sm:$0xff]   ;;  %v4020_v8 = vld [vmem:[#allocation6 + $0x1c8] ss:$16 sps:$4 sm:$0xff]  }
  0x85   :  { %1089 = vmatprep.subr.bf16.mxu0 %v4002_v1  ;;  %1130 = vmatprep.subr.bf16.mxu1 %v4004_v20  ;;  %5764 = vst [vmem:[#allocation59_spill] sm:$0xff] %v4018_v9  ;;  %5765 = vst [vmem:[#allocation60_spill] sm:$0xff] %v4020_v8 }
  0x88   :  { %1090 = vmatpush1.bf16.msra.mxu0 %v4006_v30  ;;  %1131 = vmatpush1.bf16.msra.mxu1 %v4008_v39  ;;  %v4030_v39 = vld [vmem:[#allocation6 + $0x1e0] ss:$16 sps:$4 sm:$0xff]   ;;  %v4032_v30 = vld [vmem:[#allocation6 + $0x1e8] ss:$16 sps:$4 sm:$0xff]  }
  0x89   :  { %1091 = vmatprep.subr.bf16.mxu0 %v4010_v6  ;;  %1132 = vmatprep.subr.bf16.mxu1 %v4012_v5  ;;  %5768 = vst [vmem:[#allocation63_spill] sm:$0xff] %v4030_v39  ;;  %5769 = vst [vmem:[#allocation64_spill] sm:$0xff] %v4032_v30 }
  0x8c   :  { %1092 = vmatpush1.bf16.msra.mxu0 %v4018_v9  ;;  %1133 = vmatpush1.bf16.msra.mxu1 %v4020_v8  ;;  %v4040_v9 = vshrl.u32 %v78_v4, 7 }
  0x8d   :  { %1093 = vmatprep.subr.bf16.mxu0 %v4024_v7  ;;  %1134 = vmatprep.subr.bf16.mxu1 %v4026_v10  ;;  %v76_v10 = vld [vmem:[%s5366_s3] sm:$0xf] }
  0x8e   :  { %5770 = vst [vmem:[#allocation65_spill] sm:$0xff] %v4040_v9  ;;  %v5466_v8 = vsub.s32 2, %v4040_v9  ;;  %v5475_v5 = vsub.s32 3, %v4040_v9  ;;  %v5476_v6 = vsub.s32 0, %v4040_v9 }
  0x90   :  { %1094 = vmatpush1.bf16.msra.mxu0 %v4030_v39  ;;  %1135 = vmatpush1.bf16.msra.mxu1 %v4032_v30  ;;  %v5483_v39 = vsub.s32 1, %v4040_v9  ;;  %v4059_v30 = vrot.slane %v76_v10, %v5475_v5  ;;  %v81_v7 = vrot.slane %v76_v10, %v5476_v6 }
  0x91   :  { %1149 = vmatprep.subr.bf16.mxu0 %v3723_v11  ;;  %1190 = vmatprep.subr.bf16.mxu1 %v3725_v12  ;;  %v4051_v11 = vrot.slane %v76_v10, %v5466_v8 }
  0x92   :  { %v85_v3 = vrot.slane %v76_v10, %v5483_v39 }
 0x106   :  { %v4053_v12 = vpop.f32.mrb[0].mxu0  ;;  %v4055_v4 = vpop.f32.mrb[0].mxu1 }
 0x107   :  { %v207_v20 = vpop.f32.mrb[1].mxu0  ;;  %v280_v1 = vpop.f32.mrb[1].mxu1 }
 0x108   :  { %v209_v2 = vpop.f32.mrb[2].mxu0  ;;  %v282_v0 = vpop.f32.mrb[2].mxu1 }
 0x109   :  { %v4065_v8 = vadd.f32 %v209_v2, %v81_v7  ;;  %v211_v63 = vpop.f32.mrb[3].mxu0  ;;  %v4068_v62 = vadd.f32 %v282_v0, %v4051_v11  ;;  %v284_v61 = vpop.f32.mrb[3].mxu1 }
 0x10a   :  { %v4070_v60 = vadd.f32 %v211_v63, %v85_v3  ;;  %v4073_v5 = vadd.f32 %v284_v61, %v4059_v30 }
 0x10b   :  { %5771 = vst [vmem:[#allocation66_spill] sm:$0xff] %v4065_v8  ;;  %5772 = vst [vmem:[#allocation67_spill] sm:$0xff] %v4068_v62 }
 0x10c   :  { %5773 = vst [vmem:[#allocation68_spill] sm:$0xff] %v4070_v60  ;;  %5774 = vst [vmem:[#allocation69_spill] sm:$0xff] %v4073_v5 }
 0x10e   :  { %v215_v6 = vpop.f32.mrb[4].mxu0  ;;  %v288_v59 = vpop.f32.mrb[4].mxu1 }
 0x10f   :  { %v4075_v58 = vadd.f32 %v215_v6, %v81_v7  ;;  %v217_v9 = vpop.f32.mrb[5].mxu0  ;;  %v4078_v10 = vadd.f32 %v288_v59, %v4051_v11  ;;  %v290_v2 = vpop.f32.mrb[5].mxu1 }
 0x110   :  { %v4080_v39 = vadd.f32 %v217_v9, %v85_v3  ;;  %v219_v8 = vpop.f32.mrb[6].mxu0  ;;  %v4083_v0 = vadd.f32 %v290_v2, %v4059_v30  ;;  %v292_v63 = vpop.f32.mrb[6].mxu1 }
 0x111   :  { %5775 = vst [vmem:[#allocation70_spill] sm:$0xff] %v4075_v58  ;;  %5776 = vst [vmem:[#allocation71_spill] sm:$0xff] %v4078_v10  ;;  %v4085_v60 = vadd.f32 %v219_v8, %v81_v7  ;;  %v221_v61 = vpop.f32.mrb[7].mxu0  ;;  %v4088_v5 = vadd.f32 %v292_v63, %v4051_v11  ;;  %v294_v6 = vpop.f32.mrb[7].mxu1 }
 0x112   :  { %5777 = vst [vmem:[#allocation72_spill] sm:$0xff] %v4080_v39  ;;  %5778 = vst [vmem:[#allocation73_spill] sm:$0xff] %v4083_v0  ;;  %v4090_v58 = vadd.f32 %v221_v61, %v85_v3  ;;  %v4093_v59 = vadd.f32 %v294_v6, %v4059_v30 }
 0x113   :  { %5779 = vst [vmem:[#allocation74_spill] sm:$0xff] %v4085_v60  ;;  %5780 = vst [vmem:[#allocation75_spill] sm:$0xff] %v4088_v5 }
 0x114   :  { %5781 = vst [vmem:[#allocation76_spill] sm:$0xff] %v4090_v58  ;;  %5782 = vst [vmem:[#allocation77_spill] sm:$0xff] %v4093_v59 }
 0x116   :  { %v225_v10 = vpop.f32.mrb[8].mxu0  ;;  %v298_v9 = vpop.f32.mrb[8].mxu1 }
 0x117   :  { %v4095_v39 = vadd.f32 %v225_v10, %v81_v7  ;;  %v227_v62 = vpop.f32.mrb[9].mxu0  ;;  %v4098_v2 = vadd.f32 %v298_v9, %v4051_v11  ;;  %v300_v8 = vpop.f32.mrb[9].mxu1 }
 0x118   :  { %v4100_v60 = vadd.f32 %v227_v62, %v85_v3  ;;  %v229_v0 = vpop.f32.mrb[10].mxu0  ;;  %v4103_v63 = vadd.f32 %v300_v8, %v4059_v30  ;;  %v302_v61 = vpop.f32.mrb[10].mxu1 }
 0x119   :  { %5783 = vst [vmem:[#allocation78_spill] sm:$0xff] %v4095_v39  ;;  %5784 = vst [vmem:[#allocation79_spill] sm:$0xff] %v4098_v2  ;;  %v4105_v58 = vadd.f32 %v229_v0, %v81_v7  ;;  %v231_v6 = vpop.f32.mrb[11].mxu0  ;;  %v4108_v59 = vadd.f32 %v302_v61, %v4051_v11  ;;  %v304_v10 = vpop.f32.mrb[11].mxu1 }
 0x11a   :  { %5785 = vst [vmem:[#allocation80_spill] sm:$0xff] %v4100_v60  ;;  %5786 = vst [vmem:[#allocation81_spill] sm:$0xff] %v4103_v63  ;;  %v4110_v39 = vadd.f32 %v231_v6, %v85_v3  ;;  %v4113_v9 = vadd.f32 %v304_v10, %v4059_v30 }
 0x11b   :  { %5787 = vst [vmem:[#allocation82_spill] sm:$0xff] %v4105_v58  ;;  %5788 = vst [vmem:[#allocation83_spill] sm:$0xff] %v4108_v59 }
 0x11c   :  { %5789 = vst [vmem:[#allocation84_spill] sm:$0xff] %v4110_v39  ;;  %5790 = vst [vmem:[#allocation85_spill] sm:$0xff] %v4113_v9 }
 0x11e   :  { %v235_v2 = vpop.f32.mrb[12].mxu0  ;;  %v308_v62 = vpop.f32.mrb[12].mxu1 }
 0x11f   :  { %v4115_v60 = vadd.f32 %v235_v2, %v81_v7  ;;  %v237_v5 = vpop.f32.mrb[13].mxu0  ;;  %v4118_v8 = vadd.f32 %v308_v62, %v4051_v11  ;;  %v310_v0 = vpop.f32.mrb[13].mxu1 }
 0x120   :  { %v4120_v58 = vadd.f32 %v237_v5, %v85_v3  ;;  %v239_v63 = vpop.f32.mrb[14].mxu0  ;;  %v4123_v61 = vadd.f32 %v310_v0, %v4059_v30  ;;  %v312_v6 = vpop.f32.mrb[14].mxu1  ;;  %v206_v5 = vadd.f32 %v4053_v12, %v81_v7  ;;  %v208_v0 = vadd.f32 %v207_v20, %v85_v3 }
 0x121   :  { %5791 = vst [vmem:[#allocation86_spill] sm:$0xff] %v4115_v60  ;;  %5792 = vst [vmem:[#allocation87_spill] sm:$0xff] %v4118_v8  ;;  %v4125_v39 = vadd.f32 %v239_v63, %v81_v7  ;;  %v241_v10 = vpop.f32.mrb[15].mxu0  ;;  %v4128_v9 = vadd.f32 %v312_v6, %v4051_v11  ;;  %v314_v2 = vpop.f32.mrb[15].mxu1 }
 0x122   :  { %5793 = vst [vmem:[#allocation88_spill] sm:$0xff] %v4120_v58  ;;  %5794 = vst [vmem:[#allocation89_spill] sm:$0xff] %v4123_v61  ;;  %v4130_v60 = vadd.f32 %v241_v10, %v85_v3  ;;  %v4133_v62 = vadd.f32 %v314_v2, %v4059_v30  ;;  %v279_v58 = vadd.f32 %v4055_v4, %v4051_v11 }
 0x123   :  { %5795 = vst [vmem:[#allocation90_spill] sm:$0xff] %v4125_v39  ;;  %5796 = vst [vmem:[#allocation91_spill] sm:$0xff] %v4128_v9  ;;  %v281_v61 = vadd.f32 %v280_v1, %v4059_v30 }
 0x124   :  { %5797 = vst [vmem:[#allocation92_spill] sm:$0xff] %v4130_v60  ;;  %5798 = vst [vmem:[#allocation93_spill] sm:$0xff] %v4133_v62 }
 0x126   :  { %v579_v63 = vpop.f32.mrb[16].mxu0  ;;  %v620_v39 = vpop.f32.mrb[16].mxu1 }
 0x127   :  { %v627_v8 = vadd.f32 %v579_v63, %v206_v5  ;;  %v629_v59 = vadd.f32 %v620_v39, %v279_v58  ;;  %v581_v6 = vpop.f32.mrb[17].mxu0  ;;  %v622_v9 = vpop.f32.mrb[17].mxu1  ;;  %v5830_v5 = vld [vmem:[#allocation40_spill] sm:$0xff]  ;;  %v5832_v63 = vld [vmem:[#allocation42_spill] sm:$0xff] }
 0x128   :  { %v628_v57 = vadd.f32 %v581_v6, %v208_v0  ;;  %v630_v10 = vadd.f32 %v622_v9, %v281_v61  ;;  %v583_v60 = vpop.f32.mrb[18].mxu0  ;;  %v624_v56 = vpop.f32.mrb[18].mxu1  ;;  %v5831_v0 = vld [vmem:[#allocation41_spill] sm:$0xff]  ;;  %v5833_v6 = vld [vmem:[#allocation43_spill] sm:$0xff] }
 0x129   :  { %v2830_v2 = vmul.f32 -1.442695, %v627_v8  ;;  %v584_v62 = vpop.f32.mrb[19].mxu0  ;;  %v625_v55 = vpop.f32.mrb[19].mxu1 }
 0x12a   :  { %v2831_v7 = vmul.f32 -1.442695, %v628_v57  ;;  %v2832_v11 = vmul.f32 -1.442695, %v630_v10  ;;  %v5834_v10 = vld [vmem:[#allocation44_spill] sm:$0xff] }
 0x12b   :  { %3114 = vpow2.f32 %v2830_v2  ;;  %v5835_v2 = vld [vmem:[#allocation45_spill] sm:$0xff] }
 0x12c   :  { %3116 = vpow2.f32 %v2831_v7  ;;  %v5836_v7 = vld [vmem:[#allocation46_spill] sm:$0xff] }
 0x12d   :  { %3118 = vpow2.f32 %v2832_v11  ;;  %v5837_v11 = vld [vmem:[#allocation47_spill] sm:$0xff] }
 0x12e   :  { %3120 = vtanh.f32 %v629_v59  ;;  %v5799_v59 = vmov 0  }
 0x135   :  { %v3115_v3 = vpop.eup %3114 }
 0x136   :  { %v3117_v20 = vpop.eup %3116  ;;  %v634_v1 = vadd.f32 1.0, %v3115_v3  ;;  %v5838_v3 = vld [vmem:[#allocation48_spill] sm:$0xff] }
 0x137   :  { %v640_v30 = vadd.f32 1.0, %v3117_v20  ;;  %v3119_v58 = vpop.eup %3118  ;;  %v5839_v20 = vld [vmem:[#allocation49_spill] sm:$0xff] }
 0x138   :  { %3122 = vrcp.f32 %v634_v1  ;;  %v3121_v39 = vpop.eup %3120  ;;  %v647_v4 = vadd.f32 1.0, %v3119_v58  ;;  %v5840_v1 = vld [vmem:[#allocation50_spill] sm:$0xff]  ;;  %v5842_v58 = vld [vmem:[#allocation52_spill] sm:$0xff] }
 0x139   :  { %3124 = vrcp.f32 %v640_v30  ;;  %v5841_v30 = vld [vmem:[#allocation51_spill] sm:$0xff] }
 0x13a   :  { %3126 = vrcp.f32 %v647_v4  ;;  %v5847_v4 = vld [vmem:[#allocation57_spill] sm:$0xff] }
 0x142   :  { %v3123_v12 = vpop.eup %3122 }
 0x143   :  { %v3125_v60 = vpop.eup %3124  ;;  %v651_v56 = vmul.f32 %v3123_v12, %v3121_v39  ;;  %v5843_v39 = vld [vmem:[#allocation53_spill] sm:$0xff]  ;;  %v5844_v12 = vld [vmem:[#allocation54_spill] sm:$0xff] }
 0x144   :  { %v650_v9 = vmul.f32 0.0, %v3125_v60  ;;  %v3127_v57 = vpop.eup %3126  ;;  %v5845_v60 = vld [vmem:[#allocation55_spill] sm:$0xff] }
 0x146   :  { %v4139_v55 = vadd.f32 %v651_v56, %v650_v9  ;;  %v5846_v56 = vld [vmem:[#allocation56_spill] sm:$0xff]  ;;  %v5848_v9 = vld [vmem:[#allocation58_spill] sm:$0xff] }
 0x148   :  { %3128 = vtanh.f32 %v4139_v55 }
 0x152   :  { %v3129_v8 = vpop.eup %3128 }
 0x153   :  { %v654_v61 = vmul.f32 %v3129_v8, %v3127_v57  ;;  %v5849_v57 = vld [vmem:[#allocation59_spill] sm:$0xff]  ;;  %v5850_v8 = vld [vmem:[#allocation60_spill] sm:$0xff] }
 0x155   :  { %v655_v62 = vpack.c.bf16 %v654_v61, %v654_v61  ;;  %v5851_v61 = vld [vmem:[#allocation61_spill] sm:$0xff] }
 0x157   :  { %1096 = vmatmul.mubr.bf16.vlgmr.msra.gmra.mrb[20].mxu0 %v655_v62  ;;  %1137 = vmatmul.mubr.bf16.vlgmr.msra.gmra.mrb[20].mxu1 %v655_v62 }
 0x158   :  { %1150 = vmatpush1.bf16.msra.mxu0 %v3727_v13  ;;  %1191 = vmatpush1.bf16.msra.mxu1 %v3729_v14  ;;  %v5800_v13 = vld [vmem:[#allocation10_spill] sm:$0xff]  ;;  %v5801_v14 = vld [vmem:[#allocation11_spill] sm:$0xff] }
 0x159   :  { %1151 = vmatprep.subr.bf16.mxu0 %v3732_v15  ;;  %1192 = vmatprep.subr.bf16.mxu1 %v3735_v16  ;;  %v5802_v15 = vld [vmem:[#allocation12_spill] sm:$0xff]  ;;  %v5803_v16 = vld [vmem:[#allocation13_spill] sm:$0xff] }
 0x15a   :  { %1181 = vmatprep.mubr.bf16.mxu0 %v5799_v59  ;;  %1222 = vmatprep.mubr.bf16.mxu1 %v5799_v59 }
 0x15c   :  { %1152 = vmatpush1.bf16.msra.mxu0 %v3739_v17  ;;  %1193 = vmatpush1.bf16.msra.mxu1 %v3743_v18  ;;  %v5804_v17 = vld [vmem:[#allocation14_spill] sm:$0xff]  ;;  %v5805_v18 = vld [vmem:[#allocation15_spill] sm:$0xff] }
 0x15d   :  { %1153 = vmatprep.subr.bf16.mxu0 %v3747_v19  ;;  %1194 = vmatprep.subr.bf16.mxu1 %v3754_v21  ;;  %v5806_v19 = vld [vmem:[#allocation16_spill] sm:$0xff]  ;;  %v5807_v21 = vld [vmem:[#allocation17_spill] sm:$0xff] }
 0x160   :  { %1154 = vmatpush1.bf16.msra.mxu0 %v3756_v22  ;;  %1195 = vmatpush1.bf16.msra.mxu1 %v3760_v23  ;;  %v5808_v22 = vld [vmem:[#allocation18_spill] sm:$0xff]  ;;  %v5809_v23 = vld [vmem:[#allocation19_spill] sm:$0xff] }
 0x161   :  { %1155 = vmatprep.subr.bf16.mxu0 %v3764_v24  ;;  %1196 = vmatprep.subr.bf16.mxu1 %v3766_v25  ;;  %v5810_v24 = vld [vmem:[#allocation20_spill] sm:$0xff]  ;;  %v5811_v25 = vld [vmem:[#allocation21_spill] sm:$0xff] }
 0x164   :  { %1156 = vmatpush1.bf16.msra.mxu0 %v3770_v26  ;;  %1197 = vmatpush1.bf16.msra.mxu1 %v3774_v27  ;;  %v5812_v26 = vld [vmem:[#allocation22_spill] sm:$0xff]  ;;  %v5813_v27 = vld [vmem:[#allocation23_spill] sm:$0xff] }
 0x165   :  { %1157 = vmatprep.subr.bf16.mxu0 %v3778_v28  ;;  %1198 = vmatprep.subr.bf16.mxu1 %v3780_v29  ;;  %v5814_v28 = vld [vmem:[#allocation24_spill] sm:$0xff]  ;;  %v5815_v29 = vld [vmem:[#allocation25_spill] sm:$0xff] }
 0x168   :  { %1158 = vmatpush1.bf16.msra.mxu0 %v3787_v31  ;;  %1199 = vmatpush1.bf16.msra.mxu1 %v3789_v32  ;;  %v5816_v31 = vld [vmem:[#allocation26_spill] sm:$0xff]  ;;  %v5817_v32 = vld [vmem:[#allocation27_spill] sm:$0xff] }
 0x169   :  { %1159 = vmatprep.subr.bf16.mxu0 %v3793_v33  ;;  %1200 = vmatprep.subr.bf16.mxu1 %v3797_v34  ;;  %v5818_v33 = vld [vmem:[#allocation28_spill] sm:$0xff]  ;;  %v5819_v34 = vld [vmem:[#allocation29_spill] sm:$0xff] }
 0x16c   :  { %1160 = vmatpush1.bf16.msra.mxu0 %v3801_v35  ;;  %1201 = vmatpush1.bf16.msra.mxu1 %v3803_v36  ;;  %v5820_v35 = vld [vmem:[#allocation30_spill] sm:$0xff]  ;;  %v5821_v36 = vld [vmem:[#allocation31_spill] sm:$0xff] }
 0x16d   :  { %1161 = vmatprep.subr.bf16.mxu0 %v3807_v37  ;;  %1202 = vmatprep.subr.bf16.mxu1 %v3811_v38  ;;  %v5822_v37 = vld [vmem:[#allocation32_spill] sm:$0xff]  ;;  %v5823_v38 = vld [vmem:[#allocation33_spill] sm:$0xff] }
 0x170   :  { %1162 = vmatpush1.bf16.msra.mxu0 %v3818_v40  ;;  %1203 = vmatpush1.bf16.msra.mxu1 %v3820_v41  ;;  %v5824_v40 = vld [vmem:[#allocation34_spill] sm:$0xff]  ;;  %v5825_v41 = vld [vmem:[#allocation35_spill] sm:$0xff] }
 0x171   :  { %1163 = vmatprep.subr.bf16.mxu0 %v3822_v42  ;;  %1204 = vmatprep.subr.bf16.mxu1 %v3824_v43  ;;  %v5826_v42 = vld [vmem:[#allocation36_spill] sm:$0xff]  ;;  %v5827_v43 = vld [vmem:[#allocation37_spill] sm:$0xff] }
 0x174   :  { %1164 = vmatpush1.bf16.msra.mxu0 %v3830_v44  ;;  %1205 = vmatpush1.bf16.msra.mxu1 %v3832_v45  ;;  %v5828_v44 = vld [vmem:[#allocation38_spill] sm:$0xff]  ;;  %v5829_v45 = vld [vmem:[#allocation39_spill] sm:$0xff] }
 0x175   :  { %1285 = vmatprep.subr.bf16.mxu0 %v3846_v46  ;;  %1326 = vmatprep.subr.bf16.mxu1 %v3848_v47 }
 0x177   :  { %1182 = vmatmul.mubr.bf16.vlgmr.msra.gmra.mrb[24].mxu0 %v655_v62  ;;  %1223 = vmatmul.mubr.bf16.vlgmr.msra.gmra.mrb[24].mxu1 %v655_v62  ;;  %v5852_v62 = vld [vmem:[#allocation62_spill] sm:$0xff] }
 0x178   :  { %1286 = vmatpush1.bf16.msra.mxu0 %v3850_v48  ;;  %1327 = vmatpush1.bf16.msra.mxu1 %v3852_v49 }
 0x179   :  { %1287 = vmatprep.subr.bf16.mxu0 %v3858_v50  ;;  %1328 = vmatprep.subr.bf16.mxu1 %v3860_v51 }
 0x17c   :  { %1288 = vmatpush1.bf16.msra.mxu0 %v3862_v52  ;;  %1329 = vmatpush1.bf16.msra.mxu1 %v3864_v53 }
 0x17d   :  { %1289 = vmatprep.subr.bf16.mxu0 %v3870_v54  ;;  %1330 = vmatprep.subr.bf16.mxu1 %v5800_v13 }
 0x180   :  { %1290 = vmatpush1.bf16.msra.mxu0 %v5801_v14  ;;  %1331 = vmatpush1.bf16.msra.mxu1 %v5802_v15 }
 0x181   :  { %1291 = vmatprep.subr.bf16.mxu0 %v5803_v16  ;;  %1332 = vmatprep.subr.bf16.mxu1 %v5804_v17 }
 0x184   :  { %1292 = vmatpush1.bf16.msra.mxu0 %v5805_v18  ;;  %1333 = vmatpush1.bf16.msra.mxu1 %v5806_v19 }
 0x185   :  { %1293 = vmatprep.subr.bf16.mxu0 %v5807_v21  ;;  %1334 = vmatprep.subr.bf16.mxu1 %v5808_v22 }
 0x188   :  { %1294 = vmatpush1.bf16.msra.mxu0 %v5809_v23  ;;  %1335 = vmatpush1.bf16.msra.mxu1 %v5810_v24 }
 0x189   :  { %1295 = vmatprep.subr.bf16.mxu0 %v5811_v25  ;;  %1336 = vmatprep.subr.bf16.mxu1 %v5812_v26 }
 0x18c   :  { %1296 = vmatpush1.bf16.msra.mxu0 %v5813_v27  ;;  %1337 = vmatpush1.bf16.msra.mxu1 %v5814_v28 }
 0x18d   :  { %1297 = vmatprep.subr.bf16.mxu0 %v5815_v29  ;;  %1338 = vmatprep.subr.bf16.mxu1 %v5816_v31 }
 0x190   :  { %1298 = vmatpush1.bf16.msra.mxu0 %v5817_v32  ;;  %1339 = vmatpush1.bf16.msra.mxu1 %v5818_v33 }
 0x191   :  { %1299 = vmatprep.subr.bf16.mxu0 %v5819_v34  ;;  %1340 = vmatprep.subr.bf16.mxu1 %v5820_v35 }
 0x194   :  { %1300 = vmatpush1.bf16.msra.mxu0 %v5821_v36  ;;  %1341 = vmatpush1.bf16.msra.mxu1 %v5822_v37 }
 0x195   :  { %1301 = vmatprep.subr.bf16.mxu0 %v5823_v38  ;;  %1342 = vmatprep.subr.bf16.mxu1 %v5824_v40 }
 0x198   :  { %1302 = vmatpush1.bf16.msra.mxu0 %v5825_v41  ;;  %1343 = vmatpush1.bf16.msra.mxu1 %v5826_v42 }
 0x199   :  { %1303 = vmatprep.subr.bf16.mxu0 %v5827_v43  ;;  %1344 = vmatprep.subr.bf16.mxu1 %v5828_v44 }
 0x19c   :  { %1304 = vmatpush1.bf16.msra.mxu0 %v5829_v45  ;;  %1345 = vmatpush1.bf16.msra.mxu1 %v5830_v5 }
 0x19d   :  { %1305 = vmatprep.subr.bf16.mxu0 %v5831_v0  ;;  %1346 = vmatprep.subr.bf16.mxu1 %v5832_v63 }
 0x1a0   :  { %1306 = vmatpush1.bf16.msra.mxu0 %v5833_v6  ;;  %1347 = vmatpush1.bf16.msra.mxu1 %v5834_v10 }
 0x1a1   :  { %1307 = vmatprep.subr.bf16.mxu0 %v5835_v2  ;;  %1348 = vmatprep.subr.bf16.mxu1 %v5836_v7 }
 0x1a4   :  { %1308 = vmatpush1.bf16.msra.mxu0 %v5837_v11  ;;  %1349 = vmatpush1.bf16.msra.mxu1 %v5838_v3 }
 0x1a5   :  { %1309 = vmatprep.subr.bf16.mxu0 %v5839_v20  ;;  %1350 = vmatprep.subr.bf16.mxu1 %v5840_v1 }
 0x1a8   :  { %1310 = vmatpush1.bf16.msra.mxu0 %v5841_v30  ;;  %1351 = vmatpush1.bf16.msra.mxu1 %v5842_v58  ;;  %v5853_v58 = vld [vmem:[#allocation63_spill] sm:$0xff] }
 0x1a9   :  { %1311 = vmatprep.subr.bf16.mxu0 %v5843_v39  ;;  %1352 = vmatprep.subr.bf16.mxu1 %v5844_v12  ;;  %v5854_v39 = vld [vmem:[#allocation64_spill] sm:$0xff] }
 0x1aa   :  { %v4238_v12 = vld [vmem:[#allocation4 + $0x4] ss:$16 sps:$4 sm:$0xff]  }
 0x1ab   :  { %5855 = vst [vmem:[#allocation10_spill] sm:$0xff] %v4238_v12 }
 0x1ac   :  { %1312 = vmatpush1.bf16.msra.mxu0 %v5845_v60  ;;  %1353 = vmatpush1.bf16.msra.mxu1 %v5846_v56  ;;  %v4241_v56 = vld [vmem:[#allocation4 + $0xc] ss:$16 sps:$4 sm:$0xff]  }
 0x1ad   :  { %1313 = vmatprep.subr.bf16.mxu0 %v5847_v4  ;;  %1354 = vmatprep.subr.bf16.mxu1 %v5848_v9  ;;  %5856 = vst [vmem:[#allocation11_spill] sm:$0xff] %v4241_v56 }
 0x1b0   :  { %1314 = vmatpush1.bf16.msra.mxu0 %v5849_v57  ;;  %1355 = vmatpush1.bf16.msra.mxu1 %v5850_v8  ;;  %v721_v8 = vld [vmem:[%s5368_s5] sm:$0xf] }
 0x1b1   :  { %1315 = vmatprep.subr.bf16.mxu0 %v5851_v61  ;;  %1356 = vmatprep.subr.bf16.mxu1 %v5852_v62  ;;  %v5857_v57 = vld [vmem:[#allocation65_spill] sm:$0xff] }
 0x1b2   :  { %v5858_v61 = vsub.s32 0, %v5857_v57 }
 0x1b4   :  { %1316 = vmatpush1.bf16.msra.mxu0 %v5853_v58  ;;  %1357 = vmatpush1.bf16.msra.mxu1 %v5854_v39  ;;  %v4249_v9 = vrot.slane %v721_v8, %v5858_v61  ;;  %v5860_v58 = vsub.s32 1, %v5857_v57  ;;  %v5862_v61 = vsub.s32 3, %v5857_v57 }
 0x1b5   :  { %1371 = vmatprep.subr.bf16.mxu0 %v4238_v12  ;;  %1412 = vmatprep.subr.bf16.mxu1 %v4241_v56 }
 0x1b6   :  { %5859 = vst [vmem:[#allocation12_spill] sm:$0xff] %v4249_v9  ;;  %v4253_v62 = vrot.slane %v721_v8, %v5860_v58  ;;  %v4259_v10 = vrot.slane %v721_v8, %v5862_v61 }
 0x1b8   :  { %5861 = vst [vmem:[#allocation13_spill] sm:$0xff] %v4253_v62  ;;  %5863 = vst [vmem:[#allocation14_spill] sm:$0xff] %v4259_v10 }
 0x22a   :  { %v1097_v39 = vpop.f32.mrb[20].mxu0  ;;  %v1138_v4 = vpop.f32.mrb[20].mxu1 }
 0x22b   :  { %v1098_v12 = vadd.f32 %v1097_v39, %v4249_v9  ;;  %v1099_v60 = vpop.f32.mrb[21].mxu0  ;;  %v1140_v30 = vpop.f32.mrb[21].mxu1  ;;  %v5864_v39 = vsub.s32 2, %v5857_v57 }
 0x22c   :  { %v1100_v56 = vadd.f32 %v1099_v60, %v4253_v62  ;;  %v1101_v1 = vpop.f32.mrb[22].mxu0  ;;  %v1142_v20 = vpop.f32.mrb[22].mxu1  ;;  %v1141_v58 = vadd.f32 %v1140_v30, %v4259_v10  ;;  %v5870_v10 = vld [vmem:[#allocation69_spill] sm:$0xff] }
 0x22d   :  { %v2900_v3 = vmul.f32 -1.442695, %v1098_v12  ;;  %v1102_v11 = vpop.f32.mrb[23].mxu0  ;;  %v1143_v7 = vpop.f32.mrb[23].mxu1  ;;  %v4264_v9 = vrot.slane %v721_v8, %v5864_v39 }
 0x22e   :  { %v2901_v2 = vmul.f32 -1.442695, %v1100_v56  ;;  %v2902_v6 = vmul.f32 -1.442695, %v1141_v58 }
 0x22f   :  { %3130 = vpow2.f32 %v2900_v3  ;;  %5865 = vst [vmem:[#allocation15_spill] sm:$0xff] %v4264_v9  ;;  %v1139_v1 = vadd.f32 %v1138_v4, %v4264_v9  ;;  %v5867_v4 = vld [vmem:[#allocation66_spill] sm:$0xff] }
 0x230   :  { %3132 = vpow2.f32 %v2901_v2 }
 0x231   :  { %3134 = vpow2.f32 %v2902_v6 }
 0x232   :  { %3136 = vtanh.f32 %v1139_v1 }
 0x239   :  { %v3131_v20 = vpop.eup %3130 }
 0x23a   :  { %v3133_v12 = vpop.eup %3132  ;;  %v1262_v11 = vadd.f32 1.0, %v3131_v20  ;;  %v5868_v20 = vld [vmem:[#allocation67_spill] sm:$0xff] }
 0x23b   :  { %v1268_v7 = vadd.f32 1.0, %v3133_v12  ;;  %v3135_v60 = vpop.eup %3134 }
 0x23c   :  { %3138 = vrcp.f32 %v1262_v11  ;;  %v3137_v3 = vpop.eup %3136  ;;  %v1275_v61 = vadd.f32 1.0, %v3135_v60  ;;  %v5869_v11 = vld [vmem:[#allocation68_spill] sm:$0xff] }
 0x23d   :  { %3140 = vrcp.f32 %v1268_v7 }
 0x23e   :  { %3142 = vrcp.f32 %v1275_v61 }
 0x246   :  { %v3139_v2 = vpop.eup %3138 }
 0x247   :  { %v3141_v56 = vpop.eup %3140  ;;  %v1279_v30 = vmul.f32 %v3139_v2, %v3137_v3 }
 0x248   :  { %v1278_v57 = vmul.f32 0.0, %v3141_v56  ;;  %v3143_v61 = vpop.eup %3142 }
 0x24a   :  { %v4267_v8 = vadd.f32 %v1279_v30, %v1278_v57  ;;  %v1183_v58 = vpop.f32.mrb[24].mxu0  ;;  %v1224_v39 = vpop.f32.mrb[24].mxu1 }
 0x24b   :  { %v1231_v9 = vadd.f32 %v1183_v58, %v5867_v4  ;;  %v1233_v6 = vadd.f32 %v1224_v39, %v5868_v20  ;;  %v1185_v1 = vpop.f32.mrb[25].mxu0  ;;  %v1226_v12 = vpop.f32.mrb[25].mxu1 }
 0x24c   :  { %5866 = vst [vmem:[#allocation16_spill] sm:$0xff] %v4267_v8  ;;  %3144 = vtanh.f32 %v4267_v8  ;;  %v1232_v7 = vadd.f32 %v1185_v1, %v5869_v11  ;;  %v1234_v62 = vadd.f32 %v1226_v12, %v5870_v10  ;;  %v1187_v3 = vpop.f32.mrb[26].mxu0  ;;  %v1228_v60 = vpop.f32.mrb[26].mxu1 }
 0x24d   :  { %v2897_v2 = vmul.f32 -1.442695, %v1231_v9  ;;  %v1188_v56 = vpop.f32.mrb[27].mxu0  ;;  %v1229_v30 = vpop.f32.mrb[27].mxu1 }
 0x24e   :  { %v2898_v57 = vmul.f32 -1.442695, %v1232_v7  ;;  %v2899_v4 = vmul.f32 -1.442695, %v1234_v62  ;;  %v4291_v30 = vld [vmem:[#allocation4 + $0x2c] ss:$16 sps:$4 sm:$0xff]  }
 0x24f   :  { %3146 = vpow2.f32 %v2897_v2 }
 0x250   :  { %3148 = vpow2.f32 %v2898_v57  ;;  %v4296_v57 = vld [vmem:[#allocation4 + $0x20] ss:$16 sps:$4 sm:$0xff]  }
 0x251   :  { %3150 = vpow2.f32 %v2899_v4  ;;  %v4305_v4 = vld [vmem:[#allocation4 + $0x4c] ss:$16 sps:$4 sm:$0xff]  }
 0x252   :  { %3152 = vtanh.f32 %v1233_v6 }
 0x256   :  { %v3145_v58 = vpop.eup %3144 }
 0x257   :  { %v1282_v39 = vmul.f32 %v3145_v58, %v3143_v61  ;;  %v4299_v61 = vld [vmem:[#allocation4 + $0x28] ss:$16 sps:$4 sm:$0xff]   ;;  %v4302_v58 = vld [vmem:[#allocation4 + $0x44] ss:$16 sps:$4 sm:$0xff]  }
 0x259   :  { %v3147_v20 = vpop.eup %3146  ;;  %v1284_v63 = vpack.c.bf16 %v1282_v39, %v1282_v39  ;;  %v4308_v39 = vld [vmem:[#allocation4 + $0x40] ss:$16 sps:$4 sm:$0xff]  }
 0x25a   :  { %v3149_v0 = vpop.eup %3148  ;;  %v1238_v8 = vadd.f32 1.0, %v3147_v20  ;;  %v4311_v20 = vld [vmem:[#allocation4 + $0x48] ss:$16 sps:$4 sm:$0xff]  }
 0x25b   :  { %v1244_v1 = vadd.f32 1.0, %v3149_v0  ;;  %1317 = vmatprep.mubr.bf16.mxu0 %v1284_v63  ;;  %1358 = vmatprep.mubr.bf16.mxu1 %v1284_v63  ;;  %v3151_v10 = vpop.eup %3150  ;;  %v4282_v63 = vld [vmem:[#allocation4] ss:$16 sps:$4 sm:$0xff]  }
 0x25c   :  { %3154 = vrcp.f32 %v1238_v8  ;;  %v3153_v9 = vpop.eup %3152  ;;  %v1251_v3 = vadd.f32 1.0, %v3151_v10  ;;  %v4285_v8 = vld [vmem:[#allocation4 + $0x8] ss:$16 sps:$4 sm:$0xff]   ;;  %v4317_v10 = vld [vmem:[#allocation4 + $0x6c] ss:$16 sps:$4 sm:$0xff]  }
 0x25d   :  { %3156 = vrcp.f32 %v1244_v1  ;;  %v4314_v1 = vld [vmem:[#allocation4 + $0x64] ss:$16 sps:$4 sm:$0xff]  }
 0x25e   :  { %3158 = vrcp.f32 %v1251_v3  ;;  %v4332_v3 = vld [vmem:[#allocation4 + $0x80] ss:$16 sps:$4 sm:$0xff]  }
 0x25f   :  { %5872 = vst [vmem:[#allocation18_spill] sm:$0xff] %v4332_v3 }
 0x266   :  { %v3155_v12 = vpop.eup %3154 }
 0x267   :  { %v3157_v11 = vpop.eup %3156  ;;  %v1255_v7 = vmul.f32 %v3155_v12, %v3153_v9  ;;  %v4320_v9 = vld [vmem:[#allocation4 + $0x60] ss:$16 sps:$4 sm:$0xff]   ;;  %v4323_v12 = vld [vmem:[#allocation4 + $0x68] ss:$16 sps:$4 sm:$0xff]  }
 0x268   :  { %v1254_v62 = vmul.f32 %v3157_v11, %v4139_v55  ;;  %v3159_v2 = vpop.eup %3158  ;;  %v4288_v55 = vld [vmem:[#allocation4 + $0x24] ss:$16 sps:$4 sm:$0xff]  }
 0x269   :  { %v4326_v11 = vld [vmem:[#allocation4 + $0x84] ss:$16 sps:$4 sm:$0xff]  }
 0x26a   :  { %v4275_v60 = vadd.f32 %v1255_v7, %v1254_v62  ;;  %v4329_v7 = vld [vmem:[#allocation4 + $0x8c] ss:$16 sps:$4 sm:$0xff]   ;;  %v4335_v62 = vld [vmem:[#allocation4 + $0x88] ss:$16 sps:$4 sm:$0xff]  }
 0x26b   :  { %5871 = vst [vmem:[#allocation17_spill] sm:$0xff] %v4329_v7  ;;  %5873 = vst [vmem:[#allocation19_spill] sm:$0xff] %v4335_v62 }
 0x26c   :  { %3160 = vtanh.f32 %v4275_v60 }
 0x276   :  { %v3161_v6 = vpop.eup %3160 }
 0x277   :  { %v1258_v0 = vmul.f32 %v3161_v6, %v3159_v2  ;;  %v4338_v2 = vld [vmem:[#allocation4 + $0xa4] ss:$16 sps:$4 sm:$0xff]   ;;  %v4341_v6 = vld [vmem:[#allocation4 + $0xac] ss:$16 sps:$4 sm:$0xff]  }
 0x278   :  { %5874 = vst [vmem:[#allocation20_spill] sm:$0xff] %v4338_v2  ;;  %5875 = vst [vmem:[#allocation21_spill] sm:$0xff] %v4341_v6 }
 0x279   :  { %v4278_v56 = vpack.c.bf16 %v1258_v0, %v1258_v0  ;;  %v4344_v0 = vld [vmem:[#allocation4 + $0xa0] ss:$16 sps:$4 sm:$0xff]  }
 0x27a   :  { %5876 = vst [vmem:[#allocation22_spill] sm:$0xff] %v4344_v0 }
 0x27b   :  { %1318 = vmatmul.mubr.bf16.vlgmr.msra.gmra.mrb[28].mxu0 %v4278_v56  ;;  %1359 = vmatmul.mubr.bf16.vlgmr.msra.gmra.mrb[28].mxu1 %v4278_v56 }
 0x27c   :  { %1372 = vmatpush1.bf16.msra.mxu0 %v4282_v63  ;;  %1413 = vmatpush1.bf16.msra.mxu1 %v4285_v8 }
 0x27d   :  { %1373 = vmatprep.subr.bf16.mxu0 %v4288_v55  ;;  %1414 = vmatprep.subr.bf16.mxu1 %v4291_v30 }
 0x27e   :  { %1403 = vmatprep.mubr.bf16.mxu0 %v5799_v59  ;;  %1444 = vmatprep.mubr.bf16.mxu1 %v5799_v59 }
 0x280   :  { %1374 = vmatpush1.bf16.msra.mxu0 %v4296_v57  ;;  %1415 = vmatpush1.bf16.msra.mxu1 %v4299_v61 }
 0x281   :  { %1375 = vmatprep.subr.bf16.mxu0 %v4302_v58  ;;  %1416 = vmatprep.subr.bf16.mxu1 %v4305_v4 }
 0x284   :  { %1376 = vmatpush1.bf16.msra.mxu0 %v4308_v39  ;;  %1417 = vmatpush1.bf16.msra.mxu1 %v4311_v20 }
 0x285   :  { %1377 = vmatprep.subr.bf16.mxu0 %v4314_v1  ;;  %1418 = vmatprep.subr.bf16.mxu1 %v4317_v10 }
 0x288   :  { %1378 = vmatpush1.bf16.msra.mxu0 %v4320_v9  ;;  %1419 = vmatpush1.bf16.msra.mxu1 %v4323_v12 }
 0x289   :  { %1379 = vmatprep.subr.bf16.mxu0 %v4326_v11  ;;  %1420 = vmatprep.subr.bf16.mxu1 %v4329_v7  ;;  %v4347_v7 = vld [vmem:[#allocation4 + $0xa8] ss:$16 sps:$4 sm:$0xff]  }
 0x28a   :  { %5877 = vst [vmem:[#allocation23_spill] sm:$0xff] %v4347_v7 }
 0x28c   :  { %1380 = vmatpush1.bf16.msra.mxu0 %v4332_v3  ;;  %1421 = vmatpush1.bf16.msra.mxu1 %v4335_v62  ;;  %v4350_v3 = vld [vmem:[#allocation4 + $0xc4] ss:$16 sps:$4 sm:$0xff]   ;;  %v4353_v62 = vld [vmem:[#allocation4 + $0xcc] ss:$16 sps:$4 sm:$0xff]  }
 0x28d   :  { %1381 = vmatprep.subr.bf16.mxu0 %v4338_v2  ;;  %1422 = vmatprep.subr.bf16.mxu1 %v4341_v6  ;;  %5878 = vst [vmem:[#allocation24_spill] sm:$0xff] %v4350_v3  ;;  %5879 = vst [vmem:[#allocation25_spill] sm:$0xff] %v4353_v62  ;;  %v4356_v2 = vld [vmem:[#allocation4 + $0xc0] ss:$16 sps:$4 sm:$0xff]   ;;  %v4359_v6 = vld [vmem:[#allocation4 + $0xc8] ss:$16 sps:$4 sm:$0xff]  }
 0x290   :  { %1382 = vmatpush1.bf16.msra.mxu0 %v4344_v0  ;;  %1423 = vmatpush1.bf16.msra.mxu1 %v4347_v7  ;;  %v4362_v0 = vld [vmem:[#allocation4 + $0xe4] ss:$16 sps:$4 sm:$0xff]   ;;  %v4365_v7 = vld [vmem:[#allocation4 + $0xec] ss:$16 sps:$4 sm:$0xff]  }
 0x291   :  { %1383 = vmatprep.subr.bf16.mxu0 %v4350_v3  ;;  %1424 = vmatprep.subr.bf16.mxu1 %v4353_v62  ;;  %v4368_v3 = vld [vmem:[#allocation4 + $0xe0] ss:$16 sps:$4 sm:$0xff]   ;;  %v4371_v62 = vld [vmem:[#allocation4 + $0xe8] ss:$16 sps:$4 sm:$0xff]  }
 0x294   :  { %1384 = vmatpush1.bf16.msra.mxu0 %v4356_v2  ;;  %1425 = vmatpush1.bf16.msra.mxu1 %v4359_v6 }
 0x295   :  { %1385 = vmatprep.subr.bf16.mxu0 %v4362_v0  ;;  %1426 = vmatprep.subr.bf16.mxu1 %v4365_v7 }
 0x298   :  { %1386 = vmatpush1.bf16.msra.mxu0 %v4368_v3  ;;  %1427 = vmatpush1.bf16.msra.mxu1 %v4371_v62 }
 0x299   :  { %1507 = vmatprep.subr.bf16.mxu0 %v3846_v46  ;;  %1548 = vmatprep.subr.bf16.mxu1 %v3848_v47  ;;  %v5880_v46 = vld [vmem:[#allocation41_spill] sm:$0xff]  ;;  %v5881_v47 = vld [vmem:[#allocation42_spill] sm:$0xff] }
 0x29b   :  { %1404 = vmatmul.mubr.bf16.vlgmr.msra.gmra.mrb[32].mxu0 %v4278_v56  ;;  %1445 = vmatmul.mubr.bf16.vlgmr.msra.gmra.mrb[32].mxu1 %v4278_v56  ;;  %v5908_v56 = vld [vmem:[#allocation14_spill] sm:$0xff] }
 0x29c   :  { %1508 = vmatpush1.bf16.msra.mxu0 %v3850_v48  ;;  %1549 = vmatpush1.bf16.msra.mxu1 %v3852_v49  ;;  %v5882_v48 = vld [vmem:[#allocation43_spill] sm:$0xff]  ;;  %v5883_v49 = vld [vmem:[#allocation44_spill] sm:$0xff] }
 0x29d   :  { %1509 = vmatprep.subr.bf16.mxu0 %v3858_v50  ;;  %1550 = vmatprep.subr.bf16.mxu1 %v3860_v51  ;;  %v5884_v50 = vld [vmem:[#allocation45_spill] sm:$0xff]  ;;  %v5885_v51 = vld [vmem:[#allocation46_spill] sm:$0xff] }
 0x2a0   :  { %1510 = vmatpush1.bf16.msra.mxu0 %v3862_v52  ;;  %1551 = vmatpush1.bf16.msra.mxu1 %v3864_v53  ;;  %v5886_v52 = vld [vmem:[#allocation47_spill] sm:$0xff]  ;;  %v5887_v53 = vld [vmem:[#allocation48_spill] sm:$0xff] }
 0x2a1   :  { %1511 = vmatprep.subr.bf16.mxu0 %v3870_v54  ;;  %1552 = vmatprep.subr.bf16.mxu1 %v5800_v13  ;;  %v5888_v54 = vld [vmem:[#allocation49_spill] sm:$0xff]  ;;  %v5889_v13 = vld [vmem:[#allocation50_spill] sm:$0xff] }
 0x2a4   :  { %1512 = vmatpush1.bf16.msra.mxu0 %v5801_v14  ;;  %1553 = vmatpush1.bf16.msra.mxu1 %v5802_v15  ;;  %v5890_v14 = vld [vmem:[#allocation51_spill] sm:$0xff]  ;;  %v5891_v15 = vld [vmem:[#allocation52_spill] sm:$0xff] }
 0x2a5   :  { %1513 = vmatprep.subr.bf16.mxu0 %v5803_v16  ;;  %1554 = vmatprep.subr.bf16.mxu1 %v5804_v17  ;;  %v5892_v16 = vld [vmem:[#allocation53_spill] sm:$0xff]  ;;  %v5893_v17 = vld [vmem:[#allocation54_spill] sm:$0xff] }
 0x2a8   :  { %1514 = vmatpush1.bf16.msra.mxu0 %v5805_v18  ;;  %1555 = vmatpush1.bf16.msra.mxu1 %v5806_v19  ;;  %v5894_v18 = vld [vmem:[#allocation55_spill] sm:$0xff]  ;;  %v5895_v19 = vld [vmem:[#allocation56_spill] sm:$0xff] }
 0x2a9   :  { %1515 = vmatprep.subr.bf16.mxu0 %v5807_v21  ;;  %1556 = vmatprep.subr.bf16.mxu1 %v5808_v22  ;;  %v5896_v21 = vld [vmem:[#allocation57_spill] sm:$0xff]  ;;  %v5897_v22 = vld [vmem:[#allocation58_spill] sm:$0xff] }
 0x2ac   :  { %1516 = vmatpush1.bf16.msra.mxu0 %v5809_v23  ;;  %1557 = vmatpush1.bf16.msra.mxu1 %v5810_v24  ;;  %v5898_v23 = vld [vmem:[#allocation59_spill] sm:$0xff]  ;;  %v5899_v24 = vld [vmem:[#allocation60_spill] sm:$0xff] }
 0x2ad   :  { %1517 = vmatprep.subr.bf16.mxu0 %v5811_v25  ;;  %1558 = vmatprep.subr.bf16.mxu1 %v5812_v26  ;;  %v5900_v25 = vld [vmem:[#allocation61_spill] sm:$0xff]  ;;  %v5901_v26 = vld [vmem:[#allocation62_spill] sm:$0xff] }
 0x2b0   :  { %1518 = vmatpush1.bf16.msra.mxu0 %v5813_v27  ;;  %1559 = vmatpush1.bf16.msra.mxu1 %v5814_v28  ;;  %v5902_v27 = vld [vmem:[#allocation63_spill] sm:$0xff]  ;;  %v5903_v28 = vld [vmem:[#allocation64_spill] sm:$0xff] }
 0x2b1   :  { %1519 = vmatprep.subr.bf16.mxu0 %v5815_v29  ;;  %1560 = vmatprep.subr.bf16.mxu1 %v5816_v31  ;;  %v5904_v29 = vld [vmem:[#allocation10_spill] sm:$0xff]  ;;  %v5905_v31 = vld [vmem:[#allocation11_spill] sm:$0xff] }
 0x2b4   :  { %1520 = vmatpush1.bf16.msra.mxu0 %v5817_v32  ;;  %1561 = vmatpush1.bf16.msra.mxu1 %v5818_v33 }
 0x2b5   :  { %1521 = vmatprep.subr.bf16.mxu0 %v5819_v34  ;;  %1562 = vmatprep.subr.bf16.mxu1 %v5820_v35  ;;  %v5906_v34 = vld [vmem:[#allocation12_spill] sm:$0xff] }
 0x2b8   :  { %1522 = vmatpush1.bf16.msra.mxu0 %v5821_v36  ;;  %1563 = vmatpush1.bf16.msra.mxu1 %v5822_v37 }
 0x2b9   :  { %1523 = vmatprep.subr.bf16.mxu0 %v5823_v38  ;;  %1564 = vmatprep.subr.bf16.mxu1 %v5824_v40  ;;  %v5907_v38 = vld [vmem:[#allocation13_spill] sm:$0xff] }
 0x2bc   :  { %1524 = vmatpush1.bf16.msra.mxu0 %v5825_v41  ;;  %1565 = vmatpush1.bf16.msra.mxu1 %v5826_v42 }
 0x2bd   :  { %1525 = vmatprep.subr.bf16.mxu0 %v5827_v43  ;;  %1566 = vmatprep.subr.bf16.mxu1 %v5828_v44 }
 0x2c0   :  { %1526 = vmatpush1.bf16.msra.mxu0 %v5829_v45  ;;  %1567 = vmatpush1.bf16.msra.mxu1 %v5830_v5 }
 0x2c1   :  { %1527 = vmatprep.subr.bf16.mxu0 %v5880_v46  ;;  %1568 = vmatprep.subr.bf16.mxu1 %v5881_v47 }
 0x2c4   :  { %1528 = vmatpush1.bf16.msra.mxu0 %v5882_v48  ;;  %1569 = vmatpush1.bf16.msra.mxu1 %v5883_v49  ;;  %v5909_v48 = vld [vmem:[#allocation15_spill] sm:$0xff] }
 0x2c5   :  { %1529 = vmatprep.subr.bf16.mxu0 %v5884_v50  ;;  %1570 = vmatprep.subr.bf16.mxu1 %v5885_v51 }
 0x2c8   :  { %1530 = vmatpush1.bf16.msra.mxu0 %v5886_v52  ;;  %1571 = vmatpush1.bf16.msra.mxu1 %v5887_v53 }
 0x2c9   :  { %1531 = vmatprep.subr.bf16.mxu0 %v5888_v54  ;;  %1572 = vmatprep.subr.bf16.mxu1 %v5889_v13 }
 0x2cc   :  { %1532 = vmatpush1.bf16.msra.mxu0 %v5890_v14  ;;  %1573 = vmatpush1.bf16.msra.mxu1 %v5891_v15 }
 0x2cd   :  { %1533 = vmatprep.subr.bf16.mxu0 %v5892_v16  ;;  %1574 = vmatprep.subr.bf16.mxu1 %v5893_v17 }
 0x2d0   :  { %1534 = vmatpush1.bf16.msra.mxu0 %v5894_v18  ;;  %1575 = vmatpush1.bf16.msra.mxu1 %v5895_v19  ;;  %v5910_v18 = vld [vmem:[#allocation16_spill] sm:$0xff] }
 0x2d1   :  { %1535 = vmatprep.subr.bf16.mxu0 %v5896_v21  ;;  %1576 = vmatprep.subr.bf16.mxu1 %v5897_v22 }
 0x2d4   :  { %1536 = vmatpush1.bf16.msra.mxu0 %v5898_v23  ;;  %1577 = vmatpush1.bf16.msra.mxu1 %v5899_v24  ;;  %v5911_v24 = vld [vmem:[#allocation70_spill] sm:$0xff] }
 0x2d5   :  { %1537 = vmatprep.subr.bf16.mxu0 %v5900_v25  ;;  %1578 = vmatprep.subr.bf16.mxu1 %v5901_v26  ;;  %v5912_v26 = vld [vmem:[#allocation71_spill] sm:$0xff] }
 0x2d8   :  { %1538 = vmatpush1.bf16.msra.mxu0 %v5902_v27  ;;  %1579 = vmatpush1.bf16.msra.mxu1 %v5903_v28 }
 0x2d9   :  { %1593 = vmatprep.subr.bf16.mxu0 %v5904_v29  ;;  %1634 = vmatprep.subr.bf16.mxu1 %v5905_v31 }
 0x34e   :  { %v1319_v32 = vpop.f32.mrb[28].mxu0  ;;  %v1360_v33 = vpop.f32.mrb[28].mxu1 }
 0x34f   :  { %v1320_v35 = vadd.f32 %v1319_v32, %v5906_v34  ;;  %v1321_v36 = vpop.f32.mrb[29].mxu0  ;;  %v1362_v37 = vpop.f32.mrb[29].mxu1  ;;  %v1361_v49 = vadd.f32 %v1360_v33, %v5909_v48  ;;  %v5913_v33 = vld [vmem:[#allocation72_spill] sm:$0xff] }
 0x350   :  { %v1322_v40 = vadd.f32 %v1321_v36, %v5907_v38  ;;  %v1323_v41 = vpop.f32.mrb[30].mxu0  ;;  %v1364_v42 = vpop.f32.mrb[30].mxu1  ;;  %v1363_v46 = vadd.f32 %v1362_v37, %v5908_v56  ;;  %v5914_v36 = vld [vmem:[#allocation73_spill] sm:$0xff] }
 0x351   :  { %v2906_v43 = vmul.f32 -1.442695, %v1320_v35  ;;  %v1324_v44 = vpop.f32.mrb[31].mxu0  ;;  %v1365_v45 = vpop.f32.mrb[31].mxu1 }
 0x352   :  { %v2907_v5 = vmul.f32 -1.442695, %v1322_v40  ;;  %v2908_v47 = vmul.f32 -1.442695, %v1363_v46 }
 0x353   :  { %3162 = vpow2.f32 %v2906_v43 }
 0x354   :  { %3164 = vpow2.f32 %v2907_v5 }
 0x355   :  { %3166 = vpow2.f32 %v2908_v47 }
 0x356   :  { %3168 = vtanh.f32 %v1361_v49 }
 0x35d   :  { %v3163_v50 = vpop.eup %3162 }
 0x35e   :  { %v3165_v51 = vpop.eup %3164  ;;  %v1484_v52 = vadd.f32 1.0, %v3163_v50 }
 0x35f   :  { %v1490_v53 = vadd.f32 1.0, %v3165_v51  ;;  %v3167_v54 = vpop.eup %3166 }
 0x360   :  { %3170 = vrcp.f32 %v1484_v52  ;;  %v3169_v13 = vpop.eup %3168  ;;  %v1497_v17 = vadd.f32 1.0, %v3167_v54 }
 0x361   :  { %3172 = vrcp.f32 %v1490_v53 }
 0x362   :  { %3174 = vrcp.f32 %v1497_v17 }
 0x36a   :  { %v3171_v14 = vpop.eup %3170 }
 0x36b   :  { %v3173_v15 = vpop.eup %3172  ;;  %v1501_v16 = vmul.f32 %v3171_v14, %v3169_v13 }
 0x36c   :  { %v1500_v19 = vmul.f32 %v3173_v15, %v5910_v18  ;;  %v3175_v5 = vpop.eup %3174 }
 0x36e   :  { %v1405_v21 = vpop.f32.mrb[32].mxu0  ;;  %v1446_v22 = vpop.f32.mrb[32].mxu1  ;;  %v4447_v23 = vadd.f32 %v1501_v16, %v1500_v19 }
 0x36f   :  { %v1453_v25 = vadd.f32 %v1405_v21, %v5911_v24  ;;  %v1455_v27 = vadd.f32 %v1446_v22, %v5912_v26  ;;  %v1407_v28 = vpop.f32.mrb[33].mxu0  ;;  %v1448_v32 = vpop.f32.mrb[33].mxu1 }
 0x370   :  { %v1454_v35 = vadd.f32 %v1407_v28, %v5913_v33  ;;  %v1456_v37 = vadd.f32 %v1448_v32, %v5914_v36  ;;  %v1409_v40 = vpop.f32.mrb[34].mxu0  ;;  %v1450_v41 = vpop.f32.mrb[34].mxu1  ;;  %3176 = vtanh.f32 %v4447_v23  ;;  %v5917_v28 = vld [vmem:[#allocation19_spill] sm:$0xff]  ;;  %v5918_v32 = vld [vmem:[#allocation20_spill] sm:$0xff]  ;;  %v5919_v33 = vld [vmem:[#allocation21_spill] sm:$0xff] }
 0x371   :  { %v2903_v42 = vmul.f32 -1.442695, %v1453_v25  ;;  %v1410_v43 = vpop.f32.mrb[35].mxu0  ;;  %v1451_v44 = vpop.f32.mrb[35].mxu1  ;;  %v5921_v36 = vld [vmem:[#allocation23_spill] sm:$0xff]  ;;  %v5923_v40 = vld [vmem:[#allocation25_spill] sm:$0xff] }
 0x372   :  { %v2904_v45 = vmul.f32 -1.442695, %v1454_v35  ;;  %v2905_v47 = vmul.f32 -1.442695, %v1456_v37  ;;  %v5920_v35 = vld [vmem:[#allocation22_spill] sm:$0xff]  ;;  %v5922_v37 = vld [vmem:[#allocation24_spill] sm:$0xff] }
 0x373   :  { %3178 = vpow2.f32 %v2903_v42  ;;  %v4490_v41 = vld [vmem:[#allocation6 + $0x4] ss:$16 sps:$4 sm:$0xff]   ;;  %v4493_v42 = vld [vmem:[#allocation6 + $0xc] ss:$16 sps:$4 sm:$0xff]   ;;  %v4496_v43 = vld [vmem:[#allocation6] ss:$16 sps:$4 sm:$0xff]  }
 0x374   :  { %3180 = vpow2.f32 %v2904_v45  ;;  %v4499_v44 = vld [vmem:[#allocation6 + $0x8] ss:$16 sps:$4 sm:$0xff]   ;;  %v4502_v45 = vld [vmem:[#allocation6 + $0x24] ss:$16 sps:$4 sm:$0xff]  }
 0x375   :  { %3182 = vpow2.f32 %v2905_v47  ;;  %v4511_v47 = vld [vmem:[#allocation6 + $0x28] ss:$16 sps:$4 sm:$0xff]  }
 0x376   :  { %3184 = vtanh.f32 %v1455_v27  ;;  %v5916_v27 = vld [vmem:[#allocation18_spill] sm:$0xff] }
 0x37a   :  { %v3177_v46 = vpop.eup %3176 }
 0x37b   :  { %v1504_v49 = vmul.f32 %v3177_v46, %v3175_v5  ;;  %v4505_v5 = vld [vmem:[#allocation6 + $0x2c] ss:$16 sps:$4 sm:$0xff]   ;;  %v4508_v46 = vld [vmem:[#allocation6 + $0x20] ss:$16 sps:$4 sm:$0xff]  }
 0x37d   :  { %v3179_v50 = vpop.eup %3178  ;;  %v1506_v51 = vpack.c.bf16 %v1504_v49, %v1504_v49  ;;  %v4514_v49 = vld [vmem:[#allocation6 + $0x44] ss:$16 sps:$4 sm:$0xff]  }
 0x37e   :  { %v3181_v52 = vpop.eup %3180  ;;  %v1460_v53 = vadd.f32 1.0, %v3179_v50  ;;  %v4517_v50 = vld [vmem:[#allocation6 + $0x4c] ss:$16 sps:$4 sm:$0xff]  }
 0x37f   :  { %v1466_v54 = vadd.f32 1.0, %v3181_v52  ;;  %1539 = vmatprep.mubr.bf16.mxu0 %v1506_v51  ;;  %1580 = vmatprep.mubr.bf16.mxu1 %v1506_v51  ;;  %v3183_v13 = vpop.eup %3182  ;;  %v4520_v51 = vld [vmem:[#allocation6 + $0x40] ss:$16 sps:$4 sm:$0xff]   ;;  %v4523_v52 = vld [vmem:[#allocation6 + $0x48] ss:$16 sps:$4 sm:$0xff]  }
 0x380   :  { %3186 = vrcp.f32 %v1460_v53  ;;  %v3185_v14 = vpop.eup %3184  ;;  %v1473_v18 = vadd.f32 1.0, %v3183_v13  ;;  %5924 = vst [vmem:[#allocation26_spill] sm:$0xff] %v4520_v51  ;;  %5925 = vst [vmem:[#allocation27_spill] sm:$0xff] %v4523_v52  ;;  %v4526_v53 = vld [vmem:[#allocation6 + $0x64] ss:$16 sps:$4 sm:$0xff]  }
 0x381   :  { %3188 = vrcp.f32 %v1466_v54  ;;  %5926 = vst [vmem:[#allocation28_spill] sm:$0xff] %v4526_v53  ;;  %v4529_v54 = vld [vmem:[#allocation6 + $0x6c] ss:$16 sps:$4 sm:$0xff]   ;;  %v4532_v13 = vld [vmem:[#allocation6 + $0x60] ss:$16 sps:$4 sm:$0xff]  }
 0x382   :  { %3190 = vrcp.f32 %v1473_v18  ;;  %5927 = vst [vmem:[#allocation29_spill] sm:$0xff] %v4529_v54  ;;  %5928 = vst [vmem:[#allocation30_spill] sm:$0xff] %v4532_v13  ;;  %v4547_v18 = vld [vmem:[#allocation6 + $0x88] ss:$16 sps:$4 sm:$0xff]  }
 0x383   :  { %5933 = vst [vmem:[#allocation35_spill] sm:$0xff] %v4547_v18 }
 0x38a   :  { %v3187_v15 = vpop.eup %3186 }
 0x38b   :  { %v3189_v16 = vpop.eup %3188  ;;  %v1477_v17 = vmul.f32 %v3187_v15, %v3185_v14  ;;  %v4535_v14 = vld [vmem:[#allocation6 + $0x68] ss:$16 sps:$4 sm:$0xff]   ;;  %v4538_v15 = vld [vmem:[#allocation6 + $0x84] ss:$16 sps:$4 sm:$0xff]  }
 0x38c   :  { %v1476_v19 = vmul.f32 %v3189_v16, %v4275_v60  ;;  %v3191_v22 = vpop.eup %3190  ;;  %v5915_v60 = vld [vmem:[#allocation17_spill] sm:$0xff]  ;;  %5929 = vst [vmem:[#allocation31_spill] sm:$0xff] %v4535_v14  ;;  %5930 = vst [vmem:[#allocation32_spill] sm:$0xff] %v4538_v15 }
 0x38d   :  { %v4541_v16 = vld [vmem:[#allocation6 + $0x8c] ss:$16 sps:$4 sm:$0xff]  }
 0x38e   :  { %v4455_v21 = vadd.f32 %v1477_v17, %v1476_v19  ;;  %5931 = vst [vmem:[#allocation33_spill] sm:$0xff] %v4541_v16  ;;  %v4544_v17 = vld [vmem:[#allocation6 + $0x80] ss:$16 sps:$4 sm:$0xff]   ;;  %v4550_v19 = vld [vmem:[#allocation6 + $0xa4] ss:$16 sps:$4 sm:$0xff]  }
 0x38f   :  { %5932 = vst [vmem:[#allocation34_spill] sm:$0xff] %v4544_v17  ;;  %5934 = vst [vmem:[#allocation36_spill] sm:$0xff] %v4550_v19 }
 0x390   :  { %3192 = vtanh.f32 %v4455_v21 }
 0x39a   :  { %v3193_v24 = vpop.eup %3192 }
 0x39b   :  { %v1480_v25 = vmul.f32 %v3193_v24, %v3191_v22  ;;  %v4553_v22 = vld [vmem:[#allocation6 + $0xac] ss:$16 sps:$4 sm:$0xff]   ;;  %v4556_v24 = vld [vmem:[#allocation6 + $0xa0] ss:$16 sps:$4 sm:$0xff]  }
 0x39c   :  { %5935 = vst [vmem:[#allocation37_spill] sm:$0xff] %v4553_v22  ;;  %5936 = vst [vmem:[#allocation38_spill] sm:$0xff] %v4556_v24 }
 0x39d   :  { %v1505_v26 = vpack.c.bf16 %v1480_v25, %v1480_v25  ;;  %v4559_v25 = vld [vmem:[#allocation6 + $0xa8] ss:$16 sps:$4 sm:$0xff]  }
 0x39e   :  { %5937 = vst [vmem:[#allocation39_spill] sm:$0xff] %v4559_v25 }
 0x39f   :  { %1540 = vmatmul.mubr.bf16.vlgmr.msra.gmra.mrb[36].mxu0 %v1505_v26  ;;  %1581 = vmatmul.mubr.bf16.vlgmr.msra.gmra.mrb[36].mxu1 %v1505_v26 }
 0x3a0   :  { %1594 = vmatpush1.bf16.msra.mxu0 %v4282_v63  ;;  %1635 = vmatpush1.bf16.msra.mxu1 %v4285_v8 }
 0x3a1   :  { %1595 = vmatprep.subr.bf16.mxu0 %v4288_v55  ;;  %1636 = vmatprep.subr.bf16.mxu1 %v4291_v30 }
 0x3a2   :  { %1625 = vmatprep.mubr.bf16.mxu0 %v5799_v59  ;;  %1666 = vmatprep.mubr.bf16.mxu1 %v5799_v59 }
 0x3a4   :  { %1596 = vmatpush1.bf16.msra.mxu0 %v4296_v57  ;;  %1637 = vmatpush1.bf16.msra.mxu1 %v4299_v61 }
 0x3a5   :  { %1597 = vmatprep.subr.bf16.mxu0 %v4302_v58  ;;  %1638 = vmatprep.subr.bf16.mxu1 %v4305_v4 }
 0x3a8   :  { %1598 = vmatpush1.bf16.msra.mxu0 %v4308_v39  ;;  %1639 = vmatpush1.bf16.msra.mxu1 %v4311_v20 }
 0x3a9   :  { %1599 = vmatprep.subr.bf16.mxu0 %v4314_v1  ;;  %1640 = vmatprep.subr.bf16.mxu1 %v4317_v10 }
 0x3ac   :  { %1600 = vmatpush1.bf16.msra.mxu0 %v4320_v9  ;;  %1641 = vmatpush1.bf16.msra.mxu1 %v4323_v12 }
 0x3ad   :  { %1601 = vmatprep.subr.bf16.mxu0 %v4326_v11  ;;  %1642 = vmatprep.subr.bf16.mxu1 %v5915_v60 }
 0x3b0   :  { %1602 = vmatpush1.bf16.msra.mxu0 %v5916_v27  ;;  %1643 = vmatpush1.bf16.msra.mxu1 %v5917_v28 }
 0x3b1   :  { %1603 = vmatprep.subr.bf16.mxu0 %v5918_v32  ;;  %1644 = vmatprep.subr.bf16.mxu1 %v5919_v33 }
 0x3b4   :  { %1604 = vmatpush1.bf16.msra.mxu0 %v5920_v35  ;;  %1645 = vmatpush1.bf16.msra.mxu1 %v5921_v36 }
 0x3b5   :  { %1605 = vmatprep.subr.bf16.mxu0 %v5922_v37  ;;  %1646 = vmatprep.subr.bf16.mxu1 %v5923_v40 }
 0x3b8   :  { %1606 = vmatpush1.bf16.msra.mxu0 %v4356_v2  ;;  %1647 = vmatpush1.bf16.msra.mxu1 %v4359_v6 }
 0x3b9   :  { %1607 = vmatprep.subr.bf16.mxu0 %v4362_v0  ;;  %1648 = vmatprep.subr.bf16.mxu1 %v4365_v7 }
 0x3bc   :  { %1608 = vmatpush1.bf16.msra.mxu0 %v4368_v3  ;;  %1649 = vmatpush1.bf16.msra.mxu1 %v4371_v62 }
 0x3bd   :  { %1729 = vmatprep.subr.bf16.mxu0 %v4490_v41  ;;  %1770 = vmatprep.subr.bf16.mxu1 %v4493_v42 }
 0x3bf   :  { %1626 = vmatmul.mubr.bf16.vlgmr.msra.gmra.mrb[40].mxu0 %v1505_v26  ;;  %1667 = vmatmul.mubr.bf16.vlgmr.msra.gmra.mrb[40].mxu1 %v1505_v26  ;;  %v4562_v26 = vld [vmem:[#allocation6 + $0xc4] ss:$16 sps:$4 sm:$0xff]  }
 0x3c0   :  { %1730 = vmatpush1.bf16.msra.mxu0 %v4496_v43  ;;  %1771 = vmatpush1.bf16.msra.mxu1 %v4499_v44  ;;  %5938 = vst [vmem:[#allocation40_spill] sm:$0xff] %v4562_v26 }
 0x3c1   :  { %1731 = vmatprep.subr.bf16.mxu0 %v4502_v45  ;;  %1772 = vmatprep.subr.bf16.mxu1 %v4505_v5 }
 0x3c4   :  { %1732 = vmatpush1.bf16.msra.mxu0 %v4508_v46  ;;  %1773 = vmatpush1.bf16.msra.mxu1 %v4511_v47 }
 0x3c5   :  { %1733 = vmatprep.subr.bf16.mxu0 %v4514_v49  ;;  %1774 = vmatprep.subr.bf16.mxu1 %v4517_v50 }
 0x3c8   :  { %1734 = vmatpush1.bf16.msra.mxu0 %v4520_v51  ;;  %1775 = vmatpush1.bf16.msra.mxu1 %v4523_v52 }
 0x3c9   :  { %1735 = vmatprep.subr.bf16.mxu0 %v4526_v53  ;;  %1776 = vmatprep.subr.bf16.mxu1 %v4529_v54 }
 0x3cc   :  { %1736 = vmatpush1.bf16.msra.mxu0 %v4532_v13  ;;  %1777 = vmatpush1.bf16.msra.mxu1 %v4535_v14 }
 0x3cd   :  { %1737 = vmatprep.subr.bf16.mxu0 %v4538_v15  ;;  %1778 = vmatprep.subr.bf16.mxu1 %v4541_v16 }
 0x3d0   :  { %1738 = vmatpush1.bf16.msra.mxu0 %v4544_v17  ;;  %1779 = vmatpush1.bf16.msra.mxu1 %v4547_v18  ;;  %v4565_v18 = vld [vmem:[#allocation6 + $0xcc] ss:$16 sps:$4 sm:$0xff]  }
 0x3d1   :  { %1739 = vmatprep.subr.bf16.mxu0 %v4550_v19  ;;  %1780 = vmatprep.subr.bf16.mxu1 %v4553_v22  ;;  %5939 = vst [vmem:[#allocation65_spill] sm:$0xff] %v4565_v18  ;;  %v4568_v19 = vld [vmem:[#allocation6 + $0xc0] ss:$16 sps:$4 sm:$0xff]   ;;  %v4571_v22 = vld [vmem:[#allocation6 + $0xc8] ss:$16 sps:$4 sm:$0xff]  }
 0x3d2   :  { %5940 = vst [vmem:[#allocation66_spill] sm:$0xff] %v4568_v19  ;;  %5941 = vst [vmem:[#allocation67_spill] sm:$0xff] %v4571_v22 }
 0x3d4   :  { %1740 = vmatpush1.bf16.msra.mxu0 %v4556_v24  ;;  %1781 = vmatpush1.bf16.msra.mxu1 %v4559_v25  ;;  %v4574_v24 = vld [vmem:[#allocation6 + $0xe4] ss:$16 sps:$4 sm:$0xff]   ;;  %v4577_v25 = vld [vmem:[#allocation6 + $0xec] ss:$16 sps:$4 sm:$0xff]  }
 0x3d5   :  { %1741 = vmatprep.subr.bf16.mxu0 %v4562_v26  ;;  %1782 = vmatprep.subr.bf16.mxu1 %v4565_v18  ;;  %5942 = vst [vmem:[#allocation68_spill] sm:$0xff] %v4574_v24  ;;  %5943 = vst [vmem:[#allocation69_spill] sm:$0xff] %v4577_v25  ;;  %v4580_v26 = vld [vmem:[#allocation6 + $0xe0] ss:$16 sps:$4 sm:$0xff]   ;;  %v4583_v18 = vld [vmem:[#allocation6 + $0xe8] ss:$16 sps:$4 sm:$0xff]  }
 0x3d6   :  { %5944 = vst [vmem:[#allocation41_spill] sm:$0xff] %v4580_v26  ;;  %5945 = vst [vmem:[#allocation42_spill] sm:$0xff] %v4583_v18 }
 0x3d8   :  { %1742 = vmatpush1.bf16.msra.mxu0 %v4568_v19  ;;  %1783 = vmatpush1.bf16.msra.mxu1 %v4571_v22  ;;  %v4586_v19 = vld [vmem:[#allocation6 + $0x104] ss:$16 sps:$4 sm:$0xff]   ;;  %v4589_v22 = vld [vmem:[#allocation6 + $0x10c] ss:$16 sps:$4 sm:$0xff]  }
 0x3d9   :  { %1743 = vmatprep.subr.bf16.mxu0 %v4574_v24  ;;  %1784 = vmatprep.subr.bf16.mxu1 %v4577_v25  ;;  %5946 = vst [vmem:[#allocation43_spill] sm:$0xff] %v4586_v19  ;;  %5947 = vst [vmem:[#allocation44_spill] sm:$0xff] %v4589_v22  ;;  %v4592_v24 = vld [vmem:[#allocation6 + $0x100] ss:$16 sps:$4 sm:$0xff]   ;;  %v4595_v25 = vld [vmem:[#allocation6 + $0x108] ss:$16 sps:$4 sm:$0xff]  }
 0x3da   :  { %5948 = vst [vmem:[#allocation45_spill] sm:$0xff] %v4592_v24  ;;  %5949 = vst [vmem:[#allocation46_spill] sm:$0xff] %v4595_v25 }
 0x3dc   :  { %1744 = vmatpush1.bf16.msra.mxu0 %v4580_v26  ;;  %1785 = vmatpush1.bf16.msra.mxu1 %v4583_v18  ;;  %v4598_v26 = vld [vmem:[#allocation6 + $0x124] ss:$16 sps:$4 sm:$0xff]   ;;  %v4601_v18 = vld [vmem:[#allocation6 + $0x12c] ss:$16 sps:$4 sm:$0xff]  }
 0x3dd   :  { %1745 = vmatprep.subr.bf16.mxu0 %v4586_v19  ;;  %1786 = vmatprep.subr.bf16.mxu1 %v4589_v22  ;;  %5950 = vst [vmem:[#allocation47_spill] sm:$0xff] %v4598_v26  ;;  %5951 = vst [vmem:[#allocation48_spill] sm:$0xff] %v4601_v18  ;;  %v4604_v19 = vld [vmem:[#allocation6 + $0x120] ss:$16 sps:$4 sm:$0xff]   ;;  %v4607_v22 = vld [vmem:[#allocation6 + $0x128] ss:$16 sps:$4 sm:$0xff]  }
 0x3de   :  { %5952 = vst [vmem:[#allocation49_spill] sm:$0xff] %v4604_v19  ;;  %5953 = vst [vmem:[#allocation50_spill] sm:$0xff] %v4607_v22 }
 0x3e0   :  { %1746 = vmatpush1.bf16.msra.mxu0 %v4592_v24  ;;  %1787 = vmatpush1.bf16.msra.mxu1 %v4595_v25  ;;  %v4610_v24 = vld [vmem:[#allocation6 + $0x144] ss:$16 sps:$4 sm:$0xff]   ;;  %v4613_v25 = vld [vmem:[#allocation6 + $0x14c] ss:$16 sps:$4 sm:$0xff]  }
 0x3e1   :  { %1747 = vmatprep.subr.bf16.mxu0 %v4598_v26  ;;  %1788 = vmatprep.subr.bf16.mxu1 %v4601_v18  ;;  %5954 = vst [vmem:[#allocation51_spill] sm:$0xff] %v4610_v24  ;;  %5955 = vst [vmem:[#allocation52_spill] sm:$0xff] %v4613_v25  ;;  %v4616_v26 = vld [vmem:[#allocation6 + $0x140] ss:$16 sps:$4 sm:$0xff]   ;;  %v4619_v18 = vld [vmem:[#allocation6 + $0x148] ss:$16 sps:$4 sm:$0xff]  }
 0x3e2   :  { %5956 = vst [vmem:[#allocation53_spill] sm:$0xff] %v4616_v26  ;;  %5957 = vst [vmem:[#allocation54_spill] sm:$0xff] %v4619_v18 }
 0x3e4   :  { %1748 = vmatpush1.bf16.msra.mxu0 %v4604_v19  ;;  %1789 = vmatpush1.bf16.msra.mxu1 %v4607_v22  ;;  %v4622_v19 = vld [vmem:[#allocation6 + $0x164] ss:$16 sps:$4 sm:$0xff]   ;;  %v4625_v22 = vld [vmem:[#allocation6 + $0x16c] ss:$16 sps:$4 sm:$0xff]  }
 0x3e5   :  { %1749 = vmatprep.subr.bf16.mxu0 %v4610_v24  ;;  %1790 = vmatprep.subr.bf16.mxu1 %v4613_v25  ;;  %5958 = vst [vmem:[#allocation55_spill] sm:$0xff] %v4622_v19  ;;  %5959 = vst [vmem:[#allocation56_spill] sm:$0xff] %v4625_v22  ;;  %v4628_v24 = vld [vmem:[#allocation6 + $0x160] ss:$16 sps:$4 sm:$0xff]   ;;  %v4631_v25 = vld [vmem:[#allocation6 + $0x168] ss:$16 sps:$4 sm:$0xff]  }
 0x3e6   :  { %5960 = vst [vmem:[#allocation57_spill] sm:$0xff] %v4628_v24  ;;  %5961 = vst [vmem:[#allocation58_spill] sm:$0xff] %v4631_v25 }
 0x3e8   :  { %1750 = vmatpush1.bf16.msra.mxu0 %v4616_v26  ;;  %1791 = vmatpush1.bf16.msra.mxu1 %v4619_v18  ;;  %v4634_v26 = vld [vmem:[#allocation6 + $0x184] ss:$16 sps:$4 sm:$0xff]   ;;  %v4637_v18 = vld [vmem:[#allocation6 + $0x18c] ss:$16 sps:$4 sm:$0xff]  }
 0x3e9   :  { %1751 = vmatprep.subr.bf16.mxu0 %v4622_v19  ;;  %1792 = vmatprep.subr.bf16.mxu1 %v4625_v22  ;;  %5962 = vst [vmem:[#allocation59_spill] sm:$0xff] %v4634_v26  ;;  %5963 = vst [vmem:[#allocation60_spill] sm:$0xff] %v4637_v18  ;;  %v4640_v19 = vld [vmem:[#allocation6 + $0x180] ss:$16 sps:$4 sm:$0xff]   ;;  %v4643_v22 = vld [vmem:[#allocation6 + $0x188] ss:$16 sps:$4 sm:$0xff]  }
 0x3ea   :  { %5964 = vst [vmem:[#allocation61_spill] sm:$0xff] %v4640_v19  ;;  %5965 = vst [vmem:[#allocation62_spill] sm:$0xff] %v4643_v22 }
 0x3ec   :  { %1752 = vmatpush1.bf16.msra.mxu0 %v4628_v24  ;;  %1793 = vmatpush1.bf16.msra.mxu1 %v4631_v25  ;;  %v4646_v24 = vld [vmem:[#allocation6 + $0x1a4] ss:$16 sps:$4 sm:$0xff]   ;;  %v4649_v25 = vld [vmem:[#allocation6 + $0x1ac] ss:$16 sps:$4 sm:$0xff]  }
 0x3ed   :  { %1753 = vmatprep.subr.bf16.mxu0 %v4634_v26  ;;  %1794 = vmatprep.subr.bf16.mxu1 %v4637_v18  ;;  %5966 = vst [vmem:[#allocation63_spill] sm:$0xff] %v4646_v24  ;;  %5967 = vst [vmem:[#allocation64_spill] sm:$0xff] %v4649_v25  ;;  %v4652_v26 = vld [vmem:[#allocation6 + $0x1a0] ss:$16 sps:$4 sm:$0xff]   ;;  %v4655_v18 = vld [vmem:[#allocation6 + $0x1a8] ss:$16 sps:$4 sm:$0xff]  }
 0x3ee   :  { %5968 = vst [vmem:[#allocation10_spill] sm:$0xff] %v4652_v26  ;;  %5969 = vst [vmem:[#allocation11_spill] sm:$0xff] %v4655_v18 }
 0x3f0   :  { %1754 = vmatpush1.bf16.msra.mxu0 %v4640_v19  ;;  %1795 = vmatpush1.bf16.msra.mxu1 %v4643_v22  ;;  %v4658_v19 = vld [vmem:[#allocation6 + $0x1c4] ss:$16 sps:$4 sm:$0xff]   ;;  %v4661_v22 = vld [vmem:[#allocation6 + $0x1cc] ss:$16 sps:$4 sm:$0xff]  }
 0x3f1   :  { %1755 = vmatprep.subr.bf16.mxu0 %v4646_v24  ;;  %1796 = vmatprep.subr.bf16.mxu1 %v4649_v25  ;;  %5970 = vst [vmem:[#allocation16_spill] sm:$0xff] %v4658_v19  ;;  %5971 = vst [vmem:[#allocation70_spill] sm:$0xff] %v4661_v22  ;;  %v4664_v24 = vld [vmem:[#allocation6 + $0x1c0] ss:$16 sps:$4 sm:$0xff]   ;;  %v4667_v25 = vld [vmem:[#allocation6 + $0x1c8] ss:$16 sps:$4 sm:$0xff]  }
 0x3f2   :  { %5972 = vst [vmem:[#allocation71_spill] sm:$0xff] %v4664_v24  ;;  %5973 = vst [vmem:[#allocation72_spill] sm:$0xff] %v4667_v25 }
 0x3f4   :  { %1756 = vmatpush1.bf16.msra.mxu0 %v4652_v26  ;;  %1797 = vmatpush1.bf16.msra.mxu1 %v4655_v18  ;;  %v4670_v26 = vld [vmem:[#allocation6 + $0x1e4] ss:$16 sps:$4 sm:$0xff]   ;;  %v4673_v18 = vld [vmem:[#allocation6 + $0x1ec] ss:$16 sps:$4 sm:$0xff]  }
 0x3f5   :  { %1757 = vmatprep.subr.bf16.mxu0 %v4658_v19  ;;  %1798 = vmatprep.subr.bf16.mxu1 %v4661_v22  ;;  %5974 = vst [vmem:[#allocation73_spill] sm:$0xff] %v4670_v26  ;;  %5975 = vst [vmem:[#allocation17_spill] sm:$0xff] %v4673_v18  ;;  %v4676_v19 = vld [vmem:[#allocation6 + $0x1e0] ss:$16 sps:$4 sm:$0xff]   ;;  %v4679_v22 = vld [vmem:[#allocation6 + $0x1e8] ss:$16 sps:$4 sm:$0xff]  }
 0x3f6   :  { %5976 = vst [vmem:[#allocation18_spill] sm:$0xff] %v4676_v19  ;;  %5977 = vst [vmem:[#allocation19_spill] sm:$0xff] %v4679_v22 }
 0x3f8   :  { %1758 = vmatpush1.bf16.msra.mxu0 %v4664_v24  ;;  %1799 = vmatpush1.bf16.msra.mxu1 %v4667_v25 }
 0x3f9   :  { %1759 = vmatprep.subr.bf16.mxu0 %v4670_v26  ;;  %1800 = vmatprep.subr.bf16.mxu1 %v4673_v18 }
 0x3fc   :  { %1760 = vmatpush1.bf16.msra.mxu0 %v4676_v19  ;;  %1801 = vmatpush1.bf16.msra.mxu1 %v4679_v22 }
 0x3fd   :  { %1815 = vmatprep.subr.bf16.mxu0 %v5904_v29  ;;  %1856 = vmatprep.subr.bf16.mxu1 %v5905_v31 }
 0x472   :  { %v1541_v25 = vpop.f32.mrb[36].mxu0  ;;  %v1582_v24 = vpop.f32.mrb[36].mxu1 }
 0x473   :  { %v1542_v26 = vadd.f32 %v1541_v25, %v5906_v34  ;;  %v1543_v17 = vpop.f32.mrb[37].mxu0  ;;  %v1584_v16 = vpop.f32.mrb[37].mxu1  ;;  %v1583_v31 = vadd.f32 %v1582_v24, %v5909_v48  ;;  %v5978_v24 = vld [vmem:[#allocation74_spill] sm:$0xff]  ;;  %v5981_v48 = vld [vmem:[#allocation77_spill] sm:$0xff] }
 0x474   :  { %v1544_v18 = vadd.f32 %v1543_v17, %v5907_v38  ;;  %v1545_v15 = vpop.f32.mrb[38].mxu0  ;;  %v1586_v14 = vpop.f32.mrb[38].mxu1  ;;  %v1585_v29 = vadd.f32 %v1584_v16, %v5908_v56 }
 0x475   :  { %v2912_v13 = vmul.f32 -1.442695, %v1542_v26  ;;  %v1546_v19 = vpop.f32.mrb[39].mxu0  ;;  %v1587_v54 = vpop.f32.mrb[39].mxu1 }
 0x476   :  { %v2913_v53 = vmul.f32 -1.442695, %v1544_v18  ;;  %v2914_v22 = vmul.f32 -1.442695, %v1585_v29 }
 0x477   :  { %3194 = vpow2.f32 %v2912_v13 }
 0x478   :  { %3196 = vpow2.f32 %v2913_v53 }
 0x479   :  { %3198 = vpow2.f32 %v2914_v22  ;;  %v5979_v22 = vld [vmem:[#allocation75_spill] sm:$0xff] }
 0x47a   :  { %3200 = vtanh.f32 %v1583_v31 }
 0x481   :  { %v3195_v52 = vpop.eup %3194 }
 0x482   :  { %v3197_v51 = vpop.eup %3196  ;;  %v1706_v25 = vadd.f32 1.0, %v3195_v52 }
 0x483   :  { %v1712_v34 = vadd.f32 1.0, %v3197_v51  ;;  %v3199_v14 = vpop.eup %3198 }
 0x484   :  { %3202 = vrcp.f32 %v1706_v25  ;;  %v3201_v15 = vpop.eup %3200  ;;  %v1719_v13 = vadd.f32 1.0, %v3199_v14 }
 0x485   :  { %3204 = vrcp.f32 %v1712_v34  ;;  %v5980_v34 = vld [vmem:[#allocation76_spill] sm:$0xff] }
 0x486   :  { %3206 = vrcp.f32 %v1719_v13 }
 0x48e   :  { %v3203_v17 = vpop.eup %3202 }
 0x48f   :  { %v3205_v54 = vpop.eup %3204  ;;  %v1723_v18 = vmul.f32 %v3203_v17, %v3201_v15 }
 0x490   :  { %v1722_v53 = vmul.f32 %v3205_v54, %v4447_v23 }
 0x492   :  { %v1627_v16 = vpop.f32.mrb[40].mxu0  ;;  %v1668_v19 = vpop.f32.mrb[40].mxu1  ;;  %v4689_v26 = vadd.f32 %v1723_v18, %v1722_v53 }
 0x493   :  { %v1675_v52 = vadd.f32 %v1627_v16, %v5978_v24  ;;  %v1677_v29 = vadd.f32 %v1668_v19, %v5979_v22  ;;  %v1629_v51 = vpop.f32.mrb[41].mxu0  ;;  %v1670_v31 = vpop.f32.mrb[41].mxu1 }
 0x494   :  { %v1676_v25 = vadd.f32 %v1629_v51, %v5980_v34  ;;  %v1678_v56 = vadd.f32 %v1670_v31, %v5981_v48  ;;  %v1631_v38 = vpop.f32.mrb[42].mxu0  ;;  %v1672_v15 = vpop.f32.mrb[42].mxu1  ;;  %3208 = vtanh.f32 %v4689_v26 }
 0x495   :  { %v2909_v23 = vmul.f32 -1.442695, %v1675_v52  ;;  %v1632_v14 = vpop.f32.mrb[43].mxu0  ;;  %v1673_v17 = vpop.f32.mrb[43].mxu1 }
 0x496   :  { %v2910_v54 = vmul.f32 -1.442695, %v1676_v25  ;;  %v3207_v18 = vpop.eup %3206  ;;  %v2911_v53 = vmul.f32 -1.442695, %v1678_v56 }
 0x497   :  { %3210 = vpow2.f32 %v2909_v23 }
 0x498   :  { %3212 = vpow2.f32 %v2910_v54 }
 0x499   :  { %3214 = vpow2.f32 %v2911_v53  ;;  %v6015_v53 = vld [vmem:[#allocation54_spill] sm:$0xff] }
 0x49a   :  { %3216 = vtanh.f32 %v1677_v29 }
 0x49e   :  { %v3209_v13 = vpop.eup %3208 }
 0x49f   :  { %v1726_v16 = vmul.f32 %v3209_v13, %v3207_v18  ;;  %v6013_v18 = vld [vmem:[#allocation52_spill] sm:$0xff]  ;;  %v6014_v13 = vld [vmem:[#allocation53_spill] sm:$0xff] }
 0x4a1   :  { %v3211_v19 = vpop.eup %3210  ;;  %v1728_v24 = vpack.c.bf16 %v1726_v16, %v1726_v16  ;;  %v6016_v16 = vld [vmem:[#allocation55_spill] sm:$0xff] }
 0x4a2   :  { %v3213_v22 = vpop.eup %3212  ;;  %v1682_v51 = vadd.f32 1.0, %v3211_v19  ;;  %v6017_v19 = vld [vmem:[#allocation56_spill] sm:$0xff] }
 0x4a3   :  { %v1688_v38 = vadd.f32 1.0, %v3213_v22  ;;  %1761 = vmatprep.mubr.bf16.mxu0 %v1728_v24  ;;  %1802 = vmatprep.mubr.bf16.mxu1 %v1728_v24  ;;  %v3215_v48 = vpop.eup %3214  ;;  %v6018_v24 = vld [vmem:[#allocation57_spill] sm:$0xff]  ;;  %v6019_v22 = vld [vmem:[#allocation58_spill] sm:$0xff] }
 0x4a4   :  { %3218 = vrcp.f32 %v1682_v51  ;;  %v3217_v52 = vpop.eup %3216  ;;  %v1695_v15 = vadd.f32 1.0, %v3215_v48  ;;  %v6020_v51 = vld [vmem:[#allocation59_spill] sm:$0xff]  ;;  %v6022_v48 = vld [vmem:[#allocation61_spill] sm:$0xff] }
 0x4a5   :  { %3220 = vrcp.f32 %v1688_v38  ;;  %v6021_v38 = vld [vmem:[#allocation60_spill] sm:$0xff] }
 0x4a6   :  { %3222 = vrcp.f32 %v1695_v15  ;;  %v6027_v15 = vld [vmem:[#allocation11_spill] sm:$0xff] }
 0x4ae   :  { %v3219_v31 = vpop.eup %3218 }
 0x4af   :  { %v3221_v34 = vpop.eup %3220  ;;  %v1699_v25 = vmul.f32 %v3219_v31, %v3217_v52  ;;  %v6023_v52 = vld [vmem:[#allocation62_spill] sm:$0xff]  ;;  %v6024_v31 = vld [vmem:[#allocation63_spill] sm:$0xff] }
 0x4b0   :  { %v1698_v56 = vmul.f32 %v3221_v34, %v4455_v21  ;;  %v3223_v14 = vpop.eup %3222  ;;  %v6003_v21 = vld [vmem:[#allocation42_spill] sm:$0xff]  ;;  %v6025_v34 = vld [vmem:[#allocation64_spill] sm:$0xff] }
 0x4b2   :  { %v4697_v23 = vadd.f32 %v1699_v25, %v1698_v56  ;;  %v6026_v25 = vld [vmem:[#allocation10_spill] sm:$0xff]  ;;  %v6028_v56 = vld [vmem:[#allocation16_spill] sm:$0xff] }
 0x4b4   :  { %3224 = vtanh.f32 %v4697_v23 }
 0x4be   :  { %v3225_v29 = vpop.eup %3224 }
 0x4bf   :  { %v1702_v17 = vmul.f32 %v3225_v29, %v3223_v14  ;;  %v6029_v14 = vld [vmem:[#allocation70_spill] sm:$0xff]  ;;  %v6030_v29 = vld [vmem:[#allocation71_spill] sm:$0xff] }
 0x4c1   :  { %v1727_v54 = vpack.c.bf16 %v1702_v17, %v1702_v17  ;;  %v6031_v17 = vld [vmem:[#allocation72_spill] sm:$0xff] }
 0x4c3   :  { %1762 = vmatmul.mubr.bf16.vlgmr.msra.gmra.mrb[44].mxu0 %v1727_v54  ;;  %1803 = vmatmul.mubr.bf16.vlgmr.msra.gmra.mrb[44].mxu1 %v1727_v54 }
 0x4c4   :  { %1816 = vmatpush1.bf16.msra.mxu0 %v4282_v63  ;;  %1857 = vmatpush1.bf16.msra.mxu1 %v4285_v8  ;;  %v5982_v63 = vld [vmem:[#allocation26_spill] sm:$0xff]  ;;  %v5983_v8 = vld [vmem:[#allocation27_spill] sm:$0xff] }
 0x4c5   :  { %1817 = vmatprep.subr.bf16.mxu0 %v4288_v55  ;;  %1858 = vmatprep.subr.bf16.mxu1 %v4291_v30  ;;  %v5984_v55 = vld [vmem:[#allocation28_spill] sm:$0xff]  ;;  %v5985_v30 = vld [vmem:[#allocation29_spill] sm:$0xff] }
 0x4c6   :  { %1847 = vmatprep.mubr.bf16.mxu0 %v5799_v59  ;;  %1888 = vmatprep.mubr.bf16.mxu1 %v5799_v59 }
 0x4c8   :  { %1818 = vmatpush1.bf16.msra.mxu0 %v4296_v57  ;;  %1859 = vmatpush1.bf16.msra.mxu1 %v4299_v61  ;;  %v5986_v57 = vld [vmem:[#allocation30_spill] sm:$0xff]  ;;  %v5987_v61 = vld [vmem:[#allocation31_spill] sm:$0xff] }
 0x4c9   :  { %1819 = vmatprep.subr.bf16.mxu0 %v4302_v58  ;;  %1860 = vmatprep.subr.bf16.mxu1 %v4305_v4  ;;  %v5988_v58 = vld [vmem:[#allocation32_spill] sm:$0xff]  ;;  %v5989_v4 = vld [vmem:[#allocation33_spill] sm:$0xff] }
 0x4cc   :  { %1820 = vmatpush1.bf16.msra.mxu0 %v4308_v39  ;;  %1861 = vmatpush1.bf16.msra.mxu1 %v4311_v20  ;;  %v5990_v39 = vld [vmem:[#allocation34_spill] sm:$0xff]  ;;  %v5991_v20 = vld [vmem:[#allocation35_spill] sm:$0xff] }
 0x4cd   :  { %1821 = vmatprep.subr.bf16.mxu0 %v4314_v1  ;;  %1862 = vmatprep.subr.bf16.mxu1 %v4317_v10  ;;  %v5992_v1 = vld [vmem:[#allocation36_spill] sm:$0xff]  ;;  %v5993_v10 = vld [vmem:[#allocation37_spill] sm:$0xff] }
 0x4d0   :  { %1822 = vmatpush1.bf16.msra.mxu0 %v4320_v9  ;;  %1863 = vmatpush1.bf16.msra.mxu1 %v4323_v12  ;;  %v5994_v9 = vld [vmem:[#allocation38_spill] sm:$0xff]  ;;  %v5995_v12 = vld [vmem:[#allocation39_spill] sm:$0xff] }
 0x4d1   :  { %1823 = vmatprep.subr.bf16.mxu0 %v4326_v11  ;;  %1864 = vmatprep.subr.bf16.mxu1 %v5915_v60  ;;  %v5996_v11 = vld [vmem:[#allocation40_spill] sm:$0xff]  ;;  %v6004_v60 = vld [vmem:[#allocation43_spill] sm:$0xff] }
 0x4d4   :  { %1824 = vmatpush1.bf16.msra.mxu0 %v5916_v27  ;;  %1865 = vmatpush1.bf16.msra.mxu1 %v5917_v28  ;;  %v6005_v27 = vld [vmem:[#allocation44_spill] sm:$0xff]  ;;  %v6006_v28 = vld [vmem:[#allocation45_spill] sm:$0xff] }
 0x4d5   :  { %1825 = vmatprep.subr.bf16.mxu0 %v5918_v32  ;;  %1866 = vmatprep.subr.bf16.mxu1 %v5919_v33  ;;  %v6007_v32 = vld [vmem:[#allocation46_spill] sm:$0xff]  ;;  %v6008_v33 = vld [vmem:[#allocation47_spill] sm:$0xff] }
 0x4d8   :  { %1826 = vmatpush1.bf16.msra.mxu0 %v5920_v35  ;;  %1867 = vmatpush1.bf16.msra.mxu1 %v5921_v36  ;;  %v6009_v35 = vld [vmem:[#allocation48_spill] sm:$0xff]  ;;  %v6010_v36 = vld [vmem:[#allocation49_spill] sm:$0xff] }
 0x4d9   :  { %1827 = vmatprep.subr.bf16.mxu0 %v5922_v37  ;;  %1868 = vmatprep.subr.bf16.mxu1 %v5923_v40  ;;  %v6011_v37 = vld [vmem:[#allocation50_spill] sm:$0xff]  ;;  %v6012_v40 = vld [vmem:[#allocation51_spill] sm:$0xff] }
 0x4dc   :  { %1828 = vmatpush1.bf16.msra.mxu0 %v4356_v2  ;;  %1869 = vmatpush1.bf16.msra.mxu1 %v4359_v6  ;;  %v6000_v2 = vld [vmem:[#allocation68_spill] sm:$0xff]  ;;  %v6001_v6 = vld [vmem:[#allocation69_spill] sm:$0xff] }
 0x4dd   :  { %1829 = vmatprep.subr.bf16.mxu0 %v4362_v0  ;;  %1870 = vmatprep.subr.bf16.mxu1 %v4365_v7  ;;  %v5997_v7 = vld [vmem:[#allocation65_spill] sm:$0xff] }
 0x4de   :  { %v6002_v0 = vld [vmem:[#allocation41_spill] sm:$0xff] }
 0x4e0   :  { %1830 = vmatpush1.bf16.msra.mxu0 %v4368_v3  ;;  %1871 = vmatpush1.bf16.msra.mxu1 %v4371_v62  ;;  %v5998_v3 = vld [vmem:[#allocation66_spill] sm:$0xff]  ;;  %v5999_v62 = vld [vmem:[#allocation67_spill] sm:$0xff] }
 0x4e1   :  { %1951 = vmatprep.subr.bf16.mxu0 %v4490_v41  ;;  %1992 = vmatprep.subr.bf16.mxu1 %v4493_v42 }
 0x4e3   :  { %1848 = vmatmul.mubr.bf16.vlgmr.msra.gmra.mrb[48].mxu0 %v1727_v54  ;;  %1889 = vmatmul.mubr.bf16.vlgmr.msra.gmra.mrb[48].mxu1 %v1727_v54  ;;  %v6032_v54 = vld [vmem:[#allocation73_spill] sm:$0xff] }
 0x4e4   :  { %1952 = vmatpush1.bf16.msra.mxu0 %v4496_v43  ;;  %1993 = vmatpush1.bf16.msra.mxu1 %v4499_v44 }
 0x4e5   :  { %1953 = vmatprep.subr.bf16.mxu0 %v4502_v45  ;;  %1994 = vmatprep.subr.bf16.mxu1 %v4505_v5 }
 0x4e8   :  { %1954 = vmatpush1.bf16.msra.mxu0 %v4508_v46  ;;  %1995 = vmatpush1.bf16.msra.mxu1 %v4511_v47 }
 0x4e9   :  { %1955 = vmatprep.subr.bf16.mxu0 %v4514_v49  ;;  %1996 = vmatprep.subr.bf16.mxu1 %v4517_v50 }
 0x4ec   :  { %1956 = vmatpush1.bf16.msra.mxu0 %v5982_v63  ;;  %1997 = vmatpush1.bf16.msra.mxu1 %v5983_v8 }
 0x4ed   :  { %1957 = vmatprep.subr.bf16.mxu0 %v5984_v55  ;;  %1998 = vmatprep.subr.bf16.mxu1 %v5985_v30 }
 0x4f0   :  { %1958 = vmatpush1.bf16.msra.mxu0 %v5986_v57  ;;  %1999 = vmatpush1.bf16.msra.mxu1 %v5987_v61 }
 0x4f1   :  { %1959 = vmatprep.subr.bf16.mxu0 %v5988_v58  ;;  %2000 = vmatprep.subr.bf16.mxu1 %v5989_v4 }
 0x4f4   :  { %1960 = vmatpush1.bf16.msra.mxu0 %v5990_v39  ;;  %2001 = vmatpush1.bf16.msra.mxu1 %v5991_v20 }
 0x4f5   :  { %1961 = vmatprep.subr.bf16.mxu0 %v5992_v1  ;;  %2002 = vmatprep.subr.bf16.mxu1 %v5993_v10 }
 0x4f8   :  { %1962 = vmatpush1.bf16.msra.mxu0 %v5994_v9  ;;  %2003 = vmatpush1.bf16.msra.mxu1 %v5995_v12 }
 0x4f9   :  { %1963 = vmatprep.subr.bf16.mxu0 %v5996_v11  ;;  %2004 = vmatprep.subr.bf16.mxu1 %v5997_v7 }
 0x4fc   :  { %1964 = vmatpush1.bf16.msra.mxu0 %v5998_v3  ;;  %2005 = vmatpush1.bf16.msra.mxu1 %v5999_v62 }
 0x4fd   :  { %1965 = vmatprep.subr.bf16.mxu0 %v6000_v2  ;;  %2006 = vmatprep.subr.bf16.mxu1 %v6001_v6 }
 0x500   :  { %1966 = vmatpush1.bf16.msra.mxu0 %v6002_v0  ;;  %2007 = vmatpush1.bf16.msra.mxu1 %v6003_v21 }
 0x501   :  { %1967 = vmatprep.subr.bf16.mxu0 %v6004_v60  ;;  %2008 = vmatprep.subr.bf16.mxu1 %v6005_v27 }
 0x504   :  { %1968 = vmatpush1.bf16.msra.mxu0 %v6006_v28  ;;  %2009 = vmatpush1.bf16.msra.mxu1 %v6007_v32 }
 0x505   :  { %1969 = vmatprep.subr.bf16.mxu0 %v6008_v33  ;;  %2010 = vmatprep.subr.bf16.mxu1 %v6009_v35 }
 0x508   :  { %1970 = vmatpush1.bf16.msra.mxu0 %v6010_v36  ;;  %2011 = vmatpush1.bf16.msra.mxu1 %v6011_v37 }
 0x509   :  { %1971 = vmatprep.subr.bf16.mxu0 %v6012_v40  ;;  %2012 = vmatprep.subr.bf16.mxu1 %v6013_v18 }
 0x50c   :  { %1972 = vmatpush1.bf16.msra.mxu0 %v6014_v13  ;;  %2013 = vmatpush1.bf16.msra.mxu1 %v6015_v53 }
 0x50d   :  { %1973 = vmatprep.subr.bf16.mxu0 %v6016_v16  ;;  %2014 = vmatprep.subr.bf16.mxu1 %v6017_v19 }
 0x510   :  { %1974 = vmatpush1.bf16.msra.mxu0 %v6018_v24  ;;  %2015 = vmatpush1.bf16.msra.mxu1 %v6019_v22 }
 0x511   :  { %1975 = vmatprep.subr.bf16.mxu0 %v6020_v51  ;;  %2016 = vmatprep.subr.bf16.mxu1 %v6021_v38  ;;  %v6039_v38 = vld [vmem:[#allocation13_spill] sm:$0xff] }
 0x514   :  { %1976 = vmatpush1.bf16.msra.mxu0 %v6022_v48  ;;  %2017 = vmatpush1.bf16.msra.mxu1 %v6023_v52  ;;  %v6033_v48 = vld [vmem:[#allocation17_spill] sm:$0xff]  ;;  %v6034_v52 = vld [vmem:[#allocation18_spill] sm:$0xff] }
 0x515   :  { %1977 = vmatprep.subr.bf16.mxu0 %v6024_v31  ;;  %2018 = vmatprep.subr.bf16.mxu1 %v6025_v34  ;;  %v6035_v31 = vld [vmem:[#allocation19_spill] sm:$0xff]  ;;  %v4796_v34 = vld [vmem:[#allocation4 + $0x4] ss:$16 sps:$4 sm:$0xff]  }
 0x516   :  { %6036 = vst [vmem:[#allocation20_spill] sm:$0xff] %v4796_v34 }
 0x518   :  { %1978 = vmatpush1.bf16.msra.mxu0 %v6026_v25  ;;  %2019 = vmatpush1.bf16.msra.mxu1 %v6027_v15  ;;  %v4799_v15 = vld [vmem:[#allocation4 + $0xc] ss:$16 sps:$4 sm:$0xff]  }
 0x519   :  { %1979 = vmatprep.subr.bf16.mxu0 %v6028_v56  ;;  %2020 = vmatprep.subr.bf16.mxu1 %v6029_v14  ;;  %6037 = vst [vmem:[#allocation21_spill] sm:$0xff] %v4799_v15  ;;  %v6038_v56 = vld [vmem:[#allocation12_spill] sm:$0xff] }
 0x51c   :  { %1980 = vmatpush1.bf16.msra.mxu0 %v6030_v29  ;;  %2021 = vmatpush1.bf16.msra.mxu1 %v6031_v17 }
 0x51d   :  { %1981 = vmatprep.subr.bf16.mxu0 %v6032_v54  ;;  %2022 = vmatprep.subr.bf16.mxu1 %v6033_v48 }
 0x520   :  { %1982 = vmatpush1.bf16.msra.mxu0 %v6034_v52  ;;  %2023 = vmatpush1.bf16.msra.mxu1 %v6035_v31 }
 0x521   :  { %2037 = vmatprep.subr.bf16.mxu0 %v4796_v34  ;;  %2078 = vmatprep.subr.bf16.mxu1 %v4799_v15  ;;  %v6040_v34 = vld [vmem:[#allocation14_spill] sm:$0xff]  ;;  %v6041_v15 = vld [vmem:[#allocation15_spill] sm:$0xff] }
 0x596   :  { %v1763_v14 = vpop.f32.mrb[44].mxu0  ;;  %v1804_v29 = vpop.f32.mrb[44].mxu1 }
 0x597   :  { %v1764_v17 = vadd.f32 %v1763_v14, %v6038_v56  ;;  %v1765_v25 = vpop.f32.mrb[45].mxu0  ;;  %v1806_v54 = vpop.f32.mrb[45].mxu1  ;;  %v1805_v13 = vadd.f32 %v1804_v29, %v6041_v15  ;;  %v6042_v29 = vld [vmem:[#allocation78_spill] sm:$0xff]  ;;  %v6045_v15 = vld [vmem:[#allocation81_spill] sm:$0xff] }
 0x598   :  { %v1766_v48 = vadd.f32 %v1765_v25, %v6039_v38  ;;  %v1767_v51 = vpop.f32.mrb[46].mxu0  ;;  %v1808_v52 = vpop.f32.mrb[46].mxu1  ;;  %v1807_v16 = vadd.f32 %v1806_v54, %v6040_v34 }
 0x599   :  { %v2918_v22 = vmul.f32 -1.442695, %v1764_v17  ;;  %v1768_v31 = vpop.f32.mrb[47].mxu0  ;;  %v1809_v24 = vpop.f32.mrb[47].mxu1 }
 0x59a   :  { %v2919_v19 = vmul.f32 -1.442695, %v1766_v48  ;;  %v2920_v53 = vmul.f32 -1.442695, %v1807_v16 }
 0x59b   :  { %3226 = vpow2.f32 %v2918_v22 }
 0x59c   :  { %3228 = vpow2.f32 %v2919_v19 }
 0x59d   :  { %3230 = vpow2.f32 %v2920_v53  ;;  %v6043_v53 = vld [vmem:[#allocation79_spill] sm:$0xff] }
 0x59e   :  { %3232 = vtanh.f32 %v1805_v13 }
 0x5a5   :  { %v3227_v18 = vpop.eup %3226 }
 0x5a6   :  { %v3229_v40 = vpop.eup %3228  ;;  %v1928_v14 = vadd.f32 1.0, %v3227_v18 }
 0x5a7   :  { %v1934_v56 = vadd.f32 1.0, %v3229_v40  ;;  %v3231_v51 = vpop.eup %3230 }
 0x5a8   :  { %3234 = vrcp.f32 %v1928_v14  ;;  %v3233_v52 = vpop.eup %3232  ;;  %v1941_v22 = vadd.f32 1.0, %v3231_v51 }
 0x5a9   :  { %3236 = vrcp.f32 %v1934_v56  ;;  %v6044_v56 = vld [vmem:[#allocation80_spill] sm:$0xff] }
 0x5aa   :  { %3238 = vrcp.f32 %v1941_v22 }
 0x5b2   :  { %v3235_v31 = vpop.eup %3234 }
 0x5b3   :  { %v3237_v24 = vpop.eup %3236  ;;  %v1945_v48 = vmul.f32 %v3235_v31, %v3233_v52 }
 0x5b4   :  { %v1944_v19 = vmul.f32 %v3237_v24, %v4689_v26 }
 0x5b6   :  { %v1849_v25 = vpop.f32.mrb[48].mxu0  ;;  %v1890_v16 = vpop.f32.mrb[48].mxu1  ;;  %v4807_v17 = vadd.f32 %v1945_v48, %v1944_v19 }
 0x5b7   :  { %v1897_v18 = vadd.f32 %v1849_v25, %v6042_v29  ;;  %v1899_v13 = vadd.f32 %v1890_v16, %v6043_v53  ;;  %v1851_v40 = vpop.f32.mrb[49].mxu0  ;;  %v1892_v54 = vpop.f32.mrb[49].mxu1 }
 0x5b8   :  { %v1898_v14 = vadd.f32 %v1851_v40, %v6044_v56  ;;  %v1900_v34 = vadd.f32 %v1892_v54, %v6045_v15  ;;  %v1853_v38 = vpop.f32.mrb[50].mxu0  ;;  %v1894_v52 = vpop.f32.mrb[50].mxu1  ;;  %3240 = vtanh.f32 %v4807_v17 }
 0x5b9   :  { %v2915_v26 = vmul.f32 -1.442695, %v1897_v18  ;;  %v1854_v51 = vpop.f32.mrb[51].mxu0  ;;  %v1895_v31 = vpop.f32.mrb[51].mxu1 }
 0x5ba   :  { %v2916_v24 = vmul.f32 -1.442695, %v1898_v14  ;;  %v3239_v48 = vpop.eup %3238  ;;  %v2917_v19 = vmul.f32 -1.442695, %v1900_v34 }
 0x5bb   :  { %3242 = vpow2.f32 %v2915_v26 }
 0x5bc   :  { %3244 = vpow2.f32 %v2916_v24 }
 0x5bd   :  { %3246 = vpow2.f32 %v2917_v19  ;;  %v4831_v19 = vld [vmem:[#allocation4 + $0x2c] ss:$16 sps:$4 sm:$0xff]  }
 0x5be   :  { %3248 = vtanh.f32 %v1899_v13 }
 0x5c2   :  { %v3241_v22 = vpop.eup %3240 }
 0x5c3   :  { %v1948_v25 = vmul.f32 %v3241_v22, %v3239_v48  ;;  %v4822_v48 = vld [vmem:[#allocation4] ss:$16 sps:$4 sm:$0xff]   ;;  %v4825_v22 = vld [vmem:[#allocation4 + $0x8] ss:$16 sps:$4 sm:$0xff]  }
 0x5c5   :  { %v3243_v16 = vpop.eup %3242  ;;  %v1950_v29 = vpack.c.bf16 %v1948_v25, %v1948_v25  ;;  %v4836_v25 = vld [vmem:[#allocation4 + $0x20] ss:$16 sps:$4 sm:$0xff]  }
 0x5c6   :  { %v3245_v53 = vpop.eup %3244  ;;  %v1904_v40 = vadd.f32 1.0, %v3243_v16  ;;  %v4839_v16 = vld [vmem:[#allocation4 + $0x28] ss:$16 sps:$4 sm:$0xff]  }
 0x5c7   :  { %v1910_v38 = vadd.f32 1.0, %v3245_v53  ;;  %1983 = vmatprep.mubr.bf16.mxu0 %v1950_v29  ;;  %2024 = vmatprep.mubr.bf16.mxu1 %v1950_v29  ;;  %v3247_v15 = vpop.eup %3246  ;;  %v4842_v29 = vld [vmem:[#allocation4 + $0x44] ss:$16 sps:$4 sm:$0xff]   ;;  %v4845_v53 = vld [vmem:[#allocation4 + $0x4c] ss:$16 sps:$4 sm:$0xff]  }
 0x5c8   :  { %3250 = vrcp.f32 %v1904_v40  ;;  %v3249_v18 = vpop.eup %3248  ;;  %v1917_v52 = vadd.f32 1.0, %v3247_v15  ;;  %v4848_v40 = vld [vmem:[#allocation4 + $0x40] ss:$16 sps:$4 sm:$0xff]   ;;  %v4854_v15 = vld [vmem:[#allocation4 + $0x64] ss:$16 sps:$4 sm:$0xff]  }
 0x5c9   :  { %3252 = vrcp.f32 %v1910_v38  ;;  %v4851_v38 = vld [vmem:[#allocation4 + $0x48] ss:$16 sps:$4 sm:$0xff]  }
 0x5ca   :  { %3254 = vrcp.f32 %v1917_v52  ;;  %v4869_v52 = vld [vmem:[#allocation4 + $0x8c] ss:$16 sps:$4 sm:$0xff]  }
 0x5cb   :  { %6047 = vst [vmem:[#allocation23_spill] sm:$0xff] %v4869_v52 }
 0x5d2   :  { %v3251_v54 = vpop.eup %3250 }
 0x5d3   :  { %v3253_v56 = vpop.eup %3252  ;;  %v1921_v14 = vmul.f32 %v3251_v54, %v3249_v18  ;;  %v4857_v18 = vld [vmem:[#allocation4 + $0x6c] ss:$16 sps:$4 sm:$0xff]   ;;  %v4860_v54 = vld [vmem:[#allocation4 + $0x60] ss:$16 sps:$4 sm:$0xff]  }
 0x5d4   :  { %v1920_v34 = vmul.f32 %v3253_v56, %v4697_v23  ;;  %v3255_v51 = vpop.eup %3254  ;;  %v4828_v23 = vld [vmem:[#allocation4 + $0x24] ss:$16 sps:$4 sm:$0xff]   ;;  %v4863_v56 = vld [vmem:[#allocation4 + $0x68] ss:$16 sps:$4 sm:$0xff]  }
 0x5d6   :  { %v4815_v26 = vadd.f32 %v1921_v14, %v1920_v34  ;;  %v4866_v14 = vld [vmem:[#allocation4 + $0x84] ss:$16 sps:$4 sm:$0xff]   ;;  %v4872_v34 = vld [vmem:[#allocation4 + $0x80] ss:$16 sps:$4 sm:$0xff]  }
 0x5d7   :  { %6046 = vst [vmem:[#allocation22_spill] sm:$0xff] %v4866_v14  ;;  %6048 = vst [vmem:[#allocation24_spill] sm:$0xff] %v4872_v34 }
 0x5d8   :  { %3256 = vtanh.f32 %v4815_v26 }
 0x5e2   :  { %v3257_v13 = vpop.eup %3256 }
 0x5e3   :  { %v1924_v31 = vmul.f32 %v3257_v13, %v3255_v51  ;;  %v4875_v51 = vld [vmem:[#allocation4 + $0x88] ss:$16 sps:$4 sm:$0xff]   ;;  %v4878_v13 = vld [vmem:[#allocation4 + $0xa4] ss:$16 sps:$4 sm:$0xff]  }
 0x5e4   :  { %6049 = vst [vmem:[#allocation25_spill] sm:$0xff] %v4875_v51  ;;  %6050 = vst [vmem:[#allocation74_spill] sm:$0xff] %v4878_v13 }
 0x5e5   :  { %v4818_v24 = vpack.c.bf16 %v1924_v31, %v1924_v31  ;;  %v4881_v31 = vld [vmem:[#allocation4 + $0xac] ss:$16 sps:$4 sm:$0xff]  }
 0x5e6   :  { %6051 = vst [vmem:[#allocation75_spill] sm:$0xff] %v4881_v31 }
 0x5e7   :  { %1984 = vmatmul.mubr.bf16.vlgmr.msra.gmra.mrb[52].mxu0 %v4818_v24  ;;  %2025 = vmatmul.mubr.bf16.vlgmr.msra.gmra.mrb[52].mxu1 %v4818_v24 }
 0x5e8   :  { %2038 = vmatpush1.bf16.msra.mxu0 %v4822_v48  ;;  %2079 = vmatpush1.bf16.msra.mxu1 %v4825_v22 }
 0x5e9   :  { %2039 = vmatprep.subr.bf16.mxu0 %v4828_v23  ;;  %2080 = vmatprep.subr.bf16.mxu1 %v4831_v19 }
 0x5ea   :  { %2069 = vmatprep.mubr.bf16.mxu0 %v5799_v59  ;;  %2110 = vmatprep.mubr.bf16.mxu1 %v5799_v59 }
 0x5ec   :  { %2040 = vmatpush1.bf16.msra.mxu0 %v4836_v25  ;;  %2081 = vmatpush1.bf16.msra.mxu1 %v4839_v16 }
 0x5ed   :  { %2041 = vmatprep.subr.bf16.mxu0 %v4842_v29  ;;  %2082 = vmatprep.subr.bf16.mxu1 %v4845_v53 }
 0x5f0   :  { %2042 = vmatpush1.bf16.msra.mxu0 %v4848_v40  ;;  %2083 = vmatpush1.bf16.msra.mxu1 %v4851_v38 }
 0x5f1   :  { %2043 = vmatprep.subr.bf16.mxu0 %v4854_v15  ;;  %2084 = vmatprep.subr.bf16.mxu1 %v4857_v18 }
 0x5f4   :  { %2044 = vmatpush1.bf16.msra.mxu0 %v4860_v54  ;;  %2085 = vmatpush1.bf16.msra.mxu1 %v4863_v56 }
 0x5f5   :  { %2045 = vmatprep.subr.bf16.mxu0 %v4866_v14  ;;  %2086 = vmatprep.subr.bf16.mxu1 %v4869_v52  ;;  %v4884_v14 = vld [vmem:[#allocation4 + $0xa0] ss:$16 sps:$4 sm:$0xff]   ;;  %v4887_v52 = vld [vmem:[#allocation4 + $0xa8] ss:$16 sps:$4 sm:$0xff]  }
 0x5f6   :  { %6052 = vst [vmem:[#allocation76_spill] sm:$0xff] %v4884_v14  ;;  %6053 = vst [vmem:[#allocation77_spill] sm:$0xff] %v4887_v52 }
 0x5f8   :  { %2046 = vmatpush1.bf16.msra.mxu0 %v4872_v34  ;;  %2087 = vmatpush1.bf16.msra.mxu1 %v4875_v51  ;;  %v4890_v34 = vld [vmem:[#allocation4 + $0xc4] ss:$16 sps:$4 sm:$0xff]   ;;  %v4893_v51 = vld [vmem:[#allocation4 + $0xcc] ss:$16 sps:$4 sm:$0xff]  }
 0x5f9   :  { %2047 = vmatprep.subr.bf16.mxu0 %v4878_v13  ;;  %2088 = vmatprep.subr.bf16.mxu1 %v4881_v31  ;;  %6054 = vst [vmem:[#allocation26_spill] sm:$0xff] %v4890_v34  ;;  %6055 = vst [vmem:[#allocation27_spill] sm:$0xff] %v4893_v51  ;;  %v4896_v13 = vld [vmem:[#allocation4 + $0xc0] ss:$16 sps:$4 sm:$0xff]   ;;  %v4899_v31 = vld [vmem:[#allocation4 + $0xc8] ss:$16 sps:$4 sm:$0xff]  }
 0x5fc   :  { %2048 = vmatpush1.bf16.msra.mxu0 %v4884_v14  ;;  %2089 = vmatpush1.bf16.msra.mxu1 %v4887_v52  ;;  %v4902_v14 = vld [vmem:[#allocation4 + $0xe4] ss:$16 sps:$4 sm:$0xff]   ;;  %v4905_v52 = vld [vmem:[#allocation4 + $0xec] ss:$16 sps:$4 sm:$0xff]  }
 0x5fd   :  { %2049 = vmatprep.subr.bf16.mxu0 %v4890_v34  ;;  %2090 = vmatprep.subr.bf16.mxu1 %v4893_v51  ;;  %v4908_v34 = vld [vmem:[#allocation4 + $0xe0] ss:$16 sps:$4 sm:$0xff]   ;;  %v4911_v51 = vld [vmem:[#allocation4 + $0xe8] ss:$16 sps:$4 sm:$0xff]  }
 0x600   :  { %2050 = vmatpush1.bf16.msra.mxu0 %v4896_v13  ;;  %2091 = vmatpush1.bf16.msra.mxu1 %v4899_v31 }
 0x601   :  { %2051 = vmatprep.subr.bf16.mxu0 %v4902_v14  ;;  %2092 = vmatprep.subr.bf16.mxu1 %v4905_v52 }
 0x604   :  { %2052 = vmatpush1.bf16.msra.mxu0 %v4908_v34  ;;  %2093 = vmatpush1.bf16.msra.mxu1 %v4911_v51 }
 0x605   :  { %2173 = vmatprep.subr.bf16.mxu0 %v4490_v41  ;;  %2214 = vmatprep.subr.bf16.mxu1 %v4493_v42  ;;  %v6056_v41 = vld [vmem:[#allocation51_spill] sm:$0xff]  ;;  %v6057_v42 = vld [vmem:[#allocation52_spill] sm:$0xff] }
 0x607   :  { %2070 = vmatmul.mubr.bf16.vlgmr.msra.gmra.mrb[56].mxu0 %v4818_v24  ;;  %2111 = vmatmul.mubr.bf16.vlgmr.msra.gmra.mrb[56].mxu1 %v4818_v24  ;;  %v6084_v24 = vld [vmem:[#allocation14_spill] sm:$0xff] }
 0x608   :  { %2174 = vmatpush1.bf16.msra.mxu0 %v4496_v43  ;;  %2215 = vmatpush1.bf16.msra.mxu1 %v4499_v44  ;;  %v6058_v43 = vld [vmem:[#allocation53_spill] sm:$0xff]  ;;  %v6059_v44 = vld [vmem:[#allocation54_spill] sm:$0xff] }
 0x609   :  { %2175 = vmatprep.subr.bf16.mxu0 %v4502_v45  ;;  %2216 = vmatprep.subr.bf16.mxu1 %v4505_v5  ;;  %v6060_v45 = vld [vmem:[#allocation55_spill] sm:$0xff]  ;;  %v6061_v5 = vld [vmem:[#allocation56_spill] sm:$0xff] }
 0x60c   :  { %2176 = vmatpush1.bf16.msra.mxu0 %v4508_v46  ;;  %2217 = vmatpush1.bf16.msra.mxu1 %v4511_v47  ;;  %v6062_v46 = vld [vmem:[#allocation57_spill] sm:$0xff]  ;;  %v6063_v47 = vld [vmem:[#allocation58_spill] sm:$0xff] }
 0x60d   :  { %2177 = vmatprep.subr.bf16.mxu0 %v4514_v49  ;;  %2218 = vmatprep.subr.bf16.mxu1 %v4517_v50  ;;  %v6064_v49 = vld [vmem:[#allocation59_spill] sm:$0xff]  ;;  %v6065_v50 = vld [vmem:[#allocation60_spill] sm:$0xff] }
 0x610   :  { %2178 = vmatpush1.bf16.msra.mxu0 %v5982_v63  ;;  %2219 = vmatpush1.bf16.msra.mxu1 %v5983_v8  ;;  %v6066_v63 = vld [vmem:[#allocation61_spill] sm:$0xff]  ;;  %v6067_v8 = vld [vmem:[#allocation62_spill] sm:$0xff] }
 0x611   :  { %2179 = vmatprep.subr.bf16.mxu0 %v5984_v55  ;;  %2220 = vmatprep.subr.bf16.mxu1 %v5985_v30  ;;  %v6068_v55 = vld [vmem:[#allocation63_spill] sm:$0xff]  ;;  %v6069_v30 = vld [vmem:[#allocation64_spill] sm:$0xff] }
 0x614   :  { %2180 = vmatpush1.bf16.msra.mxu0 %v5986_v57  ;;  %2221 = vmatpush1.bf16.msra.mxu1 %v5987_v61  ;;  %v6070_v57 = vld [vmem:[#allocation10_spill] sm:$0xff]  ;;  %v6071_v61 = vld [vmem:[#allocation11_spill] sm:$0xff] }
 0x615   :  { %2181 = vmatprep.subr.bf16.mxu0 %v5988_v58  ;;  %2222 = vmatprep.subr.bf16.mxu1 %v5989_v4  ;;  %v6072_v58 = vld [vmem:[#allocation16_spill] sm:$0xff]  ;;  %v6073_v4 = vld [vmem:[#allocation70_spill] sm:$0xff] }
 0x618   :  { %2182 = vmatpush1.bf16.msra.mxu0 %v5990_v39  ;;  %2223 = vmatpush1.bf16.msra.mxu1 %v5991_v20  ;;  %v6074_v39 = vld [vmem:[#allocation71_spill] sm:$0xff]  ;;  %v6075_v20 = vld [vmem:[#allocation72_spill] sm:$0xff] }
 0x619   :  { %2183 = vmatprep.subr.bf16.mxu0 %v5992_v1  ;;  %2224 = vmatprep.subr.bf16.mxu1 %v5993_v10  ;;  %v6076_v1 = vld [vmem:[#allocation73_spill] sm:$0xff] }
 0x61a   :  { %v6077_v10 = vld [vmem:[#allocation17_spill] sm:$0xff] }
 0x61c   :  { %2184 = vmatpush1.bf16.msra.mxu0 %v5994_v9  ;;  %2225 = vmatpush1.bf16.msra.mxu1 %v5995_v12  ;;  %v6078_v9 = vld [vmem:[#allocation18_spill] sm:$0xff]  ;;  %v6079_v12 = vld [vmem:[#allocation19_spill] sm:$0xff] }
 0x61d   :  { %2185 = vmatprep.subr.bf16.mxu0 %v5996_v11  ;;  %2226 = vmatprep.subr.bf16.mxu1 %v5997_v7  ;;  %v6080_v11 = vld [vmem:[#allocation20_spill] sm:$0xff]  ;;  %v6081_v7 = vld [vmem:[#allocation21_spill] sm:$0xff] }
 0x620   :  { %2186 = vmatpush1.bf16.msra.mxu0 %v5998_v3  ;;  %2227 = vmatpush1.bf16.msra.mxu1 %v5999_v62 }
 0x621   :  { %2187 = vmatprep.subr.bf16.mxu0 %v6000_v2  ;;  %2228 = vmatprep.subr.bf16.mxu1 %v6001_v6  ;;  %v6082_v2 = vld [vmem:[#allocation12_spill] sm:$0xff] }
 0x624   :  { %2188 = vmatpush1.bf16.msra.mxu0 %v6002_v0  ;;  %2229 = vmatpush1.bf16.msra.mxu1 %v6003_v21 }
 0x625   :  { %2189 = vmatprep.subr.bf16.mxu0 %v6004_v60  ;;  %2230 = vmatprep.subr.bf16.mxu1 %v6005_v27  ;;  %v6083_v60 = vld [vmem:[#allocation13_spill] sm:$0xff] }
 0x628   :  { %2190 = vmatpush1.bf16.msra.mxu0 %v6006_v28  ;;  %2231 = vmatpush1.bf16.msra.mxu1 %v6007_v32 }
 0x629   :  { %2191 = vmatprep.subr.bf16.mxu0 %v6008_v33  ;;  %2232 = vmatprep.subr.bf16.mxu1 %v6009_v35 }
 0x62c   :  { %2192 = vmatpush1.bf16.msra.mxu0 %v6010_v36  ;;  %2233 = vmatpush1.bf16.msra.mxu1 %v6011_v37 }
 0x62d   :  { %2193 = vmatprep.subr.bf16.mxu0 %v6056_v41  ;;  %2234 = vmatprep.subr.bf16.mxu1 %v6057_v42 }
 0x630   :  { %2194 = vmatpush1.bf16.msra.mxu0 %v6058_v43  ;;  %2235 = vmatpush1.bf16.msra.mxu1 %v6059_v44  ;;  %v6085_v43 = vld [vmem:[#allocation15_spill] sm:$0xff] }
 0x631   :  { %2195 = vmatprep.subr.bf16.mxu0 %v6060_v45  ;;  %2236 = vmatprep.subr.bf16.mxu1 %v6061_v5 }
 0x634   :  { %2196 = vmatpush1.bf16.msra.mxu0 %v6062_v46  ;;  %2237 = vmatpush1.bf16.msra.mxu1 %v6063_v47 }
 0x635   :  { %2197 = vmatprep.subr.bf16.mxu0 %v6064_v49  ;;  %2238 = vmatprep.subr.bf16.mxu1 %v6065_v50 }
 0x638   :  { %2198 = vmatpush1.bf16.msra.mxu0 %v6066_v63  ;;  %2239 = vmatpush1.bf16.msra.mxu1 %v6067_v8 }
 0x639   :  { %2199 = vmatprep.subr.bf16.mxu0 %v6068_v55  ;;  %2240 = vmatprep.subr.bf16.mxu1 %v6069_v30 }
 0x63c   :  { %2200 = vmatpush1.bf16.msra.mxu0 %v6070_v57  ;;  %2241 = vmatpush1.bf16.msra.mxu1 %v6071_v61 }
 0x63d   :  { %2201 = vmatprep.subr.bf16.mxu0 %v6072_v58  ;;  %2242 = vmatprep.subr.bf16.mxu1 %v6073_v4 }
 0x640   :  { %2202 = vmatpush1.bf16.msra.mxu0 %v6074_v39  ;;  %2243 = vmatpush1.bf16.msra.mxu1 %v6075_v20  ;;  %v6086_v39 = vld [vmem:[#allocation82_spill] sm:$0xff] }
 0x641   :  { %2203 = vmatprep.subr.bf16.mxu0 %v6076_v1  ;;  %2244 = vmatprep.subr.bf16.mxu1 %v6077_v10  ;;  %v6087_v1 = vld [vmem:[#allocation83_spill] sm:$0xff] }
 0x644   :  { %2204 = vmatpush1.bf16.msra.mxu0 %v6078_v9  ;;  %2245 = vmatpush1.bf16.msra.mxu1 %v6079_v12 }
 0x645   :  { %2259 = vmatprep.subr.bf16.mxu0 %v6080_v11  ;;  %2300 = vmatprep.subr.bf16.mxu1 %v6081_v7 }
 0x6ba   :  { %v1985_v3 = vpop.f32.mrb[52].mxu0  ;;  %v2026_v62 = vpop.f32.mrb[52].mxu1 }
 0x6bb   :  { %v1986_v6 = vadd.f32 %v1985_v3, %v6082_v2  ;;  %v1987_v0 = vpop.f32.mrb[53].mxu0  ;;  %v2028_v21 = vpop.f32.mrb[53].mxu1  ;;  %v2027_v44 = vadd.f32 %v2026_v62, %v6085_v43  ;;  %v6088_v3 = vld [vmem:[#allocation84_spill] sm:$0xff] }
 0x6bc   :  { %v1988_v27 = vadd.f32 %v1987_v0, %v6083_v60  ;;  %v1989_v28 = vpop.f32.mrb[54].mxu0  ;;  %v2030_v32 = vpop.f32.mrb[54].mxu1  ;;  %v2029_v41 = vadd.f32 %v2028_v21, %v6084_v24 }
 0x6bd   :  { %v2924_v33 = vmul.f32 -1.442695, %v1986_v6  ;;  %v1990_v35 = vpop.f32.mrb[55].mxu0  ;;  %v2031_v36 = vpop.f32.mrb[55].mxu1  ;;  %v6089_v6 = vld [vmem:[#allocation85_spill] sm:$0xff] }
 0x6be   :  { %v2925_v37 = vmul.f32 -1.442695, %v1988_v27  ;;  %v2926_v42 = vmul.f32 -1.442695, %v2029_v41 }
 0x6bf   :  { %3258 = vpow2.f32 %v2924_v33 }
 0x6c0   :  { %3260 = vpow2.f32 %v2925_v37 }
 0x6c1   :  { %3262 = vpow2.f32 %v2926_v42 }
 0x6c2   :  { %3264 = vtanh.f32 %v2027_v44 }
 0x6c9   :  { %v3259_v45 = vpop.eup %3258 }
 0x6ca   :  { %v3261_v5 = vpop.eup %3260  ;;  %v2150_v46 = vadd.f32 1.0, %v3259_v45 }
 0x6cb   :  { %v2156_v47 = vadd.f32 1.0, %v3261_v5  ;;  %v3263_v49 = vpop.eup %3262 }
 0x6cc   :  { %3266 = vrcp.f32 %v2150_v46  ;;  %v3265_v50 = vpop.eup %3264  ;;  %v2163_v30 = vadd.f32 1.0, %v3263_v49 }
 0x6cd   :  { %3268 = vrcp.f32 %v2156_v47 }
 0x6ce   :  { %3270 = vrcp.f32 %v2163_v30 }
 0x6d6   :  { %v3267_v63 = vpop.eup %3266 }
 0x6d7   :  { %v3269_v8 = vpop.eup %3268  ;;  %v2167_v55 = vmul.f32 %v3267_v63, %v3265_v50 }
 0x6d8   :  { %v2166_v57 = vmul.f32 %v3269_v8, %v4807_v17  ;;  %v3271_v35 = vpop.eup %3270 }
 0x6da   :  { %v2071_v61 = vpop.f32.mrb[56].mxu0  ;;  %v2112_v58 = vpop.f32.mrb[56].mxu1  ;;  %v4987_v4 = vadd.f32 %v2167_v55, %v2166_v57 }
 0x6db   :  { %v2119_v20 = vadd.f32 %v2071_v61, %v6086_v39  ;;  %v2121_v10 = vadd.f32 %v2112_v58, %v6087_v1  ;;  %v2073_v9 = vpop.f32.mrb[57].mxu0  ;;  %v2114_v12 = vpop.f32.mrb[57].mxu1  ;;  %v6091_v1 = vld [vmem:[#allocation23_spill] sm:$0xff] }
 0x6dc   :  { %v2120_v62 = vadd.f32 %v2073_v9, %v6088_v3  ;;  %v2122_v0 = vadd.f32 %v2114_v12, %v6089_v6  ;;  %v2075_v21 = vpop.f32.mrb[58].mxu0  ;;  %v2116_v27 = vpop.f32.mrb[58].mxu1  ;;  %3272 = vtanh.f32 %v4987_v4  ;;  %v6093_v9 = vld [vmem:[#allocation25_spill] sm:$0xff]  ;;  %v6094_v12 = vld [vmem:[#allocation74_spill] sm:$0xff]  ;;  %v6095_v3 = vld [vmem:[#allocation75_spill] sm:$0xff] }
 0x6dd   :  { %v2921_v17 = vmul.f32 -1.442695, %v2119_v20  ;;  %v2076_v28 = vpop.f32.mrb[59].mxu0  ;;  %v2117_v32 = vpop.f32.mrb[59].mxu1  ;;  %v6097_v6 = vld [vmem:[#allocation77_spill] sm:$0xff]  ;;  %v6099_v21 = vld [vmem:[#allocation27_spill] sm:$0xff] }
 0x6de   :  { %v2922_v33 = vmul.f32 -1.442695, %v2120_v62  ;;  %v2923_v37 = vmul.f32 -1.442695, %v2122_v0  ;;  %v6096_v62 = vld [vmem:[#allocation76_spill] sm:$0xff]  ;;  %v6098_v0 = vld [vmem:[#allocation26_spill] sm:$0xff] }
 0x6df   :  { %3274 = vpow2.f32 %v2921_v17  ;;  %v5030_v27 = vld [vmem:[#allocation6 + $0x4] ss:$16 sps:$4 sm:$0xff]   ;;  %v5033_v17 = vld [vmem:[#allocation6 + $0xc] ss:$16 sps:$4 sm:$0xff]   ;;  %v5036_v28 = vld [vmem:[#allocation6] ss:$16 sps:$4 sm:$0xff]  }
 0x6e0   :  { %3276 = vpow2.f32 %v2922_v33  ;;  %v5039_v32 = vld [vmem:[#allocation6 + $0x8] ss:$16 sps:$4 sm:$0xff]   ;;  %v5042_v33 = vld [vmem:[#allocation6 + $0x24] ss:$16 sps:$4 sm:$0xff]  }
 0x6e1   :  { %3278 = vpow2.f32 %v2923_v37  ;;  %v5051_v37 = vld [vmem:[#allocation6 + $0x28] ss:$16 sps:$4 sm:$0xff]  }
 0x6e2   :  { %3280 = vtanh.f32 %v2121_v10  ;;  %v6092_v10 = vld [vmem:[#allocation24_spill] sm:$0xff] }
 0x6e6   :  { %v3273_v36 = vpop.eup %3272 }
 0x6e7   :  { %v2170_v41 = vmul.f32 %v3273_v36, %v3271_v35  ;;  %v5045_v35 = vld [vmem:[#allocation6 + $0x2c] ss:$16 sps:$4 sm:$0xff]   ;;  %v5048_v36 = vld [vmem:[#allocation6 + $0x20] ss:$16 sps:$4 sm:$0xff]  }
 0x6e9   :  { %v3275_v42 = vpop.eup %3274  ;;  %v2172_v44 = vpack.c.bf16 %v2170_v41, %v2170_v41  ;;  %v5054_v41 = vld [vmem:[#allocation6 + $0x44] ss:$16 sps:$4 sm:$0xff]  }
 0x6ea   :  { %v3277_v45 = vpop.eup %3276  ;;  %v2126_v5 = vadd.f32 1.0, %v3275_v42  ;;  %v5057_v42 = vld [vmem:[#allocation6 + $0x4c] ss:$16 sps:$4 sm:$0xff]  }
 0x6eb   :  { %v2132_v46 = vadd.f32 1.0, %v3277_v45  ;;  %2205 = vmatprep.mubr.bf16.mxu0 %v2172_v44  ;;  %2246 = vmatprep.mubr.bf16.mxu1 %v2172_v44  ;;  %v3279_v47 = vpop.eup %3278  ;;  %v5060_v44 = vld [vmem:[#allocation6 + $0x40] ss:$16 sps:$4 sm:$0xff]   ;;  %v5063_v45 = vld [vmem:[#allocation6 + $0x48] ss:$16 sps:$4 sm:$0xff]  }
 0x6ec   :  { %3282 = vrcp.f32 %v2126_v5  ;;  %v3281_v49 = vpop.eup %3280  ;;  %v2139_v55 = vadd.f32 1.0, %v3279_v47  ;;  %6100 = vst [vmem:[#allocation28_spill] sm:$0xff] %v5060_v44  ;;  %6101 = vst [vmem:[#allocation29_spill] sm:$0xff] %v5063_v45  ;;  %v5066_v5 = vld [vmem:[#allocation6 + $0x64] ss:$16 sps:$4 sm:$0xff]  }
 0x6ed   :  { %3284 = vrcp.f32 %v2132_v46  ;;  %6102 = vst [vmem:[#allocation30_spill] sm:$0xff] %v5066_v5  ;;  %v5069_v46 = vld [vmem:[#allocation6 + $0x6c] ss:$16 sps:$4 sm:$0xff]   ;;  %v5072_v47 = vld [vmem:[#allocation6 + $0x60] ss:$16 sps:$4 sm:$0xff]  }
 0x6ee   :  { %3286 = vrcp.f32 %v2139_v55  ;;  %6103 = vst [vmem:[#allocation31_spill] sm:$0xff] %v5069_v46  ;;  %6104 = vst [vmem:[#allocation32_spill] sm:$0xff] %v5072_v47  ;;  %v5087_v55 = vld [vmem:[#allocation6 + $0x88] ss:$16 sps:$4 sm:$0xff]  }
 0x6ef   :  { %6109 = vst [vmem:[#allocation37_spill] sm:$0xff] %v5087_v55 }
 0x6f6   :  { %v3283_v50 = vpop.eup %3282 }
 0x6f7   :  { %v3285_v63 = vpop.eup %3284  ;;  %v2143_v8 = vmul.f32 %v3283_v50, %v3281_v49  ;;  %v5075_v49 = vld [vmem:[#allocation6 + $0x68] ss:$16 sps:$4 sm:$0xff]   ;;  %v5078_v50 = vld [vmem:[#allocation6 + $0x84] ss:$16 sps:$4 sm:$0xff]  }
 0x6f8   :  { %v2142_v30 = vmul.f32 %v3285_v63, %v4815_v26  ;;  %v3287_v61 = vpop.eup %3286  ;;  %v6090_v26 = vld [vmem:[#allocation22_spill] sm:$0xff]  ;;  %6105 = vst [vmem:[#allocation33_spill] sm:$0xff] %v5075_v49  ;;  %6106 = vst [vmem:[#allocation34_spill] sm:$0xff] %v5078_v50  ;;  %v5081_v63 = vld [vmem:[#allocation6 + $0x8c] ss:$16 sps:$4 sm:$0xff]  }
 0x6f9   :  { %6107 = vst [vmem:[#allocation35_spill] sm:$0xff] %v5081_v63 }
 0x6fa   :  { %v4995_v57 = vadd.f32 %v2143_v8, %v2142_v30  ;;  %v5084_v8 = vld [vmem:[#allocation6 + $0x80] ss:$16 sps:$4 sm:$0xff]   ;;  %v5090_v30 = vld [vmem:[#allocation6 + $0xa4] ss:$16 sps:$4 sm:$0xff]  }
 0x6fb   :  { %6108 = vst [vmem:[#allocation36_spill] sm:$0xff] %v5084_v8  ;;  %6110 = vst [vmem:[#allocation38_spill] sm:$0xff] %v5090_v30 }
 0x6fc   :  { %3288 = vtanh.f32 %v4995_v57 }
 0x706   :  { %v3289_v58 = vpop.eup %3288 }
 0x707   :  { %v2146_v39 = vmul.f32 %v3289_v58, %v3287_v61  ;;  %v5093_v61 = vld [vmem:[#allocation6 + $0xac] ss:$16 sps:$4 sm:$0xff]   ;;  %v5096_v58 = vld [vmem:[#allocation6 + $0xa0] ss:$16 sps:$4 sm:$0xff]  }
 0x708   :  { %6111 = vst [vmem:[#allocation39_spill] sm:$0xff] %v5093_v61  ;;  %6112 = vst [vmem:[#allocation40_spill] sm:$0xff] %v5096_v58 }
 0x709   :  { %v2171_v20 = vpack.c.bf16 %v2146_v39, %v2146_v39  ;;  %v5099_v39 = vld [vmem:[#allocation6 + $0xa8] ss:$16 sps:$4 sm:$0xff]  }
 0x70a   :  { %6113 = vst [vmem:[#allocation65_spill] sm:$0xff] %v5099_v39 }
 0x70b   :  { %2206 = vmatmul.mubr.bf16.vlgmr.msra.gmra.mrb[60].mxu0 %v2171_v20  ;;  %2247 = vmatmul.mubr.bf16.vlgmr.msra.gmra.mrb[60].mxu1 %v2171_v20 }
 0x70c   :  { %2260 = vmatpush1.bf16.msra.mxu0 %v4822_v48  ;;  %2301 = vmatpush1.bf16.msra.mxu1 %v4825_v22 }
 0x70d   :  { %2261 = vmatprep.subr.bf16.mxu0 %v4828_v23  ;;  %2302 = vmatprep.subr.bf16.mxu1 %v4831_v19 }
 0x70e   :  { %2291 = vmatprep.mubr.bf16.mxu0 %v5799_v59  ;;  %2332 = vmatprep.mubr.bf16.mxu1 %v5799_v59 }
 0x710   :  { %2262 = vmatpush1.bf16.msra.mxu0 %v4836_v25  ;;  %2303 = vmatpush1.bf16.msra.mxu1 %v4839_v16 }
 0x711   :  { %2263 = vmatprep.subr.bf16.mxu0 %v4842_v29  ;;  %2304 = vmatprep.subr.bf16.mxu1 %v4845_v53 }
 0x714   :  { %2264 = vmatpush1.bf16.msra.mxu0 %v4848_v40  ;;  %2305 = vmatpush1.bf16.msra.mxu1 %v4851_v38 }
 0x715   :  { %2265 = vmatprep.subr.bf16.mxu0 %v4854_v15  ;;  %2306 = vmatprep.subr.bf16.mxu1 %v4857_v18 }
 0x718   :  { %2266 = vmatpush1.bf16.msra.mxu0 %v4860_v54  ;;  %2307 = vmatpush1.bf16.msra.mxu1 %v4863_v56 }
 0x719   :  { %2267 = vmatprep.subr.bf16.mxu0 %v6090_v26  ;;  %2308 = vmatprep.subr.bf16.mxu1 %v6091_v1 }
 0x71c   :  { %2268 = vmatpush1.bf16.msra.mxu0 %v6092_v10  ;;  %2309 = vmatpush1.bf16.msra.mxu1 %v6093_v9 }
 0x71d   :  { %2269 = vmatprep.subr.bf16.mxu0 %v6094_v12  ;;  %2310 = vmatprep.subr.bf16.mxu1 %v6095_v3 }
 0x720   :  { %2270 = vmatpush1.bf16.msra.mxu0 %v6096_v62  ;;  %2311 = vmatpush1.bf16.msra.mxu1 %v6097_v6 }
 0x721   :  { %2271 = vmatprep.subr.bf16.mxu0 %v6098_v0  ;;  %2312 = vmatprep.subr.bf16.mxu1 %v6099_v21 }
 0x724   :  { %2272 = vmatpush1.bf16.msra.mxu0 %v4896_v13  ;;  %2313 = vmatpush1.bf16.msra.mxu1 %v4899_v31 }
 0x725   :  { %2273 = vmatprep.subr.bf16.mxu0 %v4902_v14  ;;  %2314 = vmatprep.subr.bf16.mxu1 %v4905_v52 }
 0x728   :  { %2274 = vmatpush1.bf16.msra.mxu0 %v4908_v34  ;;  %2315 = vmatpush1.bf16.msra.mxu1 %v4911_v51 }
 0x729   :  { %2395 = vmatprep.subr.bf16.mxu0 %v5030_v27  ;;  %2436 = vmatprep.subr.bf16.mxu1 %v5033_v17 }
 0x72b   :  { %2292 = vmatmul.mubr.bf16.vlgmr.msra.gmra.mrb[64].mxu0 %v2171_v20  ;;  %2333 = vmatmul.mubr.bf16.vlgmr.msra.gmra.mrb[64].mxu1 %v2171_v20  ;;  %v5102_v20 = vld [vmem:[#allocation6 + $0xc4] ss:$16 sps:$4 sm:$0xff]  }
 0x72c   :  { %2396 = vmatpush1.bf16.msra.mxu0 %v5036_v28  ;;  %2437 = vmatpush1.bf16.msra.mxu1 %v5039_v32  ;;  %6114 = vst [vmem:[#allocation66_spill] sm:$0xff] %v5102_v20 }
 0x72d   :  { %2397 = vmatprep.subr.bf16.mxu0 %v5042_v33  ;;  %2438 = vmatprep.subr.bf16.mxu1 %v5045_v35 }
 0x730   :  { %2398 = vmatpush1.bf16.msra.mxu0 %v5048_v36  ;;  %2439 = vmatpush1.bf16.msra.mxu1 %v5051_v37 }
 0x731   :  { %2399 = vmatprep.subr.bf16.mxu0 %v5054_v41  ;;  %2440 = vmatprep.subr.bf16.mxu1 %v5057_v42 }
 0x734   :  { %2400 = vmatpush1.bf16.msra.mxu0 %v5060_v44  ;;  %2441 = vmatpush1.bf16.msra.mxu1 %v5063_v45 }
 0x735   :  { %2401 = vmatprep.subr.bf16.mxu0 %v5066_v5  ;;  %2442 = vmatprep.subr.bf16.mxu1 %v5069_v46 }
 0x738   :  { %2402 = vmatpush1.bf16.msra.mxu0 %v5072_v47  ;;  %2443 = vmatpush1.bf16.msra.mxu1 %v5075_v49 }
 0x739   :  { %2403 = vmatprep.subr.bf16.mxu0 %v5078_v50  ;;  %2444 = vmatprep.subr.bf16.mxu1 %v5081_v63 }
 0x73c   :  { %2404 = vmatpush1.bf16.msra.mxu0 %v5084_v8  ;;  %2445 = vmatpush1.bf16.msra.mxu1 %v5087_v55  ;;  %v5105_v55 = vld [vmem:[#allocation6 + $0xcc] ss:$16 sps:$4 sm:$0xff]  }
 0x73d   :  { %2405 = vmatprep.subr.bf16.mxu0 %v5090_v30  ;;  %2446 = vmatprep.subr.bf16.mxu1 %v5093_v61  ;;  %6115 = vst [vmem:[#allocation67_spill] sm:$0xff] %v5105_v55  ;;  %v5108_v30 = vld [vmem:[#allocation6 + $0xc0] ss:$16 sps:$4 sm:$0xff]   ;;  %v5111_v61 = vld [vmem:[#allocation6 + $0xc8] ss:$16 sps:$4 sm:$0xff]  }
 0x73e   :  { %6116 = vst [vmem:[#allocation68_spill] sm:$0xff] %v5108_v30  ;;  %6117 = vst [vmem:[#allocation69_spill] sm:$0xff] %v5111_v61 }
 0x740   :  { %2406 = vmatpush1.bf16.msra.mxu0 %v5096_v58  ;;  %2447 = vmatpush1.bf16.msra.mxu1 %v5099_v39  ;;  %v5114_v58 = vld [vmem:[#allocation6 + $0xe4] ss:$16 sps:$4 sm:$0xff]   ;;  %v5117_v39 = vld [vmem:[#allocation6 + $0xec] ss:$16 sps:$4 sm:$0xff]  }
 0x741   :  { %2407 = vmatprep.subr.bf16.mxu0 %v5102_v20  ;;  %2448 = vmatprep.subr.bf16.mxu1 %v5105_v55  ;;  %6118 = vst [vmem:[#allocation41_spill] sm:$0xff] %v5114_v58  ;;  %6119 = vst [vmem:[#allocation42_spill] sm:$0xff] %v5117_v39  ;;  %v5120_v20 = vld [vmem:[#allocation6 + $0xe0] ss:$16 sps:$4 sm:$0xff]   ;;  %v5123_v55 = vld [vmem:[#allocation6 + $0xe8] ss:$16 sps:$4 sm:$0xff]  }
 0x742   :  { %6120 = vst [vmem:[#allocation43_spill] sm:$0xff] %v5120_v20  ;;  %6121 = vst [vmem:[#allocation44_spill] sm:$0xff] %v5123_v55 }
 0x744   :  { %2408 = vmatpush1.bf16.msra.mxu0 %v5108_v30  ;;  %2449 = vmatpush1.bf16.msra.mxu1 %v5111_v61  ;;  %v5126_v30 = vld [vmem:[#allocation6 + $0x104] ss:$16 sps:$4 sm:$0xff]   ;;  %v5129_v61 = vld [vmem:[#allocation6 + $0x10c] ss:$16 sps:$4 sm:$0xff]  }
 0x745   :  { %2409 = vmatprep.subr.bf16.mxu0 %v5114_v58  ;;  %2450 = vmatprep.subr.bf16.mxu1 %v5117_v39  ;;  %6122 = vst [vmem:[#allocation45_spill] sm:$0xff] %v5126_v30  ;;  %6123 = vst [vmem:[#allocation46_spill] sm:$0xff] %v5129_v61  ;;  %v5132_v58 = vld [vmem:[#allocation6 + $0x100] ss:$16 sps:$4 sm:$0xff]   ;;  %v5135_v39 = vld [vmem:[#allocation6 + $0x108] ss:$16 sps:$4 sm:$0xff]  }
 0x746   :  { %6124 = vst [vmem:[#allocation47_spill] sm:$0xff] %v5132_v58  ;;  %6125 = vst [vmem:[#allocation48_spill] sm:$0xff] %v5135_v39 }
 0x748   :  { %2410 = vmatpush1.bf16.msra.mxu0 %v5120_v20  ;;  %2451 = vmatpush1.bf16.msra.mxu1 %v5123_v55  ;;  %v5138_v20 = vld [vmem:[#allocation6 + $0x124] ss:$16 sps:$4 sm:$0xff]   ;;  %v5141_v55 = vld [vmem:[#allocation6 + $0x12c] ss:$16 sps:$4 sm:$0xff]  }
 0x749   :  { %2411 = vmatprep.subr.bf16.mxu0 %v5126_v30  ;;  %2452 = vmatprep.subr.bf16.mxu1 %v5129_v61  ;;  %6126 = vst [vmem:[#allocation49_spill] sm:$0xff] %v5138_v20  ;;  %6127 = vst [vmem:[#allocation50_spill] sm:$0xff] %v5141_v55  ;;  %v5144_v30 = vld [vmem:[#allocation6 + $0x120] ss:$16 sps:$4 sm:$0xff]   ;;  %v5147_v61 = vld [vmem:[#allocation6 + $0x128] ss:$16 sps:$4 sm:$0xff]  }
 0x74a   :  { %6128 = vst [vmem:[#allocation78_spill] sm:$0xff] %v5144_v30  ;;  %6129 = vst [vmem:[#allocation79_spill] sm:$0xff] %v5147_v61 }
 0x74c   :  { %2412 = vmatpush1.bf16.msra.mxu0 %v5132_v58  ;;  %2453 = vmatpush1.bf16.msra.mxu1 %v5135_v39  ;;  %v5150_v58 = vld [vmem:[#allocation6 + $0x144] ss:$16 sps:$4 sm:$0xff]   ;;  %v5153_v39 = vld [vmem:[#allocation6 + $0x14c] ss:$16 sps:$4 sm:$0xff]  }
 0x74d   :  { %2413 = vmatprep.subr.bf16.mxu0 %v5138_v20  ;;  %2454 = vmatprep.subr.bf16.mxu1 %v5141_v55  ;;  %6130 = vst [vmem:[#allocation80_spill] sm:$0xff] %v5150_v58  ;;  %6131 = vst [vmem:[#allocation81_spill] sm:$0xff] %v5153_v39  ;;  %v5156_v20 = vld [vmem:[#allocation6 + $0x140] ss:$16 sps:$4 sm:$0xff]   ;;  %v5159_v55 = vld [vmem:[#allocation6 + $0x148] ss:$16 sps:$4 sm:$0xff]  }
 0x74e   :  { %6132 = vst [vmem:[#allocation51_spill] sm:$0xff] %v5156_v20  ;;  %6133 = vst [vmem:[#allocation52_spill] sm:$0xff] %v5159_v55 }
 0x750   :  { %2414 = vmatpush1.bf16.msra.mxu0 %v5144_v30  ;;  %2455 = vmatpush1.bf16.msra.mxu1 %v5147_v61  ;;  %v5162_v30 = vld [vmem:[#allocation6 + $0x164] ss:$16 sps:$4 sm:$0xff]   ;;  %v5165_v61 = vld [vmem:[#allocation6 + $0x16c] ss:$16 sps:$4 sm:$0xff]  }
 0x751   :  { %2415 = vmatprep.subr.bf16.mxu0 %v5150_v58  ;;  %2456 = vmatprep.subr.bf16.mxu1 %v5153_v39  ;;  %6134 = vst [vmem:[#allocation53_spill] sm:$0xff] %v5162_v30  ;;  %6135 = vst [vmem:[#allocation54_spill] sm:$0xff] %v5165_v61  ;;  %v5168_v58 = vld [vmem:[#allocation6 + $0x160] ss:$16 sps:$4 sm:$0xff]   ;;  %v5171_v39 = vld [vmem:[#allocation6 + $0x168] ss:$16 sps:$4 sm:$0xff]  }
 0x752   :  { %6136 = vst [vmem:[#allocation55_spill] sm:$0xff] %v5168_v58  ;;  %6137 = vst [vmem:[#allocation56_spill] sm:$0xff] %v5171_v39 }
 0x754   :  { %2416 = vmatpush1.bf16.msra.mxu0 %v5156_v20  ;;  %2457 = vmatpush1.bf16.msra.mxu1 %v5159_v55  ;;  %v5174_v20 = vld [vmem:[#allocation6 + $0x184] ss:$16 sps:$4 sm:$0xff]   ;;  %v5177_v55 = vld [vmem:[#allocation6 + $0x18c] ss:$16 sps:$4 sm:$0xff]  }
 0x755   :  { %2417 = vmatprep.subr.bf16.mxu0 %v5162_v30  ;;  %2458 = vmatprep.subr.bf16.mxu1 %v5165_v61  ;;  %6138 = vst [vmem:[#allocation57_spill] sm:$0xff] %v5174_v20  ;;  %6139 = vst [vmem:[#allocation58_spill] sm:$0xff] %v5177_v55  ;;  %v5180_v30 = vld [vmem:[#allocation6 + $0x180] ss:$16 sps:$4 sm:$0xff]   ;;  %v5183_v61 = vld [vmem:[#allocation6 + $0x188] ss:$16 sps:$4 sm:$0xff]  }
 0x756   :  { %6140 = vst [vmem:[#allocation59_spill] sm:$0xff] %v5180_v30  ;;  %6141 = vst [vmem:[#allocation60_spill] sm:$0xff] %v5183_v61 }
 0x758   :  { %2418 = vmatpush1.bf16.msra.mxu0 %v5168_v58  ;;  %2459 = vmatpush1.bf16.msra.mxu1 %v5171_v39  ;;  %v5186_v58 = vld [vmem:[#allocation6 + $0x1a4] ss:$16 sps:$4 sm:$0xff]   ;;  %v5189_v39 = vld [vmem:[#allocation6 + $0x1ac] ss:$16 sps:$4 sm:$0xff]  }
 0x759   :  { %2419 = vmatprep.subr.bf16.mxu0 %v5174_v20  ;;  %2460 = vmatprep.subr.bf16.mxu1 %v5177_v55  ;;  %6142 = vst [vmem:[#allocation61_spill] sm:$0xff] %v5186_v58  ;;  %6143 = vst [vmem:[#allocation62_spill] sm:$0xff] %v5189_v39  ;;  %v5192_v20 = vld [vmem:[#allocation6 + $0x1a0] ss:$16 sps:$4 sm:$0xff]   ;;  %v5195_v55 = vld [vmem:[#allocation6 + $0x1a8] ss:$16 sps:$4 sm:$0xff]  }
 0x75a   :  { %6144 = vst [vmem:[#allocation63_spill] sm:$0xff] %v5192_v20  ;;  %6145 = vst [vmem:[#allocation64_spill] sm:$0xff] %v5195_v55 }
 0x75c   :  { %2420 = vmatpush1.bf16.msra.mxu0 %v5180_v30  ;;  %2461 = vmatpush1.bf16.msra.mxu1 %v5183_v61  ;;  %v5198_v30 = vld [vmem:[#allocation6 + $0x1c4] ss:$16 sps:$4 sm:$0xff]   ;;  %v5201_v61 = vld [vmem:[#allocation6 + $0x1cc] ss:$16 sps:$4 sm:$0xff]  }
 0x75d   :  { %2421 = vmatprep.subr.bf16.mxu0 %v5186_v58  ;;  %2462 = vmatprep.subr.bf16.mxu1 %v5189_v39  ;;  %6146 = vst [vmem:[#allocation10_spill] sm:$0xff] %v5198_v30  ;;  %6147 = vst [vmem:[#allocation11_spill] sm:$0xff] %v5201_v61  ;;  %v5204_v58 = vld [vmem:[#allocation6 + $0x1c0] ss:$16 sps:$4 sm:$0xff]   ;;  %v5207_v39 = vld [vmem:[#allocation6 + $0x1c8] ss:$16 sps:$4 sm:$0xff]  }
 0x75e   :  { %6148 = vst [vmem:[#allocation16_spill] sm:$0xff] %v5204_v58  ;;  %6149 = vst [vmem:[#allocation70_spill] sm:$0xff] %v5207_v39 }
 0x760   :  { %2422 = vmatpush1.bf16.msra.mxu0 %v5192_v20  ;;  %2463 = vmatpush1.bf16.msra.mxu1 %v5195_v55  ;;  %v5210_v20 = vld [vmem:[#allocation6 + $0x1e4] ss:$16 sps:$4 sm:$0xff]   ;;  %v5213_v55 = vld [vmem:[#allocation6 + $0x1ec] ss:$16 sps:$4 sm:$0xff]  }
 0x761   :  { %2423 = vmatprep.subr.bf16.mxu0 %v5198_v30  ;;  %2464 = vmatprep.subr.bf16.mxu1 %v5201_v61  ;;  %6150 = vst [vmem:[#allocation71_spill] sm:$0xff] %v5210_v20  ;;  %6151 = vst [vmem:[#allocation72_spill] sm:$0xff] %v5213_v55  ;;  %v5216_v30 = vld [vmem:[#allocation6 + $0x1e0] ss:$16 sps:$4 sm:$0xff]   ;;  %v5219_v61 = vld [vmem:[#allocation6 + $0x1e8] ss:$16 sps:$4 sm:$0xff]  }
 0x762   :  { %6152 = vst [vmem:[#allocation73_spill] sm:$0xff] %v5216_v30  ;;  %6153 = vst [vmem:[#allocation17_spill] sm:$0xff] %v5219_v61 }
 0x764   :  { %2424 = vmatpush1.bf16.msra.mxu0 %v5204_v58  ;;  %2465 = vmatpush1.bf16.msra.mxu1 %v5207_v39 }
 0x765   :  { %2425 = vmatprep.subr.bf16.mxu0 %v5210_v20  ;;  %2466 = vmatprep.subr.bf16.mxu1 %v5213_v55 }
 0x768   :  { %2426 = vmatpush1.bf16.msra.mxu0 %v5216_v30  ;;  %2467 = vmatpush1.bf16.msra.mxu1 %v5219_v61 }
 0x769   :  { %2481 = vmatprep.subr.bf16.mxu0 %v6080_v11  ;;  %2522 = vmatprep.subr.bf16.mxu1 %v6081_v7 }
 0x7de   :  { %v2207_v39 = vpop.f32.mrb[60].mxu0  ;;  %v2248_v58 = vpop.f32.mrb[60].mxu1 }
 0x7df   :  { %v2208_v20 = vadd.f32 %v2207_v39, %v6082_v2  ;;  %v2209_v8 = vpop.f32.mrb[61].mxu0  ;;  %v2250_v63 = vpop.f32.mrb[61].mxu1  ;;  %v2249_v7 = vadd.f32 %v2248_v58, %v6085_v43  ;;  %v6154_v58 = vld [vmem:[#allocation86_spill] sm:$0xff]  ;;  %v6157_v43 = vld [vmem:[#allocation89_spill] sm:$0xff] }
 0x7e0   :  { %v2210_v55 = vadd.f32 %v2209_v8, %v6083_v60  ;;  %v2211_v50 = vpop.f32.mrb[62].mxu0  ;;  %v2252_v49 = vpop.f32.mrb[62].mxu1  ;;  %v2251_v11 = vadd.f32 %v2250_v63, %v6084_v24 }
 0x7e1   :  { %v2930_v47 = vmul.f32 -1.442695, %v2208_v20  ;;  %v2212_v30 = vpop.f32.mrb[63].mxu0  ;;  %v2253_v46 = vpop.f32.mrb[63].mxu1 }
 0x7e2   :  { %v2931_v5 = vmul.f32 -1.442695, %v2210_v55  ;;  %v2932_v61 = vmul.f32 -1.442695, %v2251_v11 }
 0x7e3   :  { %3290 = vpow2.f32 %v2930_v47 }
 0x7e4   :  { %3292 = vpow2.f32 %v2931_v5 }
 0x7e5   :  { %3294 = vpow2.f32 %v2932_v61  ;;  %v6155_v61 = vld [vmem:[#allocation87_spill] sm:$0xff] }
 0x7e6   :  { %3296 = vtanh.f32 %v2249_v7 }
 0x7ed   :  { %v3291_v45 = vpop.eup %3290 }
 0x7ee   :  { %v3293_v44 = vpop.eup %3292  ;;  %v2372_v39 = vadd.f32 1.0, %v3291_v45 }
 0x7ef   :  { %v2378_v2 = vadd.f32 1.0, %v3293_v44  ;;  %v3295_v49 = vpop.eup %3294 }
 0x7f0   :  { %3298 = vrcp.f32 %v2372_v39  ;;  %v3297_v50 = vpop.eup %3296  ;;  %v2385_v47 = vadd.f32 1.0, %v3295_v49 }
 0x7f1   :  { %3300 = vrcp.f32 %v2378_v2  ;;  %v6156_v2 = vld [vmem:[#allocation88_spill] sm:$0xff] }
 0x7f2   :  { %3302 = vrcp.f32 %v2385_v47 }
 0x7fa   :  { %v3299_v8 = vpop.eup %3298 }
 0x7fb   :  { %v3301_v46 = vpop.eup %3300  ;;  %v2389_v55 = vmul.f32 %v3299_v8, %v3297_v50 }
 0x7fc   :  { %v2388_v5 = vmul.f32 %v3301_v46, %v4987_v4 }
 0x7fe   :  { %v2293_v63 = vpop.f32.mrb[64].mxu0  ;;  %v2334_v30 = vpop.f32.mrb[64].mxu1  ;;  %v5229_v20 = vadd.f32 %v2389_v55, %v2388_v5 }
 0x7ff   :  { %v2341_v45 = vadd.f32 %v2293_v63, %v6154_v58  ;;  %v2343_v11 = vadd.f32 %v2334_v30, %v6155_v61  ;;  %v2295_v44 = vpop.f32.mrb[65].mxu0  ;;  %v2336_v7 = vpop.f32.mrb[65].mxu1 }
 0x800   :  { %v2342_v39 = vadd.f32 %v2295_v44, %v6156_v2  ;;  %v2344_v24 = vadd.f32 %v2336_v7, %v6157_v43  ;;  %v2297_v60 = vpop.f32.mrb[66].mxu0  ;;  %v2338_v50 = vpop.f32.mrb[66].mxu1  ;;  %3304 = vtanh.f32 %v5229_v20 }
 0x801   :  { %v2927_v4 = vmul.f32 -1.442695, %v2341_v45  ;;  %v2298_v49 = vpop.f32.mrb[67].mxu0  ;;  %v2339_v8 = vpop.f32.mrb[67].mxu1 }
 0x802   :  { %v2928_v46 = vmul.f32 -1.442695, %v2342_v39  ;;  %v3303_v55 = vpop.eup %3302  ;;  %v2929_v5 = vmul.f32 -1.442695, %v2344_v24 }
 0x803   :  { %3306 = vpow2.f32 %v2927_v4 }
 0x804   :  { %3308 = vpow2.f32 %v2928_v46 }
 0x805   :  { %3310 = vpow2.f32 %v2929_v5  ;;  %v6202_v5 = vld [vmem:[#allocation63_spill] sm:$0xff] }
 0x806   :  { %3312 = vtanh.f32 %v2343_v11 }
 0x80a   :  { %v3305_v47 = vpop.eup %3304 }
 0x80b   :  { %v2392_v63 = vmul.f32 %v3305_v47, %v3303_v55  ;;  %v6200_v55 = vld [vmem:[#allocation61_spill] sm:$0xff]  ;;  %v6201_v47 = vld [vmem:[#allocation62_spill] sm:$0xff] }
 0x80d   :  { %v3307_v30 = vpop.eup %3306  ;;  %v2394_v58 = vpack.c.bf16 %v2392_v63, %v2392_v63  ;;  %v6203_v63 = vld [vmem:[#allocation64_spill] sm:$0xff] }
 0x80e   :  { %v3309_v61 = vpop.eup %3308  ;;  %v2348_v44 = vadd.f32 1.0, %v3307_v30  ;;  %v6204_v30 = vld [vmem:[#allocation10_spill] sm:$0xff] }
 0x80f   :  { %v2354_v60 = vadd.f32 1.0, %v3309_v61  ;;  %2427 = vmatprep.mubr.bf16.mxu0 %v2394_v58  ;;  %2468 = vmatprep.mubr.bf16.mxu1 %v2394_v58  ;;  %v3311_v43 = vpop.eup %3310  ;;  %v6205_v58 = vld [vmem:[#allocation11_spill] sm:$0xff]  ;;  %v6206_v61 = vld [vmem:[#allocation16_spill] sm:$0xff] }
 0x810   :  { %3314 = vrcp.f32 %v2348_v44  ;;  %v3313_v45 = vpop.eup %3312  ;;  %v2361_v50 = vadd.f32 1.0, %v3311_v43  ;;  %v6207_v44 = vld [vmem:[#allocation70_spill] sm:$0xff]  ;;  %v6209_v43 = vld [vmem:[#allocation72_spill] sm:$0xff] }
 0x811   :  { %3316 = vrcp.f32 %v2354_v60  ;;  %v6208_v60 = vld [vmem:[#allocation71_spill] sm:$0xff] }
 0x812   :  { %3318 = vrcp.f32 %v2361_v50  ;;  %v6212_v50 = vld [vmem:[#allocation12_spill] sm:$0xff] }
 0x81a   :  { %v3315_v7 = vpop.eup %3314 }
 0x81b   :  { %v3317_v2 = vpop.eup %3316  ;;  %v2365_v39 = vmul.f32 %v3315_v7, %v3313_v45  ;;  %v6210_v45 = vld [vmem:[#allocation73_spill] sm:$0xff] }
 0x81c   :  { %v2364_v24 = vmul.f32 %v3317_v2, %v4995_v57  ;;  %v3319_v49 = vpop.eup %3318  ;;  %v6179_v57 = vld [vmem:[#allocation44_spill] sm:$0xff]  ;;  %v6211_v7 = vld [vmem:[#allocation17_spill] sm:$0xff] }
 0x81e   :  { %v5237_v4 = vadd.f32 %v2365_v39, %v2364_v24 }
 0x820   :  { %3320 = vtanh.f32 %v5237_v4 }
 0x82a   :  { %v3321_v11 = vpop.eup %3320 }
 0x82b   :  { %v2368_v8 = vmul.f32 %v3321_v11, %v3319_v49 }
 0x82d   :  { %v2393_v46 = vpack.c.bf16 %v2368_v8, %v2368_v8  ;;  %v6213_v8 = vld [vmem:[#allocation13_spill] sm:$0xff] }
 0x82f   :  { %2428 = vmatmul.mubr.bf16.vlgmr.msra.gmra.mrb[68].mxu0 %v2393_v46  ;;  %2469 = vmatmul.mubr.bf16.vlgmr.msra.gmra.mrb[68].mxu1 %v2393_v46 }
 0x830   :  { %2482 = vmatpush1.bf16.msra.mxu0 %v4822_v48  ;;  %2523 = vmatpush1.bf16.msra.mxu1 %v4825_v22  ;;  %v6159_v48 = vld [vmem:[#allocation29_spill] sm:$0xff]  ;;  %v6160_v22 = vld [vmem:[#allocation30_spill] sm:$0xff] }
 0x831   :  { %2483 = vmatprep.subr.bf16.mxu0 %v4828_v23  ;;  %2524 = vmatprep.subr.bf16.mxu1 %v4831_v19  ;;  %v6161_v23 = vld [vmem:[#allocation31_spill] sm:$0xff]  ;;  %v6162_v19 = vld [vmem:[#allocation32_spill] sm:$0xff] }
 0x832   :  { %2513 = vmatprep.mubr.bf16.mxu0 %v5799_v59  ;;  %2554 = vmatprep.mubr.bf16.mxu1 %v5799_v59  ;;  %v6158_v59 = vld [vmem:[#allocation28_spill] sm:$0xff] }
 0x834   :  { %2484 = vmatpush1.bf16.msra.mxu0 %v4836_v25  ;;  %2525 = vmatpush1.bf16.msra.mxu1 %v4839_v16  ;;  %v6163_v25 = vld [vmem:[#allocation33_spill] sm:$0xff]  ;;  %v6164_v16 = vld [vmem:[#allocation34_spill] sm:$0xff] }
 0x835   :  { %2485 = vmatprep.subr.bf16.mxu0 %v4842_v29  ;;  %2526 = vmatprep.subr.bf16.mxu1 %v4845_v53  ;;  %v6165_v29 = vld [vmem:[#allocation35_spill] sm:$0xff]  ;;  %v6166_v53 = vld [vmem:[#allocation36_spill] sm:$0xff] }
 0x838   :  { %2486 = vmatpush1.bf16.msra.mxu0 %v4848_v40  ;;  %2527 = vmatpush1.bf16.msra.mxu1 %v4851_v38  ;;  %v6167_v40 = vld [vmem:[#allocation37_spill] sm:$0xff]  ;;  %v6168_v38 = vld [vmem:[#allocation38_spill] sm:$0xff] }
 0x839   :  { %2487 = vmatprep.subr.bf16.mxu0 %v4854_v15  ;;  %2528 = vmatprep.subr.bf16.mxu1 %v4857_v18  ;;  %v6169_v15 = vld [vmem:[#allocation39_spill] sm:$0xff]  ;;  %v6170_v18 = vld [vmem:[#allocation40_spill] sm:$0xff] }
 0x83c   :  { %2488 = vmatpush1.bf16.msra.mxu0 %v4860_v54  ;;  %2529 = vmatpush1.bf16.msra.mxu1 %v4863_v56  ;;  %v6171_v54 = vld [vmem:[#allocation65_spill] sm:$0xff]  ;;  %v6172_v56 = vld [vmem:[#allocation66_spill] sm:$0xff] }
 0x83d   :  { %2489 = vmatprep.subr.bf16.mxu0 %v6090_v26  ;;  %2530 = vmatprep.subr.bf16.mxu1 %v6091_v1  ;;  %v6180_v26 = vld [vmem:[#allocation45_spill] sm:$0xff]  ;;  %v6181_v1 = vld [vmem:[#allocation46_spill] sm:$0xff] }
 0x840   :  { %2490 = vmatpush1.bf16.msra.mxu0 %v6092_v10  ;;  %2531 = vmatpush1.bf16.msra.mxu1 %v6093_v9  ;;  %v6182_v10 = vld [vmem:[#allocation47_spill] sm:$0xff]  ;;  %v6183_v9 = vld [vmem:[#allocation48_spill] sm:$0xff] }
 0x841   :  { %2491 = vmatprep.subr.bf16.mxu0 %v6094_v12  ;;  %2532 = vmatprep.subr.bf16.mxu1 %v6095_v3  ;;  %v6184_v12 = vld [vmem:[#allocation49_spill] sm:$0xff]  ;;  %v6185_v3 = vld [vmem:[#allocation50_spill] sm:$0xff] }
 0x844   :  { %2492 = vmatpush1.bf16.msra.mxu0 %v6096_v62  ;;  %2533 = vmatpush1.bf16.msra.mxu1 %v6097_v6  ;;  %v6186_v62 = vld [vmem:[#allocation78_spill] sm:$0xff]  ;;  %v6187_v6 = vld [vmem:[#allocation79_spill] sm:$0xff] }
 0x845   :  { %2493 = vmatprep.subr.bf16.mxu0 %v6098_v0  ;;  %2534 = vmatprep.subr.bf16.mxu1 %v6099_v21  ;;  %v6188_v0 = vld [vmem:[#allocation80_spill] sm:$0xff]  ;;  %v6189_v21 = vld [vmem:[#allocation81_spill] sm:$0xff] }
 0x848   :  { %2494 = vmatpush1.bf16.msra.mxu0 %v4896_v13  ;;  %2535 = vmatpush1.bf16.msra.mxu1 %v4899_v31  ;;  %v6177_v13 = vld [vmem:[#allocation42_spill] sm:$0xff]  ;;  %v6178_v31 = vld [vmem:[#allocation43_spill] sm:$0xff] }
 0x849   :  { %2495 = vmatprep.subr.bf16.mxu0 %v4902_v14  ;;  %2536 = vmatprep.subr.bf16.mxu1 %v4905_v52  ;;  %v6173_v14 = vld [vmem:[#allocation67_spill] sm:$0xff]  ;;  %v6174_v52 = vld [vmem:[#allocation68_spill] sm:$0xff] }
 0x84c   :  { %2496 = vmatpush1.bf16.msra.mxu0 %v4908_v34  ;;  %2537 = vmatpush1.bf16.msra.mxu1 %v4911_v51  ;;  %v6175_v34 = vld [vmem:[#allocation69_spill] sm:$0xff] }
 0x84d   :  { %2617 = vmatprep.subr.bf16.mxu0 %v5030_v27  ;;  %2658 = vmatprep.subr.bf16.mxu1 %v5033_v17  ;;  %v6176_v51 = vld [vmem:[#allocation41_spill] sm:$0xff]  ;;  %v6190_v27 = vld [vmem:[#allocation51_spill] sm:$0xff]  ;;  %v6191_v17 = vld [vmem:[#allocation52_spill] sm:$0xff] }
 0x84f   :  { %2514 = vmatmul.mubr.bf16.vlgmr.msra.gmra.mrb[72].mxu0 %v2393_v46  ;;  %2555 = vmatmul.mubr.bf16.vlgmr.msra.gmra.mrb[72].mxu1 %v2393_v46 }
 0x850   :  { %2618 = vmatpush1.bf16.msra.mxu0 %v5036_v28  ;;  %2659 = vmatpush1.bf16.msra.mxu1 %v5039_v32  ;;  %v6192_v28 = vld [vmem:[#allocation53_spill] sm:$0xff]  ;;  %v6193_v32 = vld [vmem:[#allocation54_spill] sm:$0xff] }
 0x851   :  { %2619 = vmatprep.subr.bf16.mxu0 %v5042_v33  ;;  %2660 = vmatprep.subr.bf16.mxu1 %v5045_v35  ;;  %v6194_v33 = vld [vmem:[#allocation55_spill] sm:$0xff]  ;;  %v6195_v35 = vld [vmem:[#allocation56_spill] sm:$0xff] }
 0x854   :  { %2620 = vmatpush1.bf16.msra.mxu0 %v5048_v36  ;;  %2661 = vmatpush1.bf16.msra.mxu1 %v5051_v37  ;;  %v6196_v36 = vld [vmem:[#allocation57_spill] sm:$0xff]  ;;  %v6197_v37 = vld [vmem:[#allocation58_spill] sm:$0xff] }
 0x855   :  { %2621 = vmatprep.subr.bf16.mxu0 %v5054_v41  ;;  %2662 = vmatprep.subr.bf16.mxu1 %v5057_v42  ;;  %v6198_v41 = vld [vmem:[#allocation59_spill] sm:$0xff]  ;;  %v6199_v42 = vld [vmem:[#allocation60_spill] sm:$0xff] }
 0x858   :  { %2622 = vmatpush1.bf16.msra.mxu0 %v6158_v59  ;;  %2663 = vmatpush1.bf16.msra.mxu1 %v6159_v48 }
 0x859   :  { %2623 = vmatprep.subr.bf16.mxu0 %v6160_v22  ;;  %2664 = vmatprep.subr.bf16.mxu1 %v6161_v23 }
 0x85c   :  { %2624 = vmatpush1.bf16.msra.mxu0 %v6162_v19  ;;  %2665 = vmatpush1.bf16.msra.mxu1 %v6163_v25 }
 0x85d   :  { %2625 = vmatprep.subr.bf16.mxu0 %v6164_v16  ;;  %2666 = vmatprep.subr.bf16.mxu1 %v6165_v29  ;;  %v6214_v16 = vld [vmem:[#allocation14_spill] sm:$0xff] }
 0x860   :  { %2626 = vmatpush1.bf16.msra.mxu0 %v6166_v53  ;;  %2667 = vmatpush1.bf16.msra.mxu1 %v6167_v40  ;;  %v6215_v40 = vld [vmem:[#allocation15_spill] sm:$0xff] }
 0x861   :  { %2627 = vmatprep.subr.bf16.mxu0 %v6168_v38  ;;  %2668 = vmatprep.subr.bf16.mxu1 %v6169_v15 }
 0x864   :  { %2628 = vmatpush1.bf16.msra.mxu0 %v6170_v18  ;;  %2669 = vmatpush1.bf16.msra.mxu1 %v6171_v54 }
 0x865   :  { %2629 = vmatprep.subr.bf16.mxu0 %v6172_v56  ;;  %2670 = vmatprep.subr.bf16.mxu1 %v6173_v14 }
 0x868   :  { %2630 = vmatpush1.bf16.msra.mxu0 %v6174_v52  ;;  %2671 = vmatpush1.bf16.msra.mxu1 %v6175_v34 }
 0x869   :  { %2631 = vmatprep.subr.bf16.mxu0 %v6176_v51  ;;  %2672 = vmatprep.subr.bf16.mxu1 %v6177_v13 }
 0x86c   :  { %2632 = vmatpush1.bf16.msra.mxu0 %v6178_v31  ;;  %2673 = vmatpush1.bf16.msra.mxu1 %v6179_v57 }
 0x86d   :  { %2633 = vmatprep.subr.bf16.mxu0 %v6180_v26  ;;  %2674 = vmatprep.subr.bf16.mxu1 %v6181_v1 }
 0x870   :  { %2634 = vmatpush1.bf16.msra.mxu0 %v6182_v10  ;;  %2675 = vmatpush1.bf16.msra.mxu1 %v6183_v9  ;;  %v6216_v9 = vld [vmem:[#allocation90_spill] sm:$0xff] }
 0x871   :  { %2635 = vmatprep.subr.bf16.mxu0 %v6184_v12  ;;  %2676 = vmatprep.subr.bf16.mxu1 %v6185_v3  ;;  %v6217_v3 = vld [vmem:[#allocation91_spill] sm:$0xff] }
 0x874   :  { %2636 = vmatpush1.bf16.msra.mxu0 %v6186_v62  ;;  %2677 = vmatpush1.bf16.msra.mxu1 %v6187_v6 }
 0x875   :  { %2637 = vmatprep.subr.bf16.mxu0 %v6188_v0  ;;  %2678 = vmatprep.subr.bf16.mxu1 %v6189_v21  ;;  %v6218_v21 = vld [vmem:[#allocation92_spill] sm:$0xff] }
 0x878   :  { %2638 = vmatpush1.bf16.msra.mxu0 %v6190_v27  ;;  %2679 = vmatpush1.bf16.msra.mxu1 %v6191_v17  ;;  %v6219_v17 = vld [vmem:[#allocation93_spill] sm:$0xff] }
 0x879   :  { %2639 = vmatprep.subr.bf16.mxu0 %v6192_v28  ;;  %2680 = vmatprep.subr.bf16.mxu1 %v6193_v32 }
 0x87c   :  { %2640 = vmatpush1.bf16.msra.mxu0 %v6194_v33  ;;  %2681 = vmatpush1.bf16.msra.mxu1 %v6195_v35 }
 0x87d   :  { %2641 = vmatprep.subr.bf16.mxu0 %v6196_v36  ;;  %2682 = vmatprep.subr.bf16.mxu1 %v6197_v37 }
 0x880   :  { %2642 = vmatpush1.bf16.msra.mxu0 %v6198_v41  ;;  %2683 = vmatpush1.bf16.msra.mxu1 %v6199_v42 }
 0x881   :  { %2643 = vmatprep.subr.bf16.mxu0 %v6200_v55  ;;  %2684 = vmatprep.subr.bf16.mxu1 %v6201_v47 }
 0x884   :  { %2644 = vmatpush1.bf16.msra.mxu0 %v6202_v5  ;;  %2685 = vmatpush1.bf16.msra.mxu1 %v6203_v63 }
 0x885   :  { %2645 = vmatprep.subr.bf16.mxu0 %v6204_v30  ;;  %2686 = vmatprep.subr.bf16.mxu1 %v6205_v58 }
 0x888   :  { %2646 = vmatpush1.bf16.msra.mxu0 %v6206_v61  ;;  %2687 = vmatpush1.bf16.msra.mxu1 %v6207_v44 }
 0x889   :  { %2647 = vmatprep.subr.bf16.mxu0 %v6208_v60  ;;  %2688 = vmatprep.subr.bf16.mxu1 %v6209_v43 }
 0x88c   :  { %2648 = vmatpush1.bf16.msra.mxu0 %v6210_v45  ;;  %2689 = vmatpush1.bf16.msra.mxu1 %v6211_v7 }
 0x902   :  { %v2429_v2 = vpop.f32.mrb[68].mxu0  ;;  %v2470_v39 = vpop.f32.mrb[68].mxu1 }
 0x903   :  { %v2430_v24 = vadd.f32 %v2429_v2, %v6212_v50  ;;  %v2431_v49 = vpop.f32.mrb[69].mxu0  ;;  %v2472_v11 = vpop.f32.mrb[69].mxu1  ;;  %v2471_v38 = vadd.f32 %v2470_v39, %v6215_v40 }
 0x904   :  { %v2432_v46 = vadd.f32 %v2431_v49, %v6213_v8  ;;  %v2433_v59 = vpop.f32.mrb[70].mxu0  ;;  %v2474_v48 = vpop.f32.mrb[70].mxu1  ;;  %v2473_v29 = vadd.f32 %v2472_v11, %v6214_v16 }
 0x905   :  { %v2936_v22 = vmul.f32 -1.442695, %v2430_v24  ;;  %v2434_v23 = vpop.f32.mrb[71].mxu0  ;;  %v2475_v19 = vpop.f32.mrb[71].mxu1 }
 0x906   :  { %v2937_v25 = vmul.f32 -1.442695, %v2432_v46  ;;  %v2938_v53 = vmul.f32 -1.442695, %v2473_v29 }
 0x907   :  { %3322 = vpow2.f32 %v2936_v22 }
 0x908   :  { %3324 = vpow2.f32 %v2937_v25 }
 0x909   :  { %3326 = vpow2.f32 %v2938_v53 }
 0x90a   :  { %3328 = vtanh.f32 %v2471_v38 }
 0x911   :  { %v3323_v15 = vpop.eup %3322 }
 0x912   :  { %v3325_v18 = vpop.eup %3324  ;;  %v2594_v54 = vadd.f32 1.0, %v3323_v15 }
 0x913   :  { %v2600_v56 = vadd.f32 1.0, %v3325_v18  ;;  %v3327_v14 = vpop.eup %3326 }
 0x914   :  { %3330 = vrcp.f32 %v2594_v54  ;;  %v3329_v52 = vpop.eup %3328  ;;  %v2607_v31 = vadd.f32 1.0, %v3327_v14 }
 0x915   :  { %3332 = vrcp.f32 %v2600_v56 }
 0x916   :  { %3334 = vrcp.f32 %v2607_v31 }
 0x91e   :  { %v3331_v34 = vpop.eup %3330 }
 0x91f   :  { %v3333_v51 = vpop.eup %3332  ;;  %v2611_v13 = vmul.f32 %v3331_v34, %v3329_v52 }
 0x920   :  { %v2610_v57 = vmul.f32 %v3333_v51, %v5229_v20  ;;  %v3335_v41 = vpop.eup %3334 }
 0x922   :  { %v2515_v26 = vpop.f32.mrb[72].mxu0  ;;  %v2556_v1 = vpop.f32.mrb[72].mxu1  ;;  %v5341_v10 = vadd.f32 %v2611_v13, %v2610_v57 }
 0x923   :  { %v2563_v12 = vadd.f32 %v2515_v26, %v6216_v9  ;;  %v2565_v62 = vadd.f32 %v2556_v1, %v6217_v3  ;;  %v2517_v6 = vpop.f32.mrb[73].mxu0  ;;  %v2558_v0 = vpop.f32.mrb[73].mxu1 }
 0x924   :  { %v2564_v27 = vadd.f32 %v2517_v6, %v6218_v21  ;;  %v2566_v28 = vadd.f32 %v2558_v0, %v6219_v17  ;;  %v2519_v32 = vpop.f32.mrb[74].mxu0  ;;  %v2560_v33 = vpop.f32.mrb[74].mxu1  ;;  %3336 = vtanh.f32 %v5341_v10  ;;  %v2942_v0 = vld [vmem:[%s5369_s6] ss:$0 sm:$0xff] }
 0x925   :  { %v2933_v20 = vmul.f32 -1.442695, %v2563_v12  ;;  %v2520_v35 = vpop.f32.mrb[75].mxu0  ;;  %v2561_v36 = vpop.f32.mrb[75].mxu1  ;;  %v2944_v33 = vld [vmem:[#allocation3] ss:$0 sm:$0xff] }
 0x926   :  { %v2934_v37 = vmul.f32 -1.442695, %v2564_v27  ;;  %v2935_v55 = vmul.f32 -1.442695, %v2566_v28 }
 0x927   :  { %3338 = vpow2.f32 %v2933_v20 }
 0x928   :  { %3340 = vpow2.f32 %v2934_v37 }
 0x929   :  { %3342 = vpow2.f32 %v2935_v55 }
 0x92a   :  { %3344 = vtanh.f32 %v2565_v62  ;;  %v2943_v62 = vld [vmem:[%s5369_s6 + $0x1] ss:$0 sm:$0xff] }
 0x92e   :  { %v3337_v42 = vpop.eup %3336 }
 0x92f   :  { %v2614_v47 = vmul.f32 %v3337_v42, %v3335_v41 }
 0x931   :  { %v3339_v5 = vpop.eup %3338  ;;  %v2616_v63 = vpack.c.bf16 %v2614_v47, %v2614_v47 }
 0x932   :  { %v3341_v30 = vpop.eup %3340  ;;  %v2570_v58 = vadd.f32 1.0, %v3339_v5 }
 0x933   :  { %v2576_v61 = vadd.f32 1.0, %v3341_v30  ;;  %2649 = vmatprep.mubr.bf16.mxu0 %v2616_v63  ;;  %2690 = vmatprep.mubr.bf16.mxu1 %v2616_v63  ;;  %v3343_v44 = vpop.eup %3342 }
 0x934   :  { %3346 = vrcp.f32 %v2570_v58  ;;  %v3345_v60 = vpop.eup %3344  ;;  %v2583_v2 = vadd.f32 1.0, %v3343_v44 }
 0x935   :  { %3348 = vrcp.f32 %v2576_v61 }
 0x936   :  { %3350 = vrcp.f32 %v2583_v2 }
 0x93e   :  { %v3347_v43 = vpop.eup %3346 }
 0x93f   :  { %v3349_v45 = vpop.eup %3348  ;;  %v2587_v7 = vmul.f32 %v3347_v43, %v3345_v60 }
 0x940   :  { %v2586_v39 = vmul.f32 %v3349_v45, %v5237_v4  ;;  %v3351_v49 = vpop.eup %3350 }
 0x942   :  { %v2588_v24 = vadd.f32 %v2587_v7, %v2586_v39 }
 0x944   :  { %3352 = vtanh.f32 %v2588_v24 }
 0x94e   :  { %v3353_v11 = vpop.eup %3352 }
 0x94f   :  { %v2590_v46 = vmul.f32 %v3353_v11, %v3351_v49 }
 0x951   :  { %v2615_v59 = vpack.c.bf16 %v2590_v46, %v2590_v46 }
 0x953   :  { %2650 = vmatmul.mubr.bf16.vlgmr.msra.gmra.mrb[76].mxu0 %v2615_v59  ;;  %2691 = vmatmul.mubr.bf16.vlgmr.msra.gmra.mrb[76].mxu1 %v2615_v59 }
 0xa26   :  { %v2651_v48 = vpop.f32.mrb[76].mxu0  ;;  %v2692_v22 = vpop.f32.mrb[76].mxu1 }
 0xa27   :  { %v2652_v23 = vadd.f32 %v2651_v48, %v6212_v50  ;;  %v2653_v19 = vpop.f32.mrb[77].mxu0  ;;  %v2694_v25 = vpop.f32.mrb[77].mxu1  ;;  %v2693_v52 = vadd.f32 %v2692_v22, %v6215_v40 }
 0xa28   :  { %v2654_v29 = vadd.f32 %v2653_v19, %v6213_v8  ;;  %v2655_v53 = vpop.f32.mrb[78].mxu0  ;;  %v2696_v38 = vpop.f32.mrb[78].mxu1  ;;  %v2695_v56 = vadd.f32 %v2694_v25, %v6214_v16 }
 0xa29   :  { %v2939_v4 = vmul.f32 -1.442695, %v2652_v23  ;;  %v2656_v15 = vpop.f32.mrb[79].mxu0  ;;  %v2697_v18 = vpop.f32.mrb[79].mxu1 }
 0xa2a   :  { %v2940_v54 = vmul.f32 -1.442695, %v2654_v29  ;;  %v2941_v14 = vmul.f32 -1.442695, %v2695_v56 }
 0xa2b   :  { %3354 = vpow2.f32 %v2939_v4 }
 0xa2c   :  { %3356 = vpow2.f32 %v2940_v54 }
 0xa2d   :  { %3358 = vpow2.f32 %v2941_v14 }
 0xa2e   :  { %3360 = vtanh.f32 %v2693_v52 }
 0xa35   :  { %v3355_v34 = vpop.eup %3354 }
 0xa36   :  { %v3357_v51 = vpop.eup %3356  ;;  %v2702_v50 = vadd.f32 1.0, %v3355_v34 }
 0xa37   :  { %v2708_v13 = vadd.f32 1.0, %v3357_v51  ;;  %v3359_v8 = vpop.eup %3358 }
 0xa38   :  { %3362 = vrcp.f32 %v2702_v50  ;;  %v3361_v31 = vpop.eup %3360  ;;  %v2715_v9 = vadd.f32 1.0, %v3359_v8 }
 0xa39   :  { %3364 = vrcp.f32 %v2708_v13 }
 0xa3a   :  { %3366 = vrcp.f32 %v2715_v9 }
 0xa42   :  { %v3363_v57 = vpop.eup %3362 }
 0xa43   :  { %v3365_v26 = vpop.eup %3364  ;;  %v2719_v1 = vmul.f32 %v3363_v57, %v3361_v31 }
 0xa44   :  { %v2718_v12 = vmul.f32 %v3365_v26, %v5341_v10  ;;  %v3367_v40 = vpop.eup %3366 }
 0xa46   :  { %v2720_v16 = vadd.f32 %v2719_v1, %v2718_v12 }
 0xa48   :  { %3368 = vtanh.f32 %v2720_v16 }
 0xa52   :  { %v3369_v3 = vpop.eup %3368 }
 0xa53   :  { %v2722_v6 = vmul.f32 %v3369_v3, %v3367_v40 }
 0xa55   :  { %v2742_v21 = vmul.f32 %v2943_v62, %v2722_v6  ;;  %v2730_v17 = vmul.f32 %v2942_v0, %v2722_v6 }
 0xa57   :  { %v2744_v27 = vsel %vm2743_vm1, %v2742_v21, 0.0  ;;  %v2732_v10 = vsel %vm2731_vm2, %v2730_v17, 0.0 }
 0xa58   :  { %2745 = vadd.xlane.f32.xlu0 %v2744_v27 }
 0xa5c   :  { %2733 = vadd.xlane.f32.xlu0 %v2732_v10 }
 0xae5   :  { %v2746_v28 = vpop.xlane.xlu0 %2745 }
 0xae6   :  { %v2748_v32 = vrot.slane %v2746_v28, 2 }
 0xae9   :  { %v2734_v20 = vpop.xlane.xlu0 %2733 }
 0xaea   :  { %v2750_v35 = vadd.f32 %v2748_v32, %v2734_v20 }
 0xaec   :  { %v2758_v36 = vadd.f32 %v2944_v33, %v2750_v35 }
 0xaee   :  { %v2945_v37 = vmul.f32 -1.442695, %v2758_v36 }
 0xaf0   :  { %3370 = vpow2.f32 %v2945_v37 }
 0xafa   :  { %v3371_v41 = vpop.eup %3370 }
 0xafb   :  { %v2762_v42 = vadd.f32 1.0, %v3371_v41 }
 0xafd   :  { %3372 = vrcp.f32 %v2762_v42 }
 0xb07   :  { %v3373_v55 = vpop.eup %3372 }
 0xb08   :  { %v2765_v47 = vsel %vm2731_vm2, %v3373_v55, 0.0 }
 0xb09   :  { %2768 = vperm.xlu1 %2952, %v2765_v47  }
 0xb88   :  { %v2769_v5 = vpop.permute.xlu1 %2768 }
 0xb89   :  { %2771 = vst [vmem:[%s5371_s8] sm:$0xff] %v2769_v5 }
 0xb8a   :  { %2776 = vsyncpa [#allocation5], 1 }
 0xb8b   :  { %2777 = vsyncpa [#allocation7], 1 }

</bundles_post_ra>
